<compile_context>
chip_gen: v5e
topology: v5e:2x2
jax: 0.10.0
libtpu: 0.0.40
codegen_flags: <defaults>
</compile_context>

<pallas_src>
import functools

import jax
import jax.numpy as jnp
from jax.experimental import pallas as pl
from jax.experimental.pallas import tpu as pltpu

LANE = 128      # vreg lane width  (last-dim alignment)
SUBLANE = 8     # f32 sublane count (second-to-last-dim alignment)


def _round_up(x, m):
    return (x + m - 1) // m * m


# ----------------------------------------------------------------------------
# Pallas kernels
# ----------------------------------------------------------------------------
def gi_single_kernel(x_ref, w_ref, b_ref, o_ref):
    """Hoisted input-gate GEMM for layer 0: o = x @ W + b for one (dir, time-block)."""
    TT, Bp, Din = x_ref.shape
    x2 = x_ref[...].reshape(TT * Bp, Din)
    acc = jnp.dot(x2, w_ref[...], preferred_element_type=jnp.float32) + b_ref[...]
    o_ref[...] = acc.reshape(TT, Bp, -1)


def two_slab_matmul_kernel(x_ref, w_ref, b_ref, o_ref):
    """o = x[0] @ w[0] + x[1] @ w[1] + b.

    Used for (a) the hoisted input-gate GEMM of layers >= 1 (x = previous layer's
    fwd/bwd output slabs, so the (T, B, 2H) concat never hits HBM) and (b) the
    output projection.
    """
    _, TT, Bp, K = x_ref.shape
    xf = x_ref[0].reshape(TT * Bp, K)
    xb = x_ref[1].reshape(TT * Bp, K)
    acc = jnp.dot(xf, w_ref[0], preferred_element_type=jnp.float32)
    acc = acc + jnp.dot(xb, w_ref[1], preferred_element_type=jnp.float32)
    o_ref[...] = (acc + b_ref[...]).reshape(TT, Bp, -1)


def gru_recurrence_kernel(len_ref, gi_ref, whh_ref, bhh_ref, out_ref, hn_ref,
                          h_scratch, *, TT, Hp, nTb):
    """Sequential part of the GRU: per step only h @ W_hh^T + gate math.

    grid = (2, nTb): axis 0 = direction ("parallel"), axis 1 = time blocks
    ("arbitrary").  The BlockSpec index_map hands the backward direction its time
    blocks back-to-front; inside the block the unrolled loop walks steps in the
    matching order.  Hidden state stays resident in VMEM scratch.
    """
    d = pl.program_id(0)            # 0 = forward, 1 = backward
    tb = pl.program_id(1)           # time-block counter (iteration order)

    @pl.when(tb == 0)
    def _():
        h_scratch[...] = jnp.zeros(h_scratch.shape, h_scratch.dtype)

    # time block mapped to this grid step (reversed for the backward direction)
    t_block = tb + d * (nTb - 1 - 2 * tb)
    t_base = t_block * TT
    lengths = len_ref[...]          # (Bp, 1) int32

    def step(s, carry):
        li = s + d * (TT - 1 - 2 * s)        # local step index inside the block
        t = t_base + li                      # absolute time index (length masking)
        gi_t = gi_ref[li]                    # (Bp, 3*Hp) precomputed input gates
        h = h_scratch[...]                   # (Bp, Hp)
        gh = (jnp.dot(h, whh_ref[...], preferred_element_type=jnp.float32)
              + bhh_ref[...])
        r = jax.nn.sigmoid(gi_t[:, 0:Hp] + gh[:, 0:Hp])
        z = jax.nn.sigmoid(gi_t[:, Hp:2 * Hp] + gh[:, Hp:2 * Hp])
        n = jnp.tanh(gi_t[:, 2 * Hp:3 * Hp] + r * gh[:, 2 * Hp:3 * Hp])
        h_new = (1.0 - z) * n + z * h
        mask = t < lengths                   # (Bp, 1): freeze / zero past each length
        h_upd = jnp.where(mask, h_new, h)
        h_scratch[...] = h_upd
        out_ref[li] = jnp.where(mask, h_new, 0.0)
        return carry

    jax.lax.fori_loop(0, TT, step, 0, unroll=True)

    @pl.when(tb == nTb - 1)
    def _():
        hn_ref[...] = h_scratch[...]         # written exactly once per direction


# ----------------------------------------------------------------------------
# pallas_call wrappers
# ----------------------------------------------------------------------------
def _gi_first_layer(x, wih_stack, bih_stack, TT):
    # x: (T_pad, Bp, Din); wih_stack: (2, Din, 3Hp); bih_stack: (2, 1, 3Hp)
    T_pad, Bp, Din = x.shape
    G = wih_stack.shape[-1]
    nTb = T_pad // TT
    return pl.pallas_call(
        gi_single_kernel,
        out_shape=jax.ShapeDtypeStruct((2, T_pad, Bp, G), jnp.float32),
        grid_spec=pltpu.PrefetchScalarGridSpec(
            num_scalar_prefetch=0,
            grid=(2, nTb),
            in_specs=[
                pl.BlockSpec((TT, Bp, Din), lambda d, t: (t, 0, 0)),
                pl.BlockSpec((None, Din, G), lambda d, t: (d, 0, 0)),
                pl.BlockSpec((None, 1, G), lambda d, t: (d, 0, 0)),
            ],
            out_specs=pl.BlockSpec((None, TT, Bp, G), lambda d, t: (d, t, 0, 0)),
        ),
        compiler_params=pltpu.CompilerParams(
            dimension_semantics=("parallel", "parallel")),
    )(x, wih_stack, bih_stack)


def _gi_hidden_layer(x_prev, wih_stack, bih_stack, TT):
    # x_prev: (2, T_pad, Bp, Hp) fwd/bwd slabs of the previous layer
    # wih_stack: (2 dirs, 2 slabs, Hp, 3Hp); bih_stack: (2, 1, 3Hp)
    _, T_pad, Bp, Hp = x_prev.shape
    G = wih_stack.shape[-1]
    nTb = T_pad // TT
    return pl.pallas_call(
        two_slab_matmul_kernel,
        out_shape=jax.ShapeDtypeStruct((2, T_pad, Bp, G), jnp.float32),
        grid_spec=pltpu.PrefetchScalarGridSpec(
            num_scalar_prefetch=0,
            grid=(2, nTb),
            in_specs=[
                pl.BlockSpec((2, TT, Bp, Hp), lambda d, t: (0, t, 0, 0)),
                pl.BlockSpec((None, 2, Hp, G), lambda d, t: (d, 0, 0, 0)),
                pl.BlockSpec((None, 1, G), lambda d, t: (d, 0, 0)),
            ],
            out_specs=pl.BlockSpec((None, TT, Bp, G), lambda d, t: (d, t, 0, 0)),
        ),
        compiler_params=pltpu.CompilerParams(
            dimension_semantics=("parallel", "parallel")),
    )(x_prev, wih_stack, bih_stack)


def _gru_recurrence(gi, lengths_b1, whh_stack, bhh_stack, TT):
    # gi: (2, T_pad, Bp, 3Hp); whh_stack: (2, Hp, 3Hp); bhh_stack: (2, 1, 3Hp)
    _, T_pad, Bp, G = gi.shape
    Hp = whh_stack.shape[1]
    nTb = T_pad // TT
    kernel = functools.partial(gru_recurrence_kernel, TT=TT, Hp=Hp, nTb=nTb)
    t_map = lambda d, t: (d, t + d * (nTb - 1 - 2 * t), 0, 0)
    # NOTE: W_hh^T is only re-fetched when the direction changes (index depends on
    #       d only).  For very large H raise vmem_limit_bytes here (keep well under
    #       64 MiB for v7x).
    out, hn = pl.pallas_call(
        kernel,
        out_shape=(jax.ShapeDtypeStruct((2, T_pad, Bp, Hp), jnp.float32),
                   jax.ShapeDtypeStruct((2, Bp, Hp), jnp.float32)),
        grid_spec=pltpu.PrefetchScalarGridSpec(
            num_scalar_prefetch=0,
            grid=(2, nTb),
            in_specs=[
                pl.BlockSpec((Bp, 1), lambda d, t: (0, 0)),      # lengths
                pl.BlockSpec((None, TT, Bp, G), t_map),           # precomputed gi
                pl.BlockSpec((None, Hp, G), lambda d, t: (d, 0, 0)),   # W_hh^T
                pl.BlockSpec((None, 1, G), lambda d, t: (d, 0, 0)),    # b_hh
            ],
            out_specs=(
                pl.BlockSpec((None, TT, Bp, Hp), t_map),          # per-step outputs
                pl.BlockSpec((None, Bp, Hp), lambda d, t: (d, 0, 0)),  # final hidden
            ),
            scratch_shapes=[pltpu.VMEM((Bp, Hp), jnp.float32)],
        ),
        compiler_params=pltpu.CompilerParams(
            dimension_semantics=("parallel", "arbitrary")),
    )(lengths_b1, gi, whh_stack, bhh_stack)
    return out, hn


def _output_projection(x, wp_stack, bp, TT):
    # x: (2, T_pad, Bp, Hp) final-layer slabs; wp_stack: (2, Hp, Op); bp: (1, Op)
    _, T_pad, Bp, Hp = x.shape
    Op = wp_stack.shape[-1]
    nTb = T_pad // TT
    return pl.pallas_call(
        two_slab_matmul_kernel,
        out_shape=jax.ShapeDtypeStruct((T_pad, Bp, Op), jnp.float32),
        grid_spec=pltpu.PrefetchScalarGridSpec(
            num_scalar_prefetch=0,
            grid=(nTb,),
            in_specs=[
                pl.BlockSpec((2, TT, Bp, Hp), lambda t: (0, t, 0, 0)),
                pl.BlockSpec((2, Hp, Op), lambda t: (0, 0, 0)),
                pl.BlockSpec((1, Op), lambda t: (0, 0)),
            ],
            out_specs=pl.BlockSpec((TT, Bp, Op), lambda t: (t, 0, 0)),
        ),
        compiler_params=pltpu.CompilerParams(dimension_semantics=("parallel",)),
    )(x, wp_stack, bp)


# ----------------------------------------------------------------------------
# Parameter layout prep (pad gates/hidden to 128 lanes, split per input slab)
# ----------------------------------------------------------------------------
def _pad_gates(a, H, Hp):
    """(..., 3H) -> (..., 3Hp): pad each of the r/z/n gate chunks to Hp lanes."""
    pad = [(0, 0)] * (a.ndim - 1) + [(0, Hp - H)]
    return jnp.concatenate(
        [jnp.pad(a[..., g * H:(g + 1) * H], pad) for g in range(3)], axis=-1)


def _prep_whh(w_hh, H, Hp):
    """(3H, H) -> (Hp, 3Hp): transposed, gate- and row-padded."""
    return jnp.pad(_pad_gates(w_hh.T, H, Hp), ((0, Hp - H), (0, 0)))


def _prep_gate_bias(b, H, Hp):
    return _pad_gates(b, H, Hp).reshape(1, 3 * Hp)


def _prep_wih_layer0(w_ih, H, Hp):
    """(3H, D) -> (D, 3Hp)."""
    return _pad_gates(w_ih.T, H, Hp)


def _prep_wih_slabs(w_ih, H, Hp):
    """(3H, 2H) -> (2, Hp, 3Hp): one transposed/padded weight block per input slab."""
    slabs = []
    for s in range(2):
        w_s = _pad_gates(w_ih[:, s * H:(s + 1) * H].T, H, Hp)      # (H, 3Hp)
        slabs.append(jnp.pad(w_s, ((0, Hp - H), (0, 0))))          # (Hp, 3Hp)
    return jnp.stack(slabs)


def _prep_proj(w, b, H, Hp, Op):
    """w: (O, 2H) -> (2, Hp, Op);  b: (O,) -> (1, Op)."""
    O = w.shape[0]
    slabs = [jnp.pad(w[:, s * H:(s + 1) * H].T, ((0, Hp - H), (0, Op - O)))
             for s in range(2)]
    return jnp.stack(slabs), jnp.pad(b, (0, Op - O)).reshape(1, Op)


# ----------------------------------------------------------------------------
# Encoder forward
# ----------------------------------------------------------------------------
@jax.jit
def _encoder_impl(params, inputs, input_lengths):
    B, T, _ = inputs.shape
    H = params["rnn"][0]["fwd"][1].shape[1]          # w_hh: (3H, H)
    O = params["proj_b"].shape[0]
    Hp = _round_up(H, LANE)
    Op = _round_up(O, LANE)
    Bp = _round_up(B, SUBLANE)
    TT = 8 if T <= 256 else 32                       # timesteps per grid step
    T_pad = _round_up(T, TT)

    x = jnp.transpose(inputs, (1, 0, 2)).astype(jnp.float32)       # (T, B, D)
    x = jnp.pad(x, ((0, T_pad - T), (0, Bp - B), (0, 0)))
    lengths = jnp.pad(input_lengths.astype(jnp.int32), (0, Bp - B)).reshape(Bp, 1)

    hns = []
    slabs = None                                      # (2, T_pad, Bp, Hp) per layer
    for li, layer in enumerate(params["rnn"]):
        (wih_f, whh_f, bih_f, bhh_f) = layer["fwd"]
        (wih_b, whh_b, bih_b, bhh_b) = layer["bwd"]
        whh_stack = jnp.stack([_prep_whh(whh_f, H, Hp), _prep_whh(whh_b, H, Hp)])
        bhh_stack = jnp.stack([_prep_gate_bias(bhh_f, H, Hp),
                               _prep_gate_bias(bhh_b, H, Hp)])
        bih_stack = jnp.stack([_prep_gate_bias(bih_f, H, Hp),
                               _prep_gate_bias(bih_b, H, Hp)])
        if li == 0:
            wih_stack = jnp.stack([_prep_wih_layer0(wih_f, H, Hp),
                                   _prep_wih_layer0(wih_b, H, Hp)])
            gi = _gi_first_layer(x, wih_stack, bih_stack, TT)
        else:
            wih_stack = jnp.stack([_prep_wih_slabs(wih_f, H, Hp),
                                   _prep_wih_slabs(wih_b, H, Hp)])
            gi = _gi_hidden_layer(slabs, wih_stack, bih_stack, TT)
        # TODO(synk): inter-layer dropout (p=0.2) is train-only; eval (identity) here.
        slabs, hn = _gru_recurrence(gi, lengths, whh_stack, bhh_stack, TT)
        hns.append(hn)

    wp_stack, bp = _prep_proj(params["proj_w"], params["proj_b"], H, Hp, Op)
    logits_p = _output_projection(slabs, wp_stack, bp, TT)          # (T_pad, Bp, Op)

    logits = jnp.transpose(logits_p[:T, :B, :O], (1, 0, 2))         # (B, T, O)
    # hidden keeps the length-sorted batch order (mirrors the original module)
    sort_idx = jnp.argsort(-input_lengths)
    hidden = jnp.concatenate(hns, axis=0)[:, :B, :H][:, sort_idx]   # (2*L, B, H)
    return logits, hidden


def encoder_forward(params, inputs, input_lengths):
    """inputs: (B, T, input_size) batch-first, like PyTorch. Returns (logits, hidden)."""
    logits, hidden = _encoder_impl(params, inputs, input_lengths)
    # pad_packed_sequence pads only up to max(input_lengths).  Single host sync,
    # after all kernels have already been dispatched.
    max_len = int(jnp.max(input_lengths))
    return logits[:, :max_len], hidden


# ----------------------------------------------------------------------------
# Pure-JAX reference (for correctness check)
# ----------------------------------------------------------------------------
def ref_gru_direction(x_tbd, lengths, w_ih, w_hh, b_ih, b_hh, reverse):
    T, B, _ = x_tbd.shape
    H = w_hh.shape[1]

    def step(h, inp):
        x_t, t = inp
        gi = x_t @ w_ih.T + b_ih
        gh = h @ w_hh.T + b_hh
        r = jax.nn.sigmoid(gi[:, :H] + gh[:, :H])
        z = jax.nn.sigmoid(gi[:, H:2 * H] + gh[:, H:2 * H])
        n = jnp.tanh(gi[:, 2 * H:] + r * gh[:, 2 * H:])
        h_new = (1.0 - z) * n + z * h
        mask = (t < lengths)[:, None]
        h = jnp.where(mask, h_new, h)
        o = jnp.where(mask, h_new, 0.0)
        return h, o

    ts = jnp.arange(T)
    xs = x_tbd[::-1] if reverse else x_tbd
    ts = ts[::-1] if reverse else ts
    hT, outs = jax.lax.scan(step, jnp.zeros((B, H), jnp.float32), (xs, ts))
    if reverse:
        outs = outs[::-1]
    return outs, hT


def encoder_reference(params, inputs, input_lengths):
    B, T, _ = inputs.shape
    lengths = input_lengths.astype(jnp.int32)
    x = jnp.transpose(inputs, (1, 0, 2)).astype(jnp.float32)
    hns = []
    for layer in params["rnn"]:
        out_f, hn_f = ref_gru_direction(x, lengths, *layer["fwd"], reverse=False)
        out_b, hn_b = ref_gru_direction(x, lengths, *layer["bwd"], reverse=True)
        x = jnp.concatenate([out_f, out_b], axis=-1)
        hns.extend([hn_f, hn_b])
    outputs = jnp.transpose(x, (1, 0, 2))
    max_len = int(jnp.max(input_lengths))
    outputs = outputs[:, :max_len]
    logits = outputs @ params["proj_w"].T + params["proj_b"]
    sort_idx = jnp.argsort(-input_lengths)
    hidden = jnp.stack(hns, axis=0)[:, sort_idx]
    return logits, hidden


# ----------------------------------------------------------------------------
# Deterministic parameter init (matches PyTorch GRU / Linear shapes)
# ----------------------------------------------------------------------------
def init_params(key, input_size, hidden_size, output_size, n_layers, bidirectional=True):
    n_dir = 2 if bidirectional else 1
    k_rnn = 1.0 / jnp.sqrt(hidden_size)
    layers = []
    for layer in range(n_layers):
        in_l = input_size if layer == 0 else n_dir * hidden_size
        layer_params = {}
        for _, name in enumerate(["fwd", "bwd"][:n_dir]):
            key, k1, k2, k3, k4 = jax.random.split(key, 5)
            layer_params[name] = (
                jax.random.uniform(k1, (3 * hidden_size, in_l), jnp.float32, -k_rnn, k_rnn),
                jax.random.uniform(k2, (3 * hidden_size, hidden_size), jnp.float32, -k_rnn, k_rnn),
                jax.random.uniform(k3, (3 * hidden_size,), jnp.float32, -k_rnn, k_rnn),
                jax.random.uniform(k4, (3 * hidden_size,), jnp.float32, -k_rnn, k_rnn),
            )
        layers.append(layer_params)
    k_lin = 1.0 / jnp.sqrt(n_dir * hidden_size)
    key, k1, k2 = jax.random.split(key, 3)
    proj_w = jax.random.uniform(k1, (output_size, n_dir * hidden_size), jnp.float32, -k_lin, k_lin)
    proj_b = jax.random.uniform(k2, (output_size,), jnp.float32, -k_lin, k_lin)
    return {"rnn": layers, "proj_w": proj_w, "proj_b": proj_b}


# ----------------------------------------------------------------------------
if __name__ == "__main__":
    B, T = 2, 8
    input_size, hidden_size, output_size, n_layers = 16, 32, 24, 2

    key = jax.random.PRNGKey(0)
    k_in, k_params = jax.random.split(key)
    inputs = jax.random.normal(k_in, (B, T, input_size), jnp.float32)
    input_lengths = jnp.array([5, 8], dtype=jnp.int32)   # unsorted -> exercises sort path

    params = init_params(k_params, input_size, hidden_size, output_size, n_layers)

    logits, hidden = encoder_forward(params, inputs, input_lengths)
    jax.block_until_ready((logits, hidden))

    ref_logits, ref_hidden = encoder_reference(params, inputs, input_lengths)
    assert logits.shape == ref_logits.shape == (B, int(jnp.max(input_lengths)), output_size)
    assert hidden.shape == ref_hidden.shape == (2 * n_layers, B, hidden_size)
    # kernel matmuls run at default MXU precision (no f32 "highest" emulation)
    assert jnp.allclose(logits, ref_logits, atol=3e-2, rtol=3e-2)
    assert jnp.allclose(hidden, ref_hidden, atol=3e-2, rtol=3e-2)

    print("KERNEL_OK")
</pallas_src>

<mosaic_0001>
module attributes {stable_mosaic.version = 11 : i64} {
  func.func @gi_single_kernel(%arg0: i32, %arg1: i32, %arg2: memref<8x8x16xf32, #tpu.memory_space<vmem>>, %arg3: memref<1x16x384xf32, #tpu.memory_space<vmem>>, %arg4: memref<1x1x384xf32, #tpu.memory_space<vmem>>, %arg5: memref<1x8x8x384xf32, #tpu.memory_space<vmem>>) attributes {dimension_semantics = [#tpu.dimension_semantics<parallel>, #tpu.dimension_semantics<parallel>], iteration_bounds = array<i64: 2, 1>, scalar_prefetch = 0 : i64, scratch_operands = 0 : i64, tpu.core_type = #tpu.core_type<tc>, window_params = [{transform_indices = @transform_0, window_bounds = array<i64: 8, 8, 16>}, {transform_indices = @transform_1, window_bounds = array<i64: 1, 16, 384>}, {transform_indices = @transform_2, window_bounds = array<i64: 1, 1, 384>}, {transform_indices = @transform_3, window_bounds = array<i64: 1, 8, 8, 384>}]} {
    %c0 = arith.constant 0 : index
    %c0_0 = arith.constant 0 : index
    %c0_1 = arith.constant 0 : index
    %0 = vector.load %arg2[%c0, %c0_0, %c0_1] : memref<8x8x16xf32, #tpu.memory_space<vmem>>, vector<8x8x16xf32>
    %1 = vector.shape_cast %0 : vector<8x8x16xf32> to vector<64x16xf32>
    %c0_2 = arith.constant 0 : index
    %c0_3 = arith.constant 0 : index
    %c0_4 = arith.constant 0 : index
    %2 = vector.load %arg3[%c0_2, %c0_3, %c0_4] : memref<1x16x384xf32, #tpu.memory_space<vmem>>, vector<1x16x384xf32>
    %3 = vector.shape_cast %2 : vector<1x16x384xf32> to vector<16x384xf32>
    %cst = arith.constant dense<0.000000e+00> : vector<64x384xf32>
    %4 = tpu.matmul %1, %3, %cst {dimension_numbers = #tpu.dot_dimension_numbers<[1], [0], [0], [1], [0, 0, 1, 1], [], []>} : vector<64x16xf32>, vector<16x384xf32>, vector<64x384xf32> -> vector<64x384xf32>
    %c0_5 = arith.constant 0 : index
    %c0_6 = arith.constant 0 : index
    %c0_7 = arith.constant 0 : index
    %5 = vector.load %arg4[%c0_5, %c0_6, %c0_7] : memref<1x1x384xf32, #tpu.memory_space<vmem>>, vector<1x1x384xf32>
    %6 = vector.shape_cast %5 : vector<1x1x384xf32> to vector<1x384xf32>
    %7 = vector.broadcast %6 : vector<1x384xf32> to vector<64x384xf32>
    %8 = arith.addf %4, %7 : vector<64x384xf32>
    %9 = vector.shape_cast %8 : vector<64x384xf32> to vector<8x8x384xf32>
    %c0_8 = arith.constant 0 : index
    %c0_9 = arith.constant 0 : index
    %c0_10 = arith.constant 0 : index
    %c0_11 = arith.constant 0 : index
    %10 = vector.load %arg5[%c0_8, %c0_9, %c0_10, %c0_11] : memref<1x8x8x384xf32, #tpu.memory_space<vmem>>, vector<1x8x8x384xf32>
    %11 = vector.shape_cast %10 : vector<1x8x8x384xf32> to vector<8x8x384xf32>
    %12 = vector.shape_cast %9 : vector<8x8x384xf32> to vector<1x8x8x384xf32>
    tpu.vector_store %arg5[%c0_8, %c0_9, %c0_10, %c0_11], %12 {strides = array<i32>} : memref<1x8x8x384xf32, #tpu.memory_space<vmem>>, vector<1x8x8x384xf32>,
    return
  }
  func.func @transform_0(%arg0: i32, %arg1: i32) -> (i32, i32, i32) {
    %c0_i32 = arith.constant 0 : i32
    %c0_i32_0 = arith.constant 0 : i32
    %c0_i32_1 = arith.constant 0 : i32
    return %arg1, %c0_i32, %c0_i32_0 : i32, i32, i32
  }
  func.func @transform_1(%arg0: i32, %arg1: i32) -> (i32, i32, i32) {
    %c0_i32 = arith.constant 0 : i32
    %c0_i32_0 = arith.constant 0 : i32
    %c0_i32_1 = arith.constant 0 : i32
    return %arg0, %c0_i32, %c0_i32_0 : i32, i32, i32
  }
  func.func @transform_2(%arg0: i32, %arg1: i32) -> (i32, i32, i32) {
    %c0_i32 = arith.constant 0 : i32
    %c0_i32_0 = arith.constant 0 : i32
    %c0_i32_1 = arith.constant 0 : i32
    return %arg0, %c0_i32, %c0_i32_0 : i32, i32, i32
  }
  func.func @transform_3(%arg0: i32, %arg1: i32) -> (i32, i32, i32, i32) {
    %c0_i32 = arith.constant 0 : i32
    %c0_i32_0 = arith.constant 0 : i32
    %c0_i32_1 = arith.constant 0 : i32
    return %arg0, %arg1, %c0_i32, %c0_i32_0 : i32, i32, i32, i32
  }
}

module attributes {stable_mosaic.version = 11 : i64} {
  func.func @gru_recurrence_kernel(%arg0: i32, %arg1: i32, %arg2: memref<8x1xi32, #tpu.memory_space<vmem>>, %arg3: memref<1x8x8x384xf32, #tpu.memory_space<vmem>>, %arg4: memref<1x128x384xf32, #tpu.memory_space<vmem>>, %arg5: memref<1x1x384xf32, #tpu.memory_space<vmem>>, %arg6: memref<1x8x8x128xf32, #tpu.memory_space<vmem>>, %arg7: memref<1x8x128xf32, #tpu.memory_space<vmem>>, %arg8: memref<8x128xf32, #tpu.memory_space<vmem>>) attributes {dimension_semantics = [#tpu.dimension_semantics<parallel>, #tpu.dimension_semantics<arbitrary>], iteration_bounds = array<i64: 2, 1>, scalar_prefetch = 0 : i64, scratch_operands = 1 : i64, tpu.core_type = #tpu.core_type<tc>, window_params = [{pipeline_mode = #tpu.pipeline_mode<synchronous>, transform_indices = @transform_0, window_bounds = array<i64: 8, 1>}, {transform_indices = @transform_1, window_bounds = array<i64: 1, 8, 8, 384>}, {transform_indices = @transform_2, window_bounds = array<i64: 1, 128, 384>}, {transform_indices = @transform_3, window_bounds = array<i64: 1, 1, 384>}, {transform_indices = @transform_4, window_bounds = array<i64: 1, 8, 8, 128>}, {transform_indices = @transform_5, window_bounds = array<i64: 1, 8, 128>}]} {
    %c0_i32 = arith.constant 0 : i32
    %0 = arith.cmpi eq, %arg1, %c0_i32 : i32
    %1 = arith.extui %0 : i1 to i32
    %c0_i32_0 = arith.constant 0 : i32
    %2 = arith.cmpi ne, %1, %c0_i32_0 : i32
    scf.if %2 {
      %cst_191 = arith.constant 0.000000e+00 : f32
      %460 = vector.broadcast %cst_191 : f32 to vector<8x128xf32>
      %c0_192 = arith.constant 0 : index
      %c0_193 = arith.constant 0 : index
      %461 = vector.load %arg8[%c0_192, %c0_193] : memref<8x128xf32, #tpu.memory_space<vmem>>, vector<8x128xf32>
      tpu.vector_store %arg8[%c0_192, %c0_193], %460 {strides = array<i32>} : memref<8x128xf32, #tpu.memory_space<vmem>>, vector<8x128xf32>,
    } else {
    }
    %c2_i32 = arith.constant 2 : i32
    %3 = arith.muli %c2_i32, %arg1 : i32
    %c0_i32_1 = arith.constant 0 : i32
    %4 = arith.subi %c0_i32_1, %3 : i32
    %5 = arith.muli %arg0, %4 : i32
    %6 = arith.addi %arg1, %5 : i32
    %c8_i32 = arith.constant 8 : i32
    %7 = arith.muli %6, %c8_i32 : i32
    %c0 = arith.constant 0 : index
    %c0_2 = arith.constant 0 : index
    %8 = vector.load %arg2[%c0, %c0_2] : memref<8x1xi32, #tpu.memory_space<vmem>>, vector<8x1xi32>
    %c0_i32_3 = arith.constant 0 : i32
    %c2_i32_4 = arith.constant 2 : i32
    %9 = arith.muli %c2_i32_4, %c0_i32_3 : i32
    %c7_i32 = arith.constant 7 : i32
    %10 = arith.subi %c7_i32, %9 : i32
    %11 = arith.muli %arg0, %10 : i32
    %12 = arith.addi %c0_i32_3, %11 : i32
    %13 = arith.addi %7, %12 : i32
    %c0_5 = arith.constant 0 : index
    %14 = arith.index_cast %12 : i32 to index
    %c0_6 = arith.constant 0 : index
    %c0_7 = arith.constant 0 : index
    %15 = vector.load %arg3[%c0_5, %14, %c0_6, %c0_7] : memref<1x8x8x384xf32, #tpu.memory_space<vmem>>, vector<1x1x8x384xf32>
    %16 = vector.shape_cast %15 : vector<1x1x8x384xf32> to vector<8x384xf32>
    %c0_8 = arith.constant 0 : index
    %c0_9 = arith.constant 0 : index
    %17 = vector.load %arg8[%c0_8, %c0_9] : memref<8x128xf32, #tpu.memory_space<vmem>>, vector<8x128xf32>
    %c0_10 = arith.constant 0 : index
    %c0_11 = arith.constant 0 : index
    %c0_12 = arith.constant 0 : index
    %18 = vector.load %arg4[%c0_10, %c0_11, %c0_12] : memref<1x128x384xf32, #tpu.memory_space<vmem>>, vector<1x128x384xf32>
    %19 = vector.shape_cast %18 : vector<1x128x384xf32> to vector<128x384xf32>
    %cst = arith.constant dense<0.000000e+00> : vector<8x384xf32>
    %20 = tpu.matmul %17, %19, %cst {dimension_numbers = #tpu.dot_dimension_numbers<[1], [0], [0], [1], [0, 0, 1, 1], [], []>} : vector<8x128xf32>, vector<128x384xf32>, vector<8x384xf32> -> vector<8x384xf32>
    %c0_13 = arith.constant 0 : index
    %c0_14 = arith.constant 0 : index
    %c0_15 = arith.constant 0 : index
    %21 = vector.load %arg5[%c0_13, %c0_14, %c0_15] : memref<1x1x384xf32, #tpu.memory_space<vmem>>, vector<1x1x384xf32>
    %22 = vector.shape_cast %21 : vector<1x1x384xf32> to vector<1x384xf32>
    %23 = vector.broadcast %22 : vector<1x384xf32> to vector<8x384xf32>
    %24 = arith.addf %20, %23 : vector<8x384xf32>
    %25 = vector.extract_strided_slice %16 {offsets = [0, 0], sizes = [8, 128], strides = [1, 1]} : vector<8x384xf32> to vector<8x128xf32>
    %26 = vector.extract_strided_slice %24 {offsets = [0, 0], sizes = [8, 128], strides = [1, 1]} : vector<8x384xf32> to vector<8x128xf32>
    %27 = arith.addf %25, %26 : vector<8x128xf32>
    %28 = arith.negf %27 : vector<8x128xf32>
    %29 = math.exp %28 : vector<8x128xf32>
    %cst_16 = arith.constant 1.000000e+00 : f32
    %30 = vector.broadcast %cst_16 : f32 to vector<8x128xf32>
    %31 = arith.addf %30, %29 : vector<8x128xf32>
    %32 = arith.divf %30, %31 : vector<8x128xf32>
    %33 = vector.extract_strided_slice %16 {offsets = [0, 128], sizes = [8, 128], strides = [1, 1]} : vector<8x384xf32> to vector<8x128xf32>
    %34 = vector.extract_strided_slice %24 {offsets = [0, 128], sizes = [8, 128], strides = [1, 1]} : vector<8x384xf32> to vector<8x128xf32>
    %35 = arith.addf %33, %34 : vector<8x128xf32>
    %36 = arith.negf %35 : vector<8x128xf32>
    %37 = math.exp %36 : vector<8x128xf32>
    %cst_17 = arith.constant 1.000000e+00 : f32
    %38 = vector.broadcast %cst_17 : f32 to vector<8x128xf32>
    %39 = arith.addf %38, %37 : vector<8x128xf32>
    %40 = arith.divf %38, %39 : vector<8x128xf32>
    %41 = vector.extract_strided_slice %16 {offsets = [0, 256], sizes = [8, 128], strides = [1, 1]} : vector<8x384xf32> to vector<8x128xf32>
    %42 = vector.extract_strided_slice %24 {offsets = [0, 256], sizes = [8, 128], strides = [1, 1]} : vector<8x384xf32> to vector<8x128xf32>
    %43 = arith.mulf %32, %42 : vector<8x128xf32>
    %44 = arith.addf %41, %43 : vector<8x128xf32>
    %45 = math.tanh %44 : vector<8x128xf32>
    %cst_18 = arith.constant 1.000000e+00 : f32
    %46 = vector.broadcast %cst_18 : f32 to vector<8x128xf32>
    %47 = arith.subf %46, %40 : vector<8x128xf32>
    %48 = arith.mulf %47, %45 : vector<8x128xf32>
    %49 = arith.mulf %40, %17 : vector<8x128xf32>
    %50 = arith.addf %48, %49 : vector<8x128xf32>
    %51 = vector.broadcast %13 : i32 to vector<8x1xi32>
    %52 = arith.cmpi slt, %51, %8 : vector<8x1xi32>
    %53 = vector.shape_cast %52 : vector<8x1xi1> to vector<8x1xi1>
    %54 = vector.broadcast %53 : vector<8x1xi1> to vector<8x128xi1>
    %55 = arith.select %54, %50, %17 : vector<8x128xi1>, vector<8x128xf32>
    %c0_19 = arith.constant 0 : index
    %c0_20 = arith.constant 0 : index
    %56 = vector.load %arg8[%c0_19, %c0_20] : memref<8x128xf32, #tpu.memory_space<vmem>>, vector<8x128xf32>
    tpu.vector_store %arg8[%c0_19, %c0_20], %55 {strides = array<i32>} : memref<8x128xf32, #tpu.memory_space<vmem>>, vector<8x128xf32>,
    %cst_21 = arith.constant 0.000000e+00 : f32
    %57 = vector.shape_cast %52 : vector<8x1xi1> to vector<8x1xi1>
    %58 = vector.broadcast %57 : vector<8x1xi1> to vector<8x128xi1>
    %59 = vector.broadcast %cst_21 : f32 to vector<8x128xf32>
    %60 = arith.select %58, %50, %59 : vector<8x128xi1>, vector<8x128xf32>
    %c0_22 = arith.constant 0 : index
    %61 = arith.index_cast %12 : i32 to index
    %c0_23 = arith.constant 0 : index
    %c0_24 = arith.constant 0 : index
    %62 = vector.load %arg6[%c0_22, %61, %c0_23, %c0_24] : memref<1x8x8x128xf32, #tpu.memory_space<vmem>>, vector<1x1x8x128xf32>
    %63 = vector.shape_cast %62 : vector<1x1x8x128xf32> to vector<8x128xf32>
    %64 = vector.shape_cast %60 : vector<8x128xf32> to vector<1x1x8x128xf32>
    tpu.vector_store %arg6[%c0_22, %61, %c0_23, %c0_24], %64 {strides = array<i32>} : memref<1x8x8x128xf32, #tpu.memory_space<vmem>>, vector<1x1x8x128xf32>,
    %c1_i32 = arith.constant 1 : i32
    %c2_i32_25 = arith.constant 2 : i32
    %65 = arith.muli %c2_i32_25, %c1_i32 : i32
    %c7_i32_26 = arith.constant 7 : i32
    %66 = arith.subi %c7_i32_26, %65 : i32
    %67 = arith.muli %arg0, %66 : i32
    %68 = arith.addi %c1_i32, %67 : i32
    %69 = arith.addi %7, %68 : i32
    %c0_27 = arith.constant 0 : index
    %70 = arith.index_cast %68 : i32 to index
    %c0_28 = arith.constant 0 : index
    %c0_29 = arith.constant 0 : index
    %71 = vector.load %arg3[%c0_27, %70, %c0_28, %c0_29] : memref<1x8x8x384xf32, #tpu.memory_space<vmem>>, vector<1x1x8x384xf32>
    %72 = vector.shape_cast %71 : vector<1x1x8x384xf32> to vector<8x384xf32>
    %c0_30 = arith.constant 0 : index
    %c0_31 = arith.constant 0 : index
    %73 = vector.load %arg8[%c0_30, %c0_31] : memref<8x128xf32, #tpu.memory_space<vmem>>, vector<8x128xf32>
    %c0_32 = arith.constant 0 : index
    %c0_33 = arith.constant 0 : index
    %c0_34 = arith.constant 0 : index
    %74 = vector.load %arg4[%c0_32, %c0_33, %c0_34] : memref<1x128x384xf32, #tpu.memory_space<vmem>>, vector<1x128x384xf32>
    %75 = vector.shape_cast %74 : vector<1x128x384xf32> to vector<128x384xf32>
    %cst_35 = arith.constant dense<0.000000e+00> : vector<8x384xf32>
    %76 = tpu.matmul %73, %75, %cst_35 {dimension_numbers = #tpu.dot_dimension_numbers<[1], [0], [0], [1], [0, 0, 1, 1], [], []>} : vector<8x128xf32>, vector<128x384xf32>, vector<8x384xf32> -> vector<8x384xf32>
    %c0_36 = arith.constant 0 : index
    %c0_37 = arith.constant 0 : index
    %c0_38 = arith.constant 0 : index
    %77 = vector.load %arg5[%c0_36, %c0_37, %c0_38] : memref<1x1x384xf32, #tpu.memory_space<vmem>>, vector<1x1x384xf32>
    %78 = vector.shape_cast %77 : vector<1x1x384xf32> to vector<1x384xf32>
    %79 = vector.broadcast %78 : vector<1x384xf32> to vector<8x384xf32>
    %80 = arith.addf %76, %79 : vector<8x384xf32>
    %81 = vector.extract_strided_slice %72 {offsets = [0, 0], sizes = [8, 128], strides = [1, 1]} : vector<8x384xf32> to vector<8x128xf32>
    %82 = vector.extract_strided_slice %80 {offsets = [0, 0], sizes = [8, 128], strides = [1, 1]} : vector<8x384xf32> to vector<8x128xf32>
    %83 = arith.addf %81, %82 : vector<8x128xf32>
    %84 = arith.negf %83 : vector<8x128xf32>
    %85 = math.exp %84 : vector<8x128xf32>
    %cst_39 = arith.constant 1.000000e+00 : f32
    %86 = vector.broadcast %cst_39 : f32 to vector<8x128xf32>
    %87 = arith.addf %86, %85 : vector<8x128xf32>
    %88 = arith.divf %86, %87 : vector<8x128xf32>
    %89 = vector.extract_strided_slice %72 {offsets = [0, 128], sizes = [8, 128], strides = [1, 1]} : vector<8x384xf32> to vector<8x128xf32>
    %90 = vector.extract_strided_slice %80 {offsets = [0, 128], sizes = [8, 128], strides = [1, 1]} : vector<8x384xf32> to vector<8x128xf32>
    %91 = arith.addf %89, %90 : vector<8x128xf32>
    %92 = arith.negf %91 : vector<8x128xf32>
    %93 = math.exp %92 : vector<8x128xf32>
    %cst_40 = arith.constant 1.000000e+00 : f32
    %94 = vector.broadcast %cst_40 : f32 to vector<8x128xf32>
    %95 = arith.addf %94, %93 : vector<8x128xf32>
    %96 = arith.divf %94, %95 : vector<8x128xf32>
    %97 = vector.extract_strided_slice %72 {offsets = [0, 256], sizes = [8, 128], strides = [1, 1]} : vector<8x384xf32> to vector<8x128xf32>
    %98 = vector.extract_strided_slice %80 {offsets = [0, 256], sizes = [8, 128], strides = [1, 1]} : vector<8x384xf32> to vector<8x128xf32>
    %99 = arith.mulf %88, %98 : vector<8x128xf32>
    %100 = arith.addf %97, %99 : vector<8x128xf32>
    %101 = math.tanh %100 : vector<8x128xf32>
    %cst_41 = arith.constant 1.000000e+00 : f32
    %102 = vector.broadcast %cst_41 : f32 to vector<8x128xf32>
    %103 = arith.subf %102, %96 : vector<8x128xf32>
    %104 = arith.mulf %103, %101 : vector<8x128xf32>
    %105 = arith.mulf %96, %73 : vector<8x128xf32>
    %106 = arith.addf %104, %105 : vector<8x128xf32>
    %107 = vector.broadcast %69 : i32 to vector<8x1xi32>
    %108 = arith.cmpi slt, %107, %8 : vector<8x1xi32>
    %109 = vector.shape_cast %108 : vector<8x1xi1> to vector<8x1xi1>
    %110 = vector.broadcast %109 : vector<8x1xi1> to vector<8x128xi1>
    %111 = arith.select %110, %106, %73 : vector<8x128xi1>, vector<8x128xf32>
    %c0_42 = arith.constant 0 : index
    %c0_43 = arith.constant 0 : index
    %112 = vector.load %arg8[%c0_42, %c0_43] : memref<8x128xf32, #tpu.memory_space<vmem>>, vector<8x128xf32>
    tpu.vector_store %arg8[%c0_42, %c0_43], %111 {strides = array<i32>} : memref<8x128xf32, #tpu.memory_space<vmem>>, vector<8x128xf32>,
    %cst_44 = arith.constant 0.000000e+00 : f32
    %113 = vector.shape_cast %108 : vector<8x1xi1> to vector<8x1xi1>
    %114 = vector.broadcast %113 : vector<8x1xi1> to vector<8x128xi1>
    %115 = vector.broadcast %cst_44 : f32 to vector<8x128xf32>
    %116 = arith.select %114, %106, %115 : vector<8x128xi1>, vector<8x128xf32>
    %c0_45 = arith.constant 0 : index
    %117 = arith.index_cast %68 : i32 to index
    %c0_46 = arith.constant 0 : index
    %c0_47 = arith.constant 0 : index
    %118 = vector.load %arg6[%c0_45, %117, %c0_46, %c0_47] : memref<1x8x8x128xf32, #tpu.memory_space<vmem>>, vector<1x1x8x128xf32>
    %119 = vector.shape_cast %118 : vector<1x1x8x128xf32> to vector<8x128xf32>
    %120 = vector.shape_cast %116 : vector<8x128xf32> to vector<1x1x8x128xf32>
    tpu.vector_store %arg6[%c0_45, %117, %c0_46, %c0_47], %120 {strides = array<i32>} : memref<1x8x8x128xf32, #tpu.memory_space<vmem>>, vector<1x1x8x128xf32>,
    %c2_i32_48 = arith.constant 2 : i32
    %c2_i32_49 = arith.constant 2 : i32
    %121 = arith.muli %c2_i32_49, %c2_i32_48 : i32
    %c7_i32_50 = arith.constant 7 : i32
    %122 = arith.subi %c7_i32_50, %121 : i32
    %123 = arith.muli %arg0, %122 : i32
    %124 = arith.addi %c2_i32_48, %123 : i32
    %125 = arith.addi %7, %124 : i32
    %c0_51 = arith.constant 0 : index
    %126 = arith.index_cast %124 : i32 to index
    %c0_52 = arith.constant 0 : index
    %c0_53 = arith.constant 0 : index
    %127 = vector.load %arg3[%c0_51, %126, %c0_52, %c0_53] : memref<1x8x8x384xf32, #tpu.memory_space<vmem>>, vector<1x1x8x384xf32>
    %128 = vector.shape_cast %127 : vector<1x1x8x384xf32> to vector<8x384xf32>
    %c0_54 = arith.constant 0 : index
    %c0_55 = arith.constant 0 : index
    %129 = vector.load %arg8[%c0_54, %c0_55] : memref<8x128xf32, #tpu.memory_space<vmem>>, vector<8x128xf32>
    %c0_56 = arith.constant 0 : index
    %c0_57 = arith.constant 0 : index
    %c0_58 = arith.constant 0 : index
    %130 = vector.load %arg4[%c0_56, %c0_57, %c0_58] : memref<1x128x384xf32, #tpu.memory_space<vmem>>, vector<1x128x384xf32>
    %131 = vector.shape_cast %130 : vector<1x128x384xf32> to vector<128x384xf32>
    %cst_59 = arith.constant dense<0.000000e+00> : vector<8x384xf32>
    %132 = tpu.matmul %129, %131, %cst_59 {dimension_numbers = #tpu.dot_dimension_numbers<[1], [0], [0], [1], [0, 0, 1, 1], [], []>} : vector<8x128xf32>, vector<128x384xf32>, vector<8x384xf32> -> vector<8x384xf32>
    %c0_60 = arith.constant 0 : index
    %c0_61 = arith.constant 0 : index
    %c0_62 = arith.constant 0 : index
    %133 = vector.load %arg5[%c0_60, %c0_61, %c0_62] : memref<1x1x384xf32, #tpu.memory_space<vmem>>, vector<1x1x384xf32>
    %134 = vector.shape_cast %133 : vector<1x1x384xf32> to vector<1x384xf32>
    %135 = vector.broadcast %134 : vector<1x384xf32> to vector<8x384xf32>
    %136 = arith.addf %132, %135 : vector<8x384xf32>
    %137 = vector.extract_strided_slice %128 {offsets = [0, 0], sizes = [8, 128], strides = [1, 1]} : vector<8x384xf32> to vector<8x128xf32>
    %138 = vector.extract_strided_slice %136 {offsets = [0, 0], sizes = [8, 128], strides = [1, 1]} : vector<8x384xf32> to vector<8x128xf32>
    %139 = arith.addf %137, %138 : vector<8x128xf32>
    %140 = arith.negf %139 : vector<8x128xf32>
    %141 = math.exp %140 : vector<8x128xf32>
    %cst_63 = arith.constant 1.000000e+00 : f32
    %142 = vector.broadcast %cst_63 : f32 to vector<8x128xf32>
    %143 = arith.addf %142, %141 : vector<8x128xf32>
    %144 = arith.divf %142, %143 : vector<8x128xf32>
    %145 = vector.extract_strided_slice %128 {offsets = [0, 128], sizes = [8, 128], strides = [1, 1]} : vector<8x384xf32> to vector<8x128xf32>
    %146 = vector.extract_strided_slice %136 {offsets = [0, 128], sizes = [8, 128], strides = [1, 1]} : vector<8x384xf32> to vector<8x128xf32>
    %147 = arith.addf %145, %146 : vector<8x128xf32>
    %148 = arith.negf %147 : vector<8x128xf32>
    %149 = math.exp %148 : vector<8x128xf32>
    %cst_64 = arith.constant 1.000000e+00 : f32
    %150 = vector.broadcast %cst_64 : f32 to vector<8x128xf32>
    %151 = arith.addf %150, %149 : vector<8x128xf32>
    %152 = arith.divf %150, %151 : vector<8x128xf32>
    %153 = vector.extract_strided_slice %128 {offsets = [0, 256], sizes = [8, 128], strides = [1, 1]} : vector<8x384xf32> to vector<8x128xf32>
    %154 = vector.extract_strided_slice %136 {offsets = [0, 256], sizes = [8, 128], strides = [1, 1]} : vector<8x384xf32> to vector<8x128xf32>
    %155 = arith.mulf %144, %154 : vector<8x128xf32>
    %156 = arith.addf %153, %155 : vector<8x128xf32>
    %157 = math.tanh %156 : vector<8x128xf32>
    %cst_65 = arith.constant 1.000000e+00 : f32
    %158 = vector.broadcast %cst_65 : f32 to vector<8x128xf32>
    %159 = arith.subf %158, %152 : vector<8x128xf32>
    %160 = arith.mulf %159, %157 : vector<8x128xf32>
    %161 = arith.mulf %152, %129 : vector<8x128xf32>
    %162 = arith.addf %160, %161 : vector<8x128xf32>
    %163 = vector.broadcast %125 : i32 to vector<8x1xi32>
    %164 = arith.cmpi slt, %163, %8 : vector<8x1xi32>
    %165 = vector.shape_cast %164 : vector<8x1xi1> to vector<8x1xi1>
    %166 = vector.broadcast %165 : vector<8x1xi1> to vector<8x128xi1>
    %167 = arith.select %166, %162, %129 : vector<8x128xi1>, vector<8x128xf32>
    %c0_66 = arith.constant 0 : index
    %c0_67 = arith.constant 0 : index
    %168 = vector.load %arg8[%c0_66, %c0_67] : memref<8x128xf32, #tpu.memory_space<vmem>>, vector<8x128xf32>
    tpu.vector_store %arg8[%c0_66, %c0_67], %167 {strides = array<i32>} : memref<8x128xf32, #tpu.memory_space<vmem>>, vector<8x128xf32>,
    %cst_68 = arith.constant 0.000000e+00 : f32
    %169 = vector.shape_cast %164 : vector<8x1xi1> to vector<8x1xi1>
    %170 = vector.broadcast %169 : vector<8x1xi1> to vector<8x128xi1>
    %171 = vector.broadcast %cst_68 : f32 to vector<8x128xf32>
    %172 = arith.select %170, %162, %171 : vector<8x128xi1>, vector<8x128xf32>
    %c0_69 = arith.constant 0 : index
    %173 = arith.index_cast %124 : i32 to index
    %c0_70 = arith.constant 0 : index
    %c0_71 = arith.constant 0 : index
    %174 = vector.load %arg6[%c0_69, %173, %c0_70, %c0_71] : memref<1x8x8x128xf32, #tpu.memory_space<vmem>>, vector<1x1x8x128xf32>
    %175 = vector.shape_cast %174 : vector<1x1x8x128xf32> to vector<8x128xf32>
    %176 = vector.shape_cast %172 : vector<8x128xf32> to vector<1x1x8x128xf32>
    tpu.vector_store %arg6[%c0_69, %173, %c0_70, %c0_71], %176 {strides = array<i32>} : memref<1x8x8x128xf32, #tpu.memory_space<vmem>>, vector<1x1x8x128xf32>,
    %c3_i32 = arith.constant 3 : i32
    %c2_i32_72 = arith.constant 2 : i32
    %177 = arith.muli %c2_i32_72, %c3_i32 : i32
    %c7_i32_73 = arith.constant 7 : i32
    %178 = arith.subi %c7_i32_73, %177 : i32
    %179 = arith.muli %arg0, %178 : i32
    %180 = arith.addi %c3_i32, %179 : i32
    %181 = arith.addi %7, %180 : i32
    %c0_74 = arith.constant 0 : index
    %182 = arith.index_cast %180 : i32 to index
    %c0_75 = arith.constant 0 : index
    %c0_76 = arith.constant 0 : index
    %183 = vector.load %arg3[%c0_74, %182, %c0_75, %c0_76] : memref<1x8x8x384xf32, #tpu.memory_space<vmem>>, vector<1x1x8x384xf32>
    %184 = vector.shape_cast %183 : vector<1x1x8x384xf32> to vector<8x384xf32>
    %c0_77 = arith.constant 0 : index
    %c0_78 = arith.constant 0 : index
    %185 = vector.load %arg8[%c0_77, %c0_78] : memref<8x128xf32, #tpu.memory_space<vmem>>, vector<8x128xf32>
    %c0_79 = arith.constant 0 : index
    %c0_80 = arith.constant 0 : index
    %c0_81 = arith.constant 0 : index
    %186 = vector.load %arg4[%c0_79, %c0_80, %c0_81] : memref<1x128x384xf32, #tpu.memory_space<vmem>>, vector<1x128x384xf32>
    %187 = vector.shape_cast %186 : vector<1x128x384xf32> to vector<128x384xf32>
    %cst_82 = arith.constant dense<0.000000e+00> : vector<8x384xf32>
    %188 = tpu.matmul %185, %187, %cst_82 {dimension_numbers = #tpu.dot_dimension_numbers<[1], [0], [0], [1], [0, 0, 1, 1], [], []>} : vector<8x128xf32>, vector<128x384xf32>, vector<8x384xf32> -> vector<8x384xf32>
    %c0_83 = arith.constant 0 : index
    %c0_84 = arith.constant 0 : index
    %c0_85 = arith.constant 0 : index
    %189 = vector.load %arg5[%c0_83, %c0_84, %c0_85] : memref<1x1x384xf32, #tpu.memory_space<vmem>>, vector<1x1x384xf32>
    %190 = vector.shape_cast %189 : vector<1x1x384xf32> to vector<1x384xf32>
    %191 = vector.broadcast %190 : vector<1x384xf32> to vector<8x384xf32>
    %192 = arith.addf %188, %191 : vector<8x384xf32>
    %193 = vector.extract_strided_slice %184 {offsets = [0, 0], sizes = [8, 128], strides = [1, 1]} : vector<8x384xf32> to vector<8x128xf32>
    %194 = vector.extract_strided_slice %192 {offsets = [0, 0], sizes = [8, 128], strides = [1, 1]} : vector<8x384xf32> to vector<8x128xf32>
    %195 = arith.addf %193, %194 : vector<8x128xf32>
    %196 = arith.negf %195 : vector<8x128xf32>
    %197 = math.exp %196 : vector<8x128xf32>
    %cst_86 = arith.constant 1.000000e+00 : f32
    %198 = vector.broadcast %cst_86 : f32 to vector<8x128xf32>
    %199 = arith.addf %198, %197 : vector<8x128xf32>
    %200 = arith.divf %198, %199 : vector<8x128xf32>
    %201 = vector.extract_strided_slice %184 {offsets = [0, 128], sizes = [8, 128], strides = [1, 1]} : vector<8x384xf32> to vector<8x128xf32>
    %202 = vector.extract_strided_slice %192 {offsets = [0, 128], sizes = [8, 128], strides = [1, 1]} : vector<8x384xf32> to vector<8x128xf32>
    %203 = arith.addf %201, %202 : vector<8x128xf32>
    %204 = arith.negf %203 : vector<8x128xf32>
    %205 = math.exp %204 : vector<8x128xf32>
    %cst_87 = arith.constant 1.000000e+00 : f32
    %206 = vector.broadcast %cst_87 : f32 to vector<8x128xf32>
    %207 = arith.addf %206, %205 : vector<8x128xf32>
    %208 = arith.divf %206, %207 : vector<8x128xf32>
    %209 = vector.extract_strided_slice %184 {offsets = [0, 256], sizes = [8, 128], strides = [1, 1]} : vector<8x384xf32> to vector<8x128xf32>
    %210 = vector.extract_strided_slice %192 {offsets = [0, 256], sizes = [8, 128], strides = [1, 1]} : vector<8x384xf32> to vector<8x128xf32>
    %211 = arith.mulf %200, %210 : vector<8x128xf32>
    %212 = arith.addf %209, %211 : vector<8x128xf32>
    %213 = math.tanh %212 : vector<8x128xf32>
    %cst_88 = arith.constant 1.000000e+00 : f32
    %214 = vector.broadcast %cst_88 : f32 to vector<8x128xf32>
    %215 = arith.subf %214, %208 : vector<8x128xf32>
    %216 = arith.mulf %215, %213 : vector<8x128xf32>
    %217 = arith.mulf %208, %185 : vector<8x128xf32>
    %218 = arith.addf %216, %217 : vector<8x128xf32>
    %219 = vector.broadcast %181 : i32 to vector<8x1xi32>
    %220 = arith.cmpi slt, %219, %8 : vector<8x1xi32>
    %221 = vector.shape_cast %220 : vector<8x1xi1> to vector<8x1xi1>
    %222 = vector.broadcast %221 : vector<8x1xi1> to vector<8x128xi1>
    %223 = arith.select %222, %218, %185 : vector<8x128xi1>, vector<8x128xf32>
    %c0_89 = arith.constant 0 : index
    %c0_90 = arith.constant 0 : index
    %224 = vector.load %arg8[%c0_89, %c0_90] : memref<8x128xf32, #tpu.memory_space<vmem>>, vector<8x128xf32>
    tpu.vector_store %arg8[%c0_89, %c0_90], %223 {strides = array<i32>} : memref<8x128xf32, #tpu.memory_space<vmem>>, vector<8x128xf32>,
    %cst_91 = arith.constant 0.000000e+00 : f32
    %225 = vector.shape_cast %220 : vector<8x1xi1> to vector<8x1xi1>
    %226 = vector.broadcast %225 : vector<8x1xi1> to vector<8x128xi1>
    %227 = vector.broadcast %cst_91 : f32 to vector<8x128xf32>
    %228 = arith.select %226, %218, %227 : vector<8x128xi1>, vector<8x128xf32>
    %c0_92 = arith.constant 0 : index
    %229 = arith.index_cast %180 : i32 to index
    %c0_93 = arith.constant 0 : index
    %c0_94 = arith.constant 0 : index
    %230 = vector.load %arg6[%c0_92, %229, %c0_93, %c0_94] : memref<1x8x8x128xf32, #tpu.memory_space<vmem>>, vector<1x1x8x128xf32>
    %231 = vector.shape_cast %230 : vector<1x1x8x128xf32> to vector<8x128xf32>
    %232 = vector.shape_cast %228 : vector<8x128xf32> to vector<1x1x8x128xf32>
    tpu.vector_store %arg6[%c0_92, %229, %c0_93, %c0_94], %232 {strides = array<i32>} : memref<1x8x8x128xf32, #tpu.memory_space<vmem>>, vector<1x1x8x128xf32>,
    %c4_i32 = arith.constant 4 : i32
    %c2_i32_95 = arith.constant 2 : i32
    %233 = arith.muli %c2_i32_95, %c4_i32 : i32
    %c7_i32_96 = arith.constant 7 : i32
    %234 = arith.subi %c7_i32_96, %233 : i32
    %235 = arith.muli %arg0, %234 : i32
    %236 = arith.addi %c4_i32, %235 : i32
    %237 = arith.addi %7, %236 : i32
    %c0_97 = arith.constant 0 : index
    %238 = arith.index_cast %236 : i32 to index
    %c0_98 = arith.constant 0 : index
    %c0_99 = arith.constant 0 : index
    %239 = vector.load %arg3[%c0_97, %238, %c0_98, %c0_99] : memref<1x8x8x384xf32, #tpu.memory_space<vmem>>, vector<1x1x8x384xf32>
    %240 = vector.shape_cast %239 : vector<1x1x8x384xf32> to vector<8x384xf32>
    %c0_100 = arith.constant 0 : index
    %c0_101 = arith.constant 0 : index
    %241 = vector.load %arg8[%c0_100, %c0_101] : memref<8x128xf32, #tpu.memory_space<vmem>>, vector<8x128xf32>
    %c0_102 = arith.constant 0 : index
    %c0_103 = arith.constant 0 : index
    %c0_104 = arith.constant 0 : index
    %242 = vector.load %arg4[%c0_102, %c0_103, %c0_104] : memref<1x128x384xf32, #tpu.memory_space<vmem>>, vector<1x128x384xf32>
    %243 = vector.shape_cast %242 : vector<1x128x384xf32> to vector<128x384xf32>
    %cst_105 = arith.constant dense<0.000000e+00> : vector<8x384xf32>
    %244 = tpu.matmul %241, %243, %cst_105 {dimension_numbers = #tpu.dot_dimension_numbers<[1], [0], [0], [1], [0, 0, 1, 1], [], []>} : vector<8x128xf32>, vector<128x384xf32>, vector<8x384xf32> -> vector<8x384xf32>
    %c0_106 = arith.constant 0 : index
    %c0_107 = arith.constant 0 : index
    %c0_108 = arith.constant 0 : index
    %245 = vector.load %arg5[%c0_106, %c0_107, %c0_108] : memref<1x1x384xf32, #tpu.memory_space<vmem>>, vector<1x1x384xf32>
    %246 = vector.shape_cast %245 : vector<1x1x384xf32> to vector<1x384xf32>
    %247 = vector.broadcast %246 : vector<1x384xf32> to vector<8x384xf32>
    %248 = arith.addf %244, %247 : vector<8x384xf32>
    %249 = vector.extract_strided_slice %240 {offsets = [0, 0], sizes = [8, 128], strides = [1, 1]} : vector<8x384xf32> to vector<8x128xf32>
    %250 = vector.extract_strided_slice %248 {offsets = [0, 0], sizes = [8, 128], strides = [1, 1]} : vector<8x384xf32> to vector<8x128xf32>
    %251 = arith.addf %249, %250 : vector<8x128xf32>
    %252 = arith.negf %251 : vector<8x128xf32>
    %253 = math.exp %252 : vector<8x128xf32>
    %cst_109 = arith.constant 1.000000e+00 : f32
    %254 = vector.broadcast %cst_109 : f32 to vector<8x128xf32>
    %255 = arith.addf %254, %253 : vector<8x128xf32>
    %256 = arith.divf %254, %255 : vector<8x128xf32>
    %257 = vector.extract_strided_slice %240 {offsets = [0, 128], sizes = [8, 128], strides = [1, 1]} : vector<8x384xf32> to vector<8x128xf32>
    %258 = vector.extract_strided_slice %248 {offsets = [0, 128], sizes = [8, 128], strides = [1, 1]} : vector<8x384xf32> to vector<8x128xf32>
    %259 = arith.addf %257, %258 : vector<8x128xf32>
    %260 = arith.negf %259 : vector<8x128xf32>
    %261 = math.exp %260 : vector<8x128xf32>
    %cst_110 = arith.constant 1.000000e+00 : f32
    %262 = vector.broadcast %cst_110 : f32 to vector<8x128xf32>
    %263 = arith.addf %262, %261 : vector<8x128xf32>
    %264 = arith.divf %262, %263 : vector<8x128xf32>
    %265 = vector.extract_strided_slice %240 {offsets = [0, 256], sizes = [8, 128], strides = [1, 1]} : vector<8x384xf32> to vector<8x128xf32>
    %266 = vector.extract_strided_slice %248 {offsets = [0, 256], sizes = [8, 128], strides = [1, 1]} : vector<8x384xf32> to vector<8x128xf32>
    %267 = arith.mulf %256, %266 : vector<8x128xf32>
    %268 = arith.addf %265, %267 : vector<8x128xf32>
    %269 = math.tanh %268 : vector<8x128xf32>
    %cst_111 = arith.constant 1.000000e+00 : f32
    %270 = vector.broadcast %cst_111 : f32 to vector<8x128xf32>
    %271 = arith.subf %270, %264 : vector<8x128xf32>
    %272 = arith.mulf %271, %269 : vector<8x128xf32>
    %273 = arith.mulf %264, %241 : vector<8x128xf32>
    %274 = arith.addf %272, %273 : vector<8x128xf32>
    %275 = vector.broadcast %237 : i32 to vector<8x1xi32>
    %276 = arith.cmpi slt, %275, %8 : vector<8x1xi32>
    %277 = vector.shape_cast %276 : vector<8x1xi1> to vector<8x1xi1>
    %278 = vector.broadcast %277 : vector<8x1xi1> to vector<8x128xi1>
    %279 = arith.select %278, %274, %241 : vector<8x128xi1>, vector<8x128xf32>
    %c0_112 = arith.constant 0 : index
    %c0_113 = arith.constant 0 : index
    %280 = vector.load %arg8[%c0_112, %c0_113] : memref<8x128xf32, #tpu.memory_space<vmem>>, vector<8x128xf32>
    tpu.vector_store %arg8[%c0_112, %c0_113], %279 {strides = array<i32>} : memref<8x128xf32, #tpu.memory_space<vmem>>, vector<8x128xf32>,
    %cst_114 = arith.constant 0.000000e+00 : f32
    %281 = vector.shape_cast %276 : vector<8x1xi1> to vector<8x1xi1>
    %282 = vector.broadcast %281 : vector<8x1xi1> to vector<8x128xi1>
    %283 = vector.broadcast %cst_114 : f32 to vector<8x128xf32>
    %284 = arith.select %282, %274, %283 : vector<8x128xi1>, vector<8x128xf32>
    %c0_115 = arith.constant 0 : index
    %285 = arith.index_cast %236 : i32 to index
    %c0_116 = arith.constant 0 : index
    %c0_117 = arith.constant 0 : index
    %286 = vector.load %arg6[%c0_115, %285, %c0_116, %c0_117] : memref<1x8x8x128xf32, #tpu.memory_space<vmem>>, vector<1x1x8x128xf32>
    %287 = vector.shape_cast %286 : vector<1x1x8x128xf32> to vector<8x128xf32>
    %288 = vector.shape_cast %284 : vector<8x128xf32> to vector<1x1x8x128xf32>
    tpu.vector_store %arg6[%c0_115, %285, %c0_116, %c0_117], %288 {strides = array<i32>} : memref<1x8x8x128xf32, #tpu.memory_space<vmem>>, vector<1x1x8x128xf32>,
    %c5_i32 = arith.constant 5 : i32
    %c2_i32_118 = arith.constant 2 : i32
    %289 = arith.muli %c2_i32_118, %c5_i32 : i32
    %c7_i32_119 = arith.constant 7 : i32
    %290 = arith.subi %c7_i32_119, %289 : i32
    %291 = arith.muli %arg0, %290 : i32
    %292 = arith.addi %c5_i32, %291 : i32
    %293 = arith.addi %7, %292 : i32
    %c0_120 = arith.constant 0 : index
    %294 = arith.index_cast %292 : i32 to index
    %c0_121 = arith.constant 0 : index
    %c0_122 = arith.constant 0 : index
    %295 = vector.load %arg3[%c0_120, %294, %c0_121, %c0_122] : memref<1x8x8x384xf32, #tpu.memory_space<vmem>>, vector<1x1x8x384xf32>
    %296 = vector.shape_cast %295 : vector<1x1x8x384xf32> to vector<8x384xf32>
    %c0_123 = arith.constant 0 : index
    %c0_124 = arith.constant 0 : index
    %297 = vector.load %arg8[%c0_123, %c0_124] : memref<8x128xf32, #tpu.memory_space<vmem>>, vector<8x128xf32>
    %c0_125 = arith.constant 0 : index
    %c0_126 = arith.constant 0 : index
    %c0_127 = arith.constant 0 : index
    %298 = vector.load %arg4[%c0_125, %c0_126, %c0_127] : memref<1x128x384xf32, #tpu.memory_space<vmem>>, vector<1x128x384xf32>
    %299 = vector.shape_cast %298 : vector<1x128x384xf32> to vector<128x384xf32>
    %cst_128 = arith.constant dense<0.000000e+00> : vector<8x384xf32>
    %300 = tpu.matmul %297, %299, %cst_128 {dimension_numbers = #tpu.dot_dimension_numbers<[1], [0], [0], [1], [0, 0, 1, 1], [], []>} : vector<8x128xf32>, vector<128x384xf32>, vector<8x384xf32> -> vector<8x384xf32>
    %c0_129 = arith.constant 0 : index
    %c0_130 = arith.constant 0 : index
    %c0_131 = arith.constant 0 : index
    %301 = vector.load %arg5[%c0_129, %c0_130, %c0_131] : memref<1x1x384xf32, #tpu.memory_space<vmem>>, vector<1x1x384xf32>
    %302 = vector.shape_cast %301 : vector<1x1x384xf32> to vector<1x384xf32>
    %303 = vector.broadcast %302 : vector<1x384xf32> to vector<8x384xf32>
    %304 = arith.addf %300, %303 : vector<8x384xf32>
    %305 = vector.extract_strided_slice %296 {offsets = [0, 0], sizes = [8, 128], strides = [1, 1]} : vector<8x384xf32> to vector<8x128xf32>
    %306 = vector.extract_strided_slice %304 {offsets = [0, 0], sizes = [8, 128], strides = [1, 1]} : vector<8x384xf32> to vector<8x128xf32>
    %307 = arith.addf %305, %306 : vector<8x128xf32>
    %308 = arith.negf %307 : vector<8x128xf32>
    %309 = math.exp %308 : vector<8x128xf32>
    %cst_132 = arith.constant 1.000000e+00 : f32
    %310 = vector.broadcast %cst_132 : f32 to vector<8x128xf32>
    %311 = arith.addf %310, %309 : vector<8x128xf32>
    %312 = arith.divf %310, %311 : vector<8x128xf32>
    %313 = vector.extract_strided_slice %296 {offsets = [0, 128], sizes = [8, 128], strides = [1, 1]} : vector<8x384xf32> to vector<8x128xf32>
    %314 = vector.extract_strided_slice %304 {offsets = [0, 128], sizes = [8, 128], strides = [1, 1]} : vector<8x384xf32> to vector<8x128xf32>
    %315 = arith.addf %313, %314 : vector<8x128xf32>
    %316 = arith.negf %315 : vector<8x128xf32>
    %317 = math.exp %316 : vector<8x128xf32>
    %cst_133 = arith.constant 1.000000e+00 : f32
    %318 = vector.broadcast %cst_133 : f32 to vector<8x128xf32>
    %319 = arith.addf %318, %317 : vector<8x128xf32>
    %320 = arith.divf %318, %319 : vector<8x128xf32>
    %321 = vector.extract_strided_slice %296 {offsets = [0, 256], sizes = [8, 128], strides = [1, 1]} : vector<8x384xf32> to vector<8x128xf32>
    %322 = vector.extract_strided_slice %304 {offsets = [0, 256], sizes = [8, 128], strides = [1, 1]} : vector<8x384xf32> to vector<8x128xf32>
    %323 = arith.mulf %312, %322 : vector<8x128xf32>
    %324 = arith.addf %321, %323 : vector<8x128xf32>
    %325 = math.tanh %324 : vector<8x128xf32>
    %cst_134 = arith.constant 1.000000e+00 : f32
    %326 = vector.broadcast %cst_134 : f32 to vector<8x128xf32>
    %327 = arith.subf %326, %320 : vector<8x128xf32>
    %328 = arith.mulf %327, %325 : vector<8x128xf32>
    %329 = arith.mulf %320, %297 : vector<8x128xf32>
    %330 = arith.addf %328, %329 : vector<8x128xf32>
    %331 = vector.broadcast %293 : i32 to vector<8x1xi32>
    %332 = arith.cmpi slt, %331, %8 : vector<8x1xi32>
    %333 = vector.shape_cast %332 : vector<8x1xi1> to vector<8x1xi1>
    %334 = vector.broadcast %333 : vector<8x1xi1> to vector<8x128xi1>
    %335 = arith.select %334, %330, %297 : vector<8x128xi1>, vector<8x128xf32>
    %c0_135 = arith.constant 0 : index
    %c0_136 = arith.constant 0 : index
    %336 = vector.load %arg8[%c0_135, %c0_136] : memref<8x128xf32, #tpu.memory_space<vmem>>, vector<8x128xf32>
    tpu.vector_store %arg8[%c0_135, %c0_136], %335 {strides = array<i32>} : memref<8x128xf32, #tpu.memory_space<vmem>>, vector<8x128xf32>,
    %cst_137 = arith.constant 0.000000e+00 : f32
    %337 = vector.shape_cast %332 : vector<8x1xi1> to vector<8x1xi1>
    %338 = vector.broadcast %337 : vector<8x1xi1> to vector<8x128xi1>
    %339 = vector.broadcast %cst_137 : f32 to vector<8x128xf32>
    %340 = arith.select %338, %330, %339 : vector<8x128xi1>, vector<8x128xf32>
    %c0_138 = arith.constant 0 : index
    %341 = arith.index_cast %292 : i32 to index
    %c0_139 = arith.constant 0 : index
    %c0_140 = arith.constant 0 : index
    %342 = vector.load %arg6[%c0_138, %341, %c0_139, %c0_140] : memref<1x8x8x128xf32, #tpu.memory_space<vmem>>, vector<1x1x8x128xf32>
    %343 = vector.shape_cast %342 : vector<1x1x8x128xf32> to vector<8x128xf32>
    %344 = vector.shape_cast %340 : vector<8x128xf32> to vector<1x1x8x128xf32>
    tpu.vector_store %arg6[%c0_138, %341, %c0_139, %c0_140], %344 {strides = array<i32>} : memref<1x8x8x128xf32, #tpu.memory_space<vmem>>, vector<1x1x8x128xf32>,
    %c6_i32 = arith.constant 6 : i32
    %c2_i32_141 = arith.constant 2 : i32
    %345 = arith.muli %c2_i32_141, %c6_i32 : i32
    %c7_i32_142 = arith.constant 7 : i32
    %346 = arith.subi %c7_i32_142, %345 : i32
    %347 = arith.muli %arg0, %346 : i32
    %348 = arith.addi %c6_i32, %347 : i32
    %349 = arith.addi %7, %348 : i32
    %c0_143 = arith.constant 0 : index
    %350 = arith.index_cast %348 : i32 to index
    %c0_144 = arith.constant 0 : index
    %c0_145 = arith.constant 0 : index
    %351 = vector.load %arg3[%c0_143, %350, %c0_144, %c0_145] : memref<1x8x8x384xf32, #tpu.memory_space<vmem>>, vector<1x1x8x384xf32>
    %352 = vector.shape_cast %351 : vector<1x1x8x384xf32> to vector<8x384xf32>
    %c0_146 = arith.constant 0 : index
    %c0_147 = arith.constant 0 : index
    %353 = vector.load %arg8[%c0_146, %c0_147] : memref<8x128xf32, #tpu.memory_space<vmem>>, vector<8x128xf32>
    %c0_148 = arith.constant 0 : index
    %c0_149 = arith.constant 0 : index
    %c0_150 = arith.constant 0 : index
    %354 = vector.load %arg4[%c0_148, %c0_149, %c0_150] : memref<1x128x384xf32, #tpu.memory_space<vmem>>, vector<1x128x384xf32>
    %355 = vector.shape_cast %354 : vector<1x128x384xf32> to vector<128x384xf32>
    %cst_151 = arith.constant dense<0.000000e+00> : vector<8x384xf32>
    %356 = tpu.matmul %353, %355, %cst_151 {dimension_numbers = #tpu.dot_dimension_numbers<[1], [0], [0], [1], [0, 0, 1, 1], [], []>} : vector<8x128xf32>, vector<128x384xf32>, vector<8x384xf32> -> vector<8x384xf32>
    %c0_152 = arith.constant 0 : index
    %c0_153 = arith.constant 0 : index
    %c0_154 = arith.constant 0 : index
    %357 = vector.load %arg5[%c0_152, %c0_153, %c0_154] : memref<1x1x384xf32, #tpu.memory_space<vmem>>, vector<1x1x384xf32>
    %358 = vector.shape_cast %357 : vector<1x1x384xf32> to vector<1x384xf32>
    %359 = vector.broadcast %358 : vector<1x384xf32> to vector<8x384xf32>
    %360 = arith.addf %356, %359 : vector<8x384xf32>
    %361 = vector.extract_strided_slice %352 {offsets = [0, 0], sizes = [8, 128], strides = [1, 1]} : vector<8x384xf32> to vector<8x128xf32>
    %362 = vector.extract_strided_slice %360 {offsets = [0, 0], sizes = [8, 128], strides = [1, 1]} : vector<8x384xf32> to vector<8x128xf32>
    %363 = arith.addf %361, %362 : vector<8x128xf32>
    %364 = arith.negf %363 : vector<8x128xf32>
    %365 = math.exp %364 : vector<8x128xf32>
    %cst_155 = arith.constant 1.000000e+00 : f32
    %366 = vector.broadcast %cst_155 : f32 to vector<8x128xf32>
    %367 = arith.addf %366, %365 : vector<8x128xf32>
    %368 = arith.divf %366, %367 : vector<8x128xf32>
    %369 = vector.extract_strided_slice %352 {offsets = [0, 128], sizes = [8, 128], strides = [1, 1]} : vector<8x384xf32> to vector<8x128xf32>
    %370 = vector.extract_strided_slice %360 {offsets = [0, 128], sizes = [8, 128], strides = [1, 1]} : vector<8x384xf32> to vector<8x128xf32>
    %371 = arith.addf %369, %370 : vector<8x128xf32>
    %372 = arith.negf %371 : vector<8x128xf32>
    %373 = math.exp %372 : vector<8x128xf32>
    %cst_156 = arith.constant 1.000000e+00 : f32
    %374 = vector.broadcast %cst_156 : f32 to vector<8x128xf32>
    %375 = arith.addf %374, %373 : vector<8x128xf32>
    %376 = arith.divf %374, %375 : vector<8x128xf32>
    %377 = vector.extract_strided_slice %352 {offsets = [0, 256], sizes = [8, 128], strides = [1, 1]} : vector<8x384xf32> to vector<8x128xf32>
    %378 = vector.extract_strided_slice %360 {offsets = [0, 256], sizes = [8, 128], strides = [1, 1]} : vector<8x384xf32> to vector<8x128xf32>
    %379 = arith.mulf %368, %378 : vector<8x128xf32>
    %380 = arith.addf %377, %379 : vector<8x128xf32>
    %381 = math.tanh %380 : vector<8x128xf32>
    %cst_157 = arith.constant 1.000000e+00 : f32
    %382 = vector.broadcast %cst_157 : f32 to vector<8x128xf32>
    %383 = arith.subf %382, %376 : vector<8x128xf32>
    %384 = arith.mulf %383, %381 : vector<8x128xf32>
    %385 = arith.mulf %376, %353 : vector<8x128xf32>
    %386 = arith.addf %384, %385 : vector<8x128xf32>
    %387 = vector.broadcast %349 : i32 to vector<8x1xi32>
    %388 = arith.cmpi slt, %387, %8 : vector<8x1xi32>
    %389 = vector.shape_cast %388 : vector<8x1xi1> to vector<8x1xi1>
    %390 = vector.broadcast %389 : vector<8x1xi1> to vector<8x128xi1>
    %391 = arith.select %390, %386, %353 : vector<8x128xi1>, vector<8x128xf32>
    %c0_158 = arith.constant 0 : index
    %c0_159 = arith.constant 0 : index
    %392 = vector.load %arg8[%c0_158, %c0_159] : memref<8x128xf32, #tpu.memory_space<vmem>>, vector<8x128xf32>
    tpu.vector_store %arg8[%c0_158, %c0_159], %391 {strides = array<i32>} : memref<8x128xf32, #tpu.memory_space<vmem>>, vector<8x128xf32>,
    %cst_160 = arith.constant 0.000000e+00 : f32
    %393 = vector.shape_cast %388 : vector<8x1xi1> to vector<8x1xi1>
    %394 = vector.broadcast %393 : vector<8x1xi1> to vector<8x128xi1>
    %395 = vector.broadcast %cst_160 : f32 to vector<8x128xf32>
    %396 = arith.select %394, %386, %395 : vector<8x128xi1>, vector<8x128xf32>
    %c0_161 = arith.constant 0 : index
    %397 = arith.index_cast %348 : i32 to index
    %c0_162 = arith.constant 0 : index
    %c0_163 = arith.constant 0 : index
    %398 = vector.load %arg6[%c0_161, %397, %c0_162, %c0_163] : memref<1x8x8x128xf32, #tpu.memory_space<vmem>>, vector<1x1x8x128xf32>
    %399 = vector.shape_cast %398 : vector<1x1x8x128xf32> to vector<8x128xf32>
    %400 = vector.shape_cast %396 : vector<8x128xf32> to vector<1x1x8x128xf32>
    tpu.vector_store %arg6[%c0_161, %397, %c0_162, %c0_163], %400 {strides = array<i32>} : memref<1x8x8x128xf32, #tpu.memory_space<vmem>>, vector<1x1x8x128xf32>,
    %c7_i32_164 = arith.constant 7 : i32
    %c2_i32_165 = arith.constant 2 : i32
    %401 = arith.muli %c2_i32_165, %c7_i32_164 : i32
    %c7_i32_166 = arith.constant 7 : i32
    %402 = arith.subi %c7_i32_166, %401 : i32
    %403 = arith.muli %arg0, %402 : i32
    %404 = arith.addi %c7_i32_164, %403 : i32
    %405 = arith.addi %7, %404 : i32
    %c0_167 = arith.constant 0 : index
    %406 = arith.index_cast %404 : i32 to index
    %c0_168 = arith.constant 0 : index
    %c0_169 = arith.constant 0 : index
    %407 = vector.load %arg3[%c0_167, %406, %c0_168, %c0_169] : memref<1x8x8x384xf32, #tpu.memory_space<vmem>>, vector<1x1x8x384xf32>
    %408 = vector.shape_cast %407 : vector<1x1x8x384xf32> to vector<8x384xf32>
    %c0_170 = arith.constant 0 : index
    %c0_171 = arith.constant 0 : index
    %409 = vector.load %arg8[%c0_170, %c0_171] : memref<8x128xf32, #tpu.memory_space<vmem>>, vector<8x128xf32>
    %c0_172 = arith.constant 0 : index
    %c0_173 = arith.constant 0 : index
    %c0_174 = arith.constant 0 : index
    %410 = vector.load %arg4[%c0_172, %c0_173, %c0_174] : memref<1x128x384xf32, #tpu.memory_space<vmem>>, vector<1x128x384xf32>
    %411 = vector.shape_cast %410 : vector<1x128x384xf32> to vector<128x384xf32>
    %cst_175 = arith.constant dense<0.000000e+00> : vector<8x384xf32>
    %412 = tpu.matmul %409, %411, %cst_175 {dimension_numbers = #tpu.dot_dimension_numbers<[1], [0], [0], [1], [0, 0, 1, 1], [], []>} : vector<8x128xf32>, vector<128x384xf32>, vector<8x384xf32> -> vector<8x384xf32>
    %c0_176 = arith.constant 0 : index
    %c0_177 = arith.constant 0 : index
    %c0_178 = arith.constant 0 : index
    %413 = vector.load %arg5[%c0_176, %c0_177, %c0_178] : memref<1x1x384xf32, #tpu.memory_space<vmem>>, vector<1x1x384xf32>
    %414 = vector.shape_cast %413 : vector<1x1x384xf32> to vector<1x384xf32>
    %415 = vector.broadcast %414 : vector<1x384xf32> to vector<8x384xf32>
    %416 = arith.addf %412, %415 : vector<8x384xf32>
    %417 = vector.extract_strided_slice %408 {offsets = [0, 0], sizes = [8, 128], strides = [1, 1]} : vector<8x384xf32> to vector<8x128xf32>
    %418 = vector.extract_strided_slice %416 {offsets = [0, 0], sizes = [8, 128], strides = [1, 1]} : vector<8x384xf32> to vector<8x128xf32>
    %419 = arith.addf %417, %418 : vector<8x128xf32>
    %420 = arith.negf %419 : vector<8x128xf32>
    %421 = math.exp %420 : vector<8x128xf32>
    %cst_179 = arith.constant 1.000000e+00 : f32
    %422 = vector.broadcast %cst_179 : f32 to vector<8x128xf32>
    %423 = arith.addf %422, %421 : vector<8x128xf32>
    %424 = arith.divf %422, %423 : vector<8x128xf32>
    %425 = vector.extract_strided_slice %408 {offsets = [0, 128], sizes = [8, 128], strides = [1, 1]} : vector<8x384xf32> to vector<8x128xf32>
    %426 = vector.extract_strided_slice %416 {offsets = [0, 128], sizes = [8, 128], strides = [1, 1]} : vector<8x384xf32> to vector<8x128xf32>
    %427 = arith.addf %425, %426 : vector<8x128xf32>
    %428 = arith.negf %427 : vector<8x128xf32>
    %429 = math.exp %428 : vector<8x128xf32>
    %cst_180 = arith.constant 1.000000e+00 : f32
    %430 = vector.broadcast %cst_180 : f32 to vector<8x128xf32>
    %431 = arith.addf %430, %429 : vector<8x128xf32>
    %432 = arith.divf %430, %431 : vector<8x128xf32>
    %433 = vector.extract_strided_slice %408 {offsets = [0, 256], sizes = [8, 128], strides = [1, 1]} : vector<8x384xf32> to vector<8x128xf32>
    %434 = vector.extract_strided_slice %416 {offsets = [0, 256], sizes = [8, 128], strides = [1, 1]} : vector<8x384xf32> to vector<8x128xf32>
    %435 = arith.mulf %424, %434 : vector<8x128xf32>
    %436 = arith.addf %433, %435 : vector<8x128xf32>
    %437 = math.tanh %436 : vector<8x128xf32>
    %cst_181 = arith.constant 1.000000e+00 : f32
    %438 = vector.broadcast %cst_181 : f32 to vector<8x128xf32>
    %439 = arith.subf %438, %432 : vector<8x128xf32>
    %440 = arith.mulf %439, %437 : vector<8x128xf32>
    %441 = arith.mulf %432, %409 : vector<8x128xf32>
    %442 = arith.addf %440, %441 : vector<8x128xf32>
    %443 = vector.broadcast %405 : i32 to vector<8x1xi32>
    %444 = arith.cmpi slt, %443, %8 : vector<8x1xi32>
    %445 = vector.shape_cast %444 : vector<8x1xi1> to vector<8x1xi1>
    %446 = vector.broadcast %445 : vector<8x1xi1> to vector<8x128xi1>
    %447 = arith.select %446, %442, %409 : vector<8x128xi1>, vector<8x128xf32>
    %c0_182 = arith.constant 0 : index
    %c0_183 = arith.constant 0 : index
    %448 = vector.load %arg8[%c0_182, %c0_183] : memref<8x128xf32, #tpu.memory_space<vmem>>, vector<8x128xf32>
    tpu.vector_store %arg8[%c0_182, %c0_183], %447 {strides = array<i32>} : memref<8x128xf32, #tpu.memory_space<vmem>>, vector<8x128xf32>,
    %cst_184 = arith.constant 0.000000e+00 : f32
    %449 = vector.shape_cast %444 : vector<8x1xi1> to vector<8x1xi1>
    %450 = vector.broadcast %449 : vector<8x1xi1> to vector<8x128xi1>
    %451 = vector.broadcast %cst_184 : f32 to vector<8x128xf32>
    %452 = arith.select %450, %442, %451 : vector<8x128xi1>, vector<8x128xf32>
    %c0_185 = arith.constant 0 : index
    %453 = arith.index_cast %404 : i32 to index
    %c0_186 = arith.constant 0 : index
    %c0_187 = arith.constant 0 : index
    %454 = vector.load %arg6[%c0_185, %453, %c0_186, %c0_187] : memref<1x8x8x128xf32, #tpu.memory_space<vmem>>, vector<1x1x8x128xf32>
    %455 = vector.shape_cast %454 : vector<1x1x8x128xf32> to vector<8x128xf32>
    %456 = vector.shape_cast %452 : vector<8x128xf32> to vector<1x1x8x128xf32>
    tpu.vector_store %arg6[%c0_185, %453, %c0_186, %c0_187], %456 {strides = array<i32>} : memref<1x8x8x128xf32, #tpu.memory_space<vmem>>, vector<1x1x8x128xf32>,
    %c8_i32_188 = arith.constant 8 : i32
    %c0_i32_189 = arith.constant 0 : i32
    %457 = arith.cmpi eq, %arg1, %c0_i32_189 : i32
    %458 = arith.extui %457 : i1 to i32
    %c0_i32_190 = arith.constant 0 : i32
    %459 = arith.cmpi ne, %458, %c0_i32_190 : i32
    scf.if %459 {
      %c0_191 = arith.constant 0 : index
      %c0_192 = arith.constant 0 : index
      %460 = vector.load %arg8[%c0_191, %c0_192] : memref<8x128xf32, #tpu.memory_space<vmem>>, vector<8x128xf32>
      %c0_193 = arith.constant 0 : index
      %c0_194 = arith.constant 0 : index
      %c0_195 = arith.constant 0 : index
      %461 = vector.load %arg7[%c0_193, %c0_194, %c0_195] : memref<1x8x128xf32, #tpu.memory_space<vmem>>, vector<1x8x128xf32>
      %462 = vector.shape_cast %461 : vector<1x8x128xf32> to vector<8x128xf32>
      %463 = vector.shape_cast %460 : vector<8x128xf32> to vector<1x8x128xf32>
      tpu.vector_store %arg7[%c0_193, %c0_194, %c0_195], %463 {strides = array<i32>} : memref<1x8x128xf32, #tpu.memory_space<vmem>>, vector<1x8x128xf32>,
    } else {
    }
    return
  }
  func.func @transform_0(%arg0: i32, %arg1: i32) -> (i32, i32) {
    %c0_i32 = arith.constant 0 : i32
    %c0_i32_0 = arith.constant 0 : i32
    %c0_i32_1 = arith.constant 0 : i32
    return %c0_i32, %c0_i32_0 : i32, i32
  }
  func.func @transform_1(%arg0: i32, %arg1: i32) -> (i32, i32, i32, i32) {
    %c2_i32 = arith.constant 2 : i32
    %0 = arith.muli %c2_i32, %arg1 : i32
    %c0_i32 = arith.constant 0 : i32
    %1 = arith.subi %c0_i32, %0 : i32
    %2 = arith.muli %arg0, %1 : i32
    %3 = arith.addi %arg1, %2 : i32
    %c0_i32_0 = arith.constant 0 : i32
    %c0_i32_1 = arith.constant 0 : i32
    %c0_i32_2 = arith.constant 0 : i32
    return %arg0, %3, %c0_i32_0, %c0_i32_1 : i32, i32, i32, i32
  }
  func.func @transform_2(%arg0: i32, %arg1: i32) -> (i32, i32, i32) {
    %c0_i32 = arith.constant 0 : i32
    %c0_i32_0 = arith.constant 0 : i32
    %c0_i32_1 = arith.constant 0 : i32
    return %arg0, %c0_i32, %c0_i32_0 : i32, i32, i32
  }
  func.func @transform_3(%arg0: i32, %arg1: i32) -> (i32, i32, i32) {
    %c0_i32 = arith.constant 0 : i32
    %c0_i32_0 = arith.constant 0 : i32
    %c0_i32_1 = arith.constant 0 : i32
    return %arg0, %c0_i32, %c0_i32_0 : i32, i32, i32
  }
  func.func @transform_4(%arg0: i32, %arg1: i32) -> (i32, i32, i32, i32) {
    %c2_i32 = arith.constant 2 : i32
    %0 = arith.muli %c2_i32, %arg1 : i32
    %c0_i32 = arith.constant 0 : i32
    %1 = arith.subi %c0_i32, %0 : i32
    %2 = arith.muli %arg0, %1 : i32
    %3 = arith.addi %arg1, %2 : i32
    %c0_i32_0 = arith.constant 0 : i32
    %c0_i32_1 = arith.constant 0 : i32
    %c0_i32_2 = arith.constant 0 : i32
    return %arg0, %3, %c0_i32_0, %c0_i32_1 : i32, i32, i32, i32
  }
  func.func @transform_5(%arg0: i32, %arg1: i32) -> (i32, i32, i32) {
    %c0_i32 = arith.constant 0 : i32
    %c0_i32_0 = arith.constant 0 : i32
    %c0_i32_1 = arith.constant 0 : i32
    return %arg0, %c0_i32, %c0_i32_0 : i32, i32, i32
  }
}

module attributes {stable_mosaic.version = 11 : i64} {
  func.func @two_slab_matmul_kernel(%arg0: i32, %arg1: i32, %arg2: memref<2x8x8x128xf32, #tpu.memory_space<vmem>>, %arg3: memref<1x2x128x384xf32, #tpu.memory_space<vmem>>, %arg4: memref<1x1x384xf32, #tpu.memory_space<vmem>>, %arg5: memref<1x8x8x384xf32, #tpu.memory_space<vmem>>) attributes {dimension_semantics = [#tpu.dimension_semantics<parallel>, #tpu.dimension_semantics<parallel>], iteration_bounds = array<i64: 2, 1>, scalar_prefetch = 0 : i64, scratch_operands = 0 : i64, tpu.core_type = #tpu.core_type<tc>, window_params = [{transform_indices = @transform_0, window_bounds = array<i64: 2, 8, 8, 128>}, {transform_indices = @transform_1, window_bounds = array<i64: 1, 2, 128, 384>}, {transform_indices = @transform_2, window_bounds = array<i64: 1, 1, 384>}, {transform_indices = @transform_3, window_bounds = array<i64: 1, 8, 8, 384>}]} {
    %c0 = arith.constant 0 : index
    %c0_0 = arith.constant 0 : index
    %c0_1 = arith.constant 0 : index
    %c0_2 = arith.constant 0 : index
    %0 = vector.load %arg2[%c0, %c0_0, %c0_1, %c0_2] : memref<2x8x8x128xf32, #tpu.memory_space<vmem>>, vector<1x8x8x128xf32>
    %1 = vector.shape_cast %0 : vector<1x8x8x128xf32> to vector<8x8x128xf32>
    %2 = vector.shape_cast %1 : vector<8x8x128xf32> to vector<64x128xf32>
    %c1 = arith.constant 1 : index
    %c0_3 = arith.constant 0 : index
    %c0_4 = arith.constant 0 : index
    %c0_5 = arith.constant 0 : index
    %3 = vector.load %arg2[%c1, %c0_3, %c0_4, %c0_5] : memref<2x8x8x128xf32, #tpu.memory_space<vmem>>, vector<1x8x8x128xf32>
    %4 = vector.shape_cast %3 : vector<1x8x8x128xf32> to vector<8x8x128xf32>
    %5 = vector.shape_cast %4 : vector<8x8x128xf32> to vector<64x128xf32>
    %c0_6 = arith.constant 0 : index
    %c0_7 = arith.constant 0 : index
    %c0_8 = arith.constant 0 : index
    %c0_9 = arith.constant 0 : index
    %6 = vector.load %arg3[%c0_6, %c0_7, %c0_8, %c0_9] : memref<1x2x128x384xf32, #tpu.memory_space<vmem>>, vector<1x1x128x384xf32>
    %7 = vector.shape_cast %6 : vector<1x1x128x384xf32> to vector<128x384xf32>
    %cst = arith.constant dense<0.000000e+00> : vector<64x384xf32>
    %8 = tpu.matmul %2, %7, %cst {dimension_numbers = #tpu.dot_dimension_numbers<[1], [0], [0], [1], [0, 0, 1, 1], [], []>} : vector<64x128xf32>, vector<128x384xf32>, vector<64x384xf32> -> vector<64x384xf32>
    %c0_10 = arith.constant 0 : index
    %c1_11 = arith.constant 1 : index
    %c0_12 = arith.constant 0 : index
    %c0_13 = arith.constant 0 : index
    %9 = vector.load %arg3[%c0_10, %c1_11, %c0_12, %c0_13] : memref<1x2x128x384xf32, #tpu.memory_space<vmem>>, vector<1x1x128x384xf32>
    %10 = vector.shape_cast %9 : vector<1x1x128x384xf32> to vector<128x384xf32>
    %cst_14 = arith.constant dense<0.000000e+00> : vector<64x384xf32>
    %11 = tpu.matmul %5, %10, %cst_14 {dimension_numbers = #tpu.dot_dimension_numbers<[1], [0], [0], [1], [0, 0, 1, 1], [], []>} : vector<64x128xf32>, vector<128x384xf32>, vector<64x384xf32> -> vector<64x384xf32>
    %12 = arith.addf %8, %11 : vector<64x384xf32>
    %c0_15 = arith.constant 0 : index
    %c0_16 = arith.constant 0 : index
    %c0_17 = arith.constant 0 : index
    %13 = vector.load %arg4[%c0_15, %c0_16, %c0_17] : memref<1x1x384xf32, #tpu.memory_space<vmem>>, vector<1x1x384xf32>
    %14 = vector.shape_cast %13 : vector<1x1x384xf32> to vector<1x384xf32>
    %15 = vector.broadcast %14 : vector<1x384xf32> to vector<64x384xf32>
    %16 = arith.addf %12, %15 : vector<64x384xf32>
    %17 = vector.shape_cast %16 : vector<64x384xf32> to vector<8x8x384xf32>
    %c0_18 = arith.constant 0 : index
    %c0_19 = arith.constant 0 : index
    %c0_20 = arith.constant 0 : index
    %c0_21 = arith.constant 0 : index
    %18 = vector.load %arg5[%c0_18, %c0_19, %c0_20, %c0_21] : memref<1x8x8x384xf32, #tpu.memory_space<vmem>>, vector<1x8x8x384xf32>
    %19 = vector.shape_cast %18 : vector<1x8x8x384xf32> to vector<8x8x384xf32>
    %20 = vector.shape_cast %17 : vector<8x8x384xf32> to vector<1x8x8x384xf32>
    tpu.vector_store %arg5[%c0_18, %c0_19, %c0_20, %c0_21], %20 {strides = array<i32>} : memref<1x8x8x384xf32, #tpu.memory_space<vmem>>, vector<1x8x8x384xf32>,
    return
  }
  func.func @transform_0(%arg0: i32, %arg1: i32) -> (i32, i32, i32, i32) {
    %c0_i32 = arith.constant 0 : i32
    %c0_i32_0 = arith.constant 0 : i32
    %c0_i32_1 = arith.constant 0 : i32
    %c0_i32_2 = arith.constant 0 : i32
    return %c0_i32, %arg1, %c0_i32_0, %c0_i32_1 : i32, i32, i32, i32
  }
  func.func @transform_1(%arg0: i32, %arg1: i32) -> (i32, i32, i32, i32) {
    %c0_i32 = arith.constant 0 : i32
    %c0_i32_0 = arith.constant 0 : i32
    %c0_i32_1 = arith.constant 0 : i32
    %c0_i32_2 = arith.constant 0 : i32
    return %arg0, %c0_i32, %c0_i32_0, %c0_i32_1 : i32, i32, i32, i32
  }
  func.func @transform_2(%arg0: i32, %arg1: i32) -> (i32, i32, i32) {
    %c0_i32 = arith.constant 0 : i32
    %c0_i32_0 = arith.constant 0 : i32
    %c0_i32_1 = arith.constant 0 : i32
    return %arg0, %c0_i32, %c0_i32_0 : i32, i32, i32
  }
  func.func @transform_3(%arg0: i32, %arg1: i32) -> (i32, i32, i32, i32) {
    %c0_i32 = arith.constant 0 : i32
    %c0_i32_0 = arith.constant 0 : i32
    %c0_i32_1 = arith.constant 0 : i32
    return %arg0, %arg1, %c0_i32, %c0_i32_0 : i32, i32, i32, i32
  }
}

module attributes {stable_mosaic.version = 11 : i64} {
  func.func @two_slab_matmul_kernel(%arg0: i32, %arg1: memref<2x8x8x128xf32, #tpu.memory_space<vmem>>, %arg2: memref<2x128x128xf32, #tpu.memory_space<vmem>>, %arg3: memref<1x128xf32, #tpu.memory_space<vmem>>, %arg4: memref<8x8x128xf32, #tpu.memory_space<vmem>>) attributes {dimension_semantics = [#tpu.dimension_semantics<parallel>], iteration_bounds = array<i64: 1>, scalar_prefetch = 0 : i64, scratch_operands = 0 : i64, tpu.core_type = #tpu.core_type<tc>, window_params = [{transform_indices = @transform_0, window_bounds = array<i64: 2, 8, 8, 128>}, {pipeline_mode = #tpu.pipeline_mode<synchronous>, transform_indices = @transform_1, window_bounds = array<i64: 2, 128, 128>}, {pipeline_mode = #tpu.pipeline_mode<synchronous>, transform_indices = @transform_2, window_bounds = array<i64: 1, 128>}, {transform_indices = @transform_3, window_bounds = array<i64: 8, 8, 128>}]} {
    %c0 = arith.constant 0 : index
    %c0_0 = arith.constant 0 : index
    %c0_1 = arith.constant 0 : index
    %c0_2 = arith.constant 0 : index
    %0 = vector.load %arg1[%c0, %c0_0, %c0_1, %c0_2] : memref<2x8x8x128xf32, #tpu.memory_space<vmem>>, vector<1x8x8x128xf32>
    %1 = vector.shape_cast %0 : vector<1x8x8x128xf32> to vector<8x8x128xf32>
    %2 = vector.shape_cast %1 : vector<8x8x128xf32> to vector<64x128xf32>
    %c1 = arith.constant 1 : index
    %c0_3 = arith.constant 0 : index
    %c0_4 = arith.constant 0 : index
    %c0_5 = arith.constant 0 : index
    %3 = vector.load %arg1[%c1, %c0_3, %c0_4, %c0_5] : memref<2x8x8x128xf32, #tpu.memory_space<vmem>>, vector<1x8x8x128xf32>
    %4 = vector.shape_cast %3 : vector<1x8x8x128xf32> to vector<8x8x128xf32>
    %5 = vector.shape_cast %4 : vector<8x8x128xf32> to vector<64x128xf32>
    %c0_6 = arith.constant 0 : index
    %c0_7 = arith.constant 0 : index
    %c0_8 = arith.constant 0 : index
    %6 = vector.load %arg2[%c0_6, %c0_7, %c0_8] : memref<2x128x128xf32, #tpu.memory_space<vmem>>, vector<1x128x128xf32>
    %7 = vector.shape_cast %6 : vector<1x128x128xf32> to vector<128x128xf32>
    %cst = arith.constant dense<0.000000e+00> : vector<64x128xf32>
    %8 = tpu.matmul %2, %7, %cst {dimension_numbers = #tpu.dot_dimension_numbers<[1], [0], [0], [1], [0, 0, 1, 1], [], []>} : vector<64x128xf32>, vector<128x128xf32>, vector<64x128xf32> -> vector<64x128xf32>
    %c1_9 = arith.constant 1 : index
    %c0_10 = arith.constant 0 : index
    %c0_11 = arith.constant 0 : index
    %9 = vector.load %arg2[%c1_9, %c0_10, %c0_11] : memref<2x128x128xf32, #tpu.memory_space<vmem>>, vector<1x128x128xf32>
    %10 = vector.shape_cast %9 : vector<1x128x128xf32> to vector<128x128xf32>
    %cst_12 = arith.constant dense<0.000000e+00> : vector<64x128xf32>
    %11 = tpu.matmul %5, %10, %cst_12 {dimension_numbers = #tpu.dot_dimension_numbers<[1], [0], [0], [1], [0, 0, 1, 1], [], []>} : vector<64x128xf32>, vector<128x128xf32>, vector<64x128xf32> -> vector<64x128xf32>
    %12 = arith.addf %8, %11 : vector<64x128xf32>
    %c0_13 = arith.constant 0 : index
    %c0_14 = arith.constant 0 : index
    %13 = vector.load %arg3[%c0_13, %c0_14] : memref<1x128xf32, #tpu.memory_space<vmem>>, vector<1x128xf32>
    %14 = vector.broadcast %13 : vector<1x128xf32> to vector<64x128xf32>
    %15 = arith.addf %12, %14 : vector<64x128xf32>
    %16 = vector.shape_cast %15 : vector<64x128xf32> to vector<8x8x128xf32>
    %c0_15 = arith.constant 0 : index
    %c0_16 = arith.constant 0 : index
    %c0_17 = arith.constant 0 : index
    %17 = vector.load %arg4[%c0_15, %c0_16, %c0_17] : memref<8x8x128xf32, #tpu.memory_space<vmem>>, vector<8x8x128xf32>
    tpu.vector_store %arg4[%c0_15, %c0_16, %c0_17], %16 {strides = array<i32>} : memref<8x8x128xf32, #tpu.memory_space<vmem>>, vector<8x8x128xf32>,
    return
  }
  func.func @transform_0(%arg0: i32) -> (i32, i32, i32, i32) {
    %c0_i32 = arith.constant 0 : i32
    %c0_i32_0 = arith.constant 0 : i32
    %c0_i32_1 = arith.constant 0 : i32
    %c0_i32_2 = arith.constant 0 : i32
    return %c0_i32, %arg0, %c0_i32_0, %c0_i32_1 : i32, i32, i32, i32
  }
  func.func @transform_1(%arg0: i32) -> (i32, i32, i32) {
    %c0_i32 = arith.constant 0 : i32
    %c0_i32_0 = arith.constant 0 : i32
    %c0_i32_1 = arith.constant 0 : i32
    %c0_i32_2 = arith.constant 0 : i32
    return %c0_i32, %c0_i32_0, %c0_i32_1 : i32, i32, i32
  }
  func.func @transform_2(%arg0: i32) -> (i32, i32) {
    %c0_i32 = arith.constant 0 : i32
    %c0_i32_0 = arith.constant 0 : i32
    %c0_i32_1 = arith.constant 0 : i32
    return %c0_i32, %c0_i32_0 : i32, i32
  }
  func.func @transform_3(%arg0: i32) -> (i32, i32, i32) {
    %c0_i32 = arith.constant 0 : i32
    %c0_i32_0 = arith.constant 0 : i32
    %c0_i32_1 = arith.constant 0 : i32
    return %arg0, %c0_i32, %c0_i32_0 : i32, i32, i32
  }
}

</mosaic_0001>

<bundles_post_ra>
// kernel: neg.1
= control target key start
LH: loop header
LB: loop body
LE: loop exit
PB: predicated region body
PF: predicated region fallthrough
CT: control target
= control target key end

     0   :  { %s24_s0 = inlined_call_operand.vmem [shape: s32[2], index: 0, kind: input, shape index: {}]   ;;  %s25_s1 = inlined_call_operand.vmem [shape: s32[2], index: 1, kind: output, shape index: {}]  }
   0x1   :  { %v2_v0 = vld [vmem:[%s24_s0] sm:$0x1] }
   0x2   :  { %v5_v1 = vsub.s32 0, %v2_v0 }
   0x4   :  { %7 = vst [vmem:[%s25_s1] sm:$0x1] %v5_v1 }

// kernel: _encoder_impl.5
= control target key start
LH: loop header
LB: loop body
LE: loop exit
PB: predicated region body
PF: predicated region fallthrough
CT: control target
= control target key end

     0   :  { %s654_s12 = smov 0   ;;  %s656_s13 = smov 0   ;;  %s799_s0 = inlined_call_operand.vmem [shape: f32[8,8,16], index: 0, kind: input, shape index: {}]   ;;  %s800_s1 = inlined_call_operand.vmem [shape: f32[2,16,384], index: 1, kind: input, shape index: {}]   ;;  %s801_s2 = inlined_call_operand.vmem [shape: f32[2,1,384], index: 2, kind: input, shape index: {}]   ;;  %s802_s3 = inlined_call_operand.vmem [shape: f32[2,8,8,384], index: 3, kind: output, shape index: {}]  }
   0x1   :  { %s658_s14 = smov 0  }
   0x2 LB: > { %s25_s15 = sadd.s32 1, %s628_s13  ;;  %p548_p0 = scmp.ge.s32.totalorder %s632_s14, 1  ;;  %s632_s14 = sphi %s658_s14, %s13_s14   ;;  %s628_s13 = sphi %s656_s13, %s804_s13   ;;  %s624_s12 = sphi %s654_s12, %s803_s12  }
   0x3   : > { %p27_p1 = scmp.ge.s32.totalorder %s25_s15, 2  ;;  %p171_p2 = scmp.lt.s32.totalorder %s632_s14, 3 }
   0x5   : > { %s806_s15 = smov (%p27_p1, %s25_s15), 0  ;;  %p172_p3 = pnand %p548_p0, %p171_p2 }
   0x6   : > { %p215_p4 = scmp.lt.s32.totalorder (!%p172_p3), %s624_s12, 1 }
   0x7   : > { %175 = sbr.rel (%p172_p3) target bundleno = 196 (0xc4), region = 32 }
   0xc   : > { %s808_s12 = smov (!%p215_p4, %s624_s12), 1  ;;  %v241_v0 = vld [vmem:[%s799_s0 + $0x30] sm:$0xff]  ;;  %vm257_vm0 = vcmask 130048   ;;  %v235_v6 = vld [vmem:[%s799_s0] sm:$0xff]  ;;  %v242_v8 = vld [vmem:[%s799_s0 + $0x38] sm:$0xff] }
   0xd   : > { %s583_s16 = smul.u32 48, %s808_s12  ;;  %v236_v9 = vld [vmem:[%s799_s0 + $0x8] sm:$0xff]  ;;  %v237_v10 = vld [vmem:[%s799_s0 + $0x10] sm:$0xff]  ;;  %v238_v11 = vld [vmem:[%s799_s0 + $0x18] sm:$0xff] }
   0xe   : > { %v239_v12 = vld [vmem:[%s799_s0 + $0x20] sm:$0xff]  ;;  %v240_v13 = vld [vmem:[%s799_s0 + $0x28] sm:$0xff]  ;;  %s584_s9 = smul.u32 3, %s808_s12 }
   0xf   : > { %s219_s19 = scalar_lea.vmem %s800_s1, %s583_s16  ;;  %s585_s17 = smul.u32 192, %s808_s12 }
  0x10   : > { %v246_v1 = vld [vmem:[%s219_s19 + $0x18] sm:$0xff]  ;;  %v248_v2 = vld [vmem:[%s219_s19 + $0x28] sm:$0xff]  ;;  %v243_v3 = vld [vmem:[%s219_s19] sm:$0xff]  ;;  %s223_s16 = scalar_lea.vmem %s801_s2, %s584_s9 }
  0x11   : > { %577 = vmatpush.msra.mxu3 %v246_v1  ;;  %378 = vmatpush.msra.mxu2 %v248_v2  ;;  %v245_v4 = vld [vmem:[%s219_s19 + $0x10] sm:$0xff]  ;;  %v247_v5 = vld [vmem:[%s219_s19 + $0x20] sm:$0xff]  ;;  %v244_v7 = vld [vmem:[%s219_s19 + $0x8] sm:$0xff]  ;;  %s738_s20 = scalar_lea.vmem %s802_s3, %s585_s17 }
  0x12   : > { %296 = vmatpush.msra.mxu0 %v246_v1  ;;  %337 = vmatpush.msra.mxu1 %v247_v5  ;;  %v249_v14 = vld [vmem:[%s223_s16] sm:$0x7] }
  0x13   : > { %578 = vmatpush.msra.mxu3 %v243_v3  ;;  %379 = vmatpush.msra.mxu2 %v245_v4  ;;  %v731_v15 = vperm.slane %v249_v14, 0  ;;  %v733_v16 = vperm.slane %v249_v14, 1  ;;  %v740_v18 = vperm.slane %v249_v14, 2 }
  0x14   : > { %557 = vmatmul.msk.f32.vlgmr.msra.gmra.mxu3 %vm257_vm0, %v241_v0  ;;  %567 = vmatmul.msk.f32.vlgmr.msra.gmra.mxu2 %vm257_vm0, %v235_v6 }
  0x15   : > { %579 = vmatpush.msrb.mxu3 %v247_v5  ;;  %297 = vmatpush.msra.mxu0 %v243_v3 }
  0x16   : > { %338 = vmatpush.msra.mxu1 %v244_v7  ;;  %551 = vmatmul.msk.f32.vlgmr.msra.gmra.mxu0 %vm257_vm0, %v235_v6 }
  0x17   : > { %559 = vmatmul.msk.f32.vlgmr.msra.gmra.mxu1 %vm257_vm0, %v235_v6  ;;  %580 = vmatpush.msrb.mxu3 %v244_v7 }
  0x19   : > { %581 = vmatpush.msra.mxu3 %v248_v2 }
  0x1b   : > { %582 = vmatpush.msra.mxu3 %v245_v4 }
  0x1c   : > { %558 = vmatmul.msk.f32.gmra.mxu3 %vm257_vm0, %v242_v8  ;;  %568 = vmatmul.msk.f32.gmra.mxu2 %vm257_vm0, %v236_v9 }
  0x1e   : > { %552 = vmatmul.msk.f32.gmra.mxu0 %vm257_vm0, %v236_v9 }
  0x1f   : > { %560 = vmatmul.msk.f32.gmra.mxu1 %vm257_vm0, %v236_v9 }
  0x24   : > { %565 = vmatmul.msk.f32.vlgmr.msrb.gmra.mxu3 %vm257_vm0, %v241_v0  ;;  %569 = vmatmul.msk.f32.gmra.mxu2 %vm257_vm0, %v237_v10 }
  0x26   : > { %553 = vmatmul.msk.f32.gmra.mxu0 %vm257_vm0, %v237_v10 }
  0x27   : > { %561 = vmatmul.msk.f32.gmra.mxu1 %vm257_vm0, %v237_v10 }
  0x2c   : > { %566 = vmatmul.msk.f32.gmra.mxu3 %vm257_vm0, %v242_v8  ;;  %570 = vmatmul.msk.f32.gmra.mxu2 %vm257_vm0, %v238_v11 }
  0x2e   : > { %554 = vmatmul.msk.f32.gmra.mxu0 %vm257_vm0, %v238_v11 }
  0x2f   : > { %562 = vmatmul.msk.f32.gmra.mxu1 %vm257_vm0, %v238_v11 }
  0x34   : > { %571 = vmatmul.msk.f32.gmra.mxu2 %vm257_vm0, %v239_v12  ;;  %573 = vmatmul.msk.f32.vlgmr.msra.gmra.mxu3 %vm257_vm0, %v241_v0 }
  0x36   : > { %555 = vmatmul.msk.f32.gmra.mxu0 %vm257_vm0, %v239_v12 }
  0x37   : > { %563 = vmatmul.msk.f32.gmra.mxu1 %vm257_vm0, %v239_v12 }
  0x3c   : > { %572 = vmatmul.msk.f32.gmra.mxu2 %vm257_vm0, %v240_v13  ;;  %574 = vmatmul.msk.f32.gmra.mxu3 %vm257_vm0, %v242_v8 }
  0x3e   : > { %556 = vmatmul.msk.f32.gmra.mxu0 %vm257_vm0, %v240_v13 }
  0x3f   : > { %564 = vmatmul.msk.f32.gmra.mxu1 %vm257_vm0, %v240_v13 }
  0x93   : > { %v299_v17 = vpop.f32.mrf.mxu0 }
  0x94   : > { %v300_v19 = vadd.f32 %v299_v17, %v731_v15  ;;  %v340_v20 = vpop.f32.mrf.mxu1 }
  0x95   : > { %v341_v21 = vadd.f32 %v340_v20, %v733_v16 }
  0x96   : > { %405 = vst [vmem:[%s738_s20] sm:$0xff] %v300_v19 }
  0x97   : > { %v317_v22 = vpop.f32.mrf.mxu3  ;;  %406 = vst [vmem:[%s738_s20 + $0x8] sm:$0xff] %v341_v21  ;;  %v381_v23 = vpop.f32.mrf.mxu2 }
  0x98   : > { %v318_v24 = vadd.f32 %v317_v22, %v731_v15  ;;  %v382_v25 = vadd.f32 %v381_v23, %v740_v18 }
  0x9a   : > { %423 = vst [vmem:[%s738_s20 + $0x90] sm:$0xff] %v318_v24 }
  0x9b   : > { %407 = vst [vmem:[%s738_s20 + $0x10] sm:$0xff] %v382_v25  ;;  %v302_v26 = vpop.f32.mrf.mxu0 }
  0x9c   : > { %v303_v27 = vadd.f32 %v302_v26, %v731_v15  ;;  %v343_v28 = vpop.f32.mrf.mxu1 }
  0x9d   : > { %v344_v29 = vadd.f32 %v343_v28, %v733_v16 }
  0x9e   : > { %408 = vst [vmem:[%s738_s20 + $0x18] sm:$0xff] %v303_v27 }
  0x9f   : > { %v320_v30 = vpop.f32.mrf.mxu3  ;;  %409 = vst [vmem:[%s738_s20 + $0x20] sm:$0xff] %v344_v29  ;;  %v384_v31 = vpop.f32.mrf.mxu2 }
  0xa0   : > { %v321_v32 = vadd.f32 %v320_v30, %v731_v15  ;;  %v385_v33 = vadd.f32 %v384_v31, %v740_v18 }
  0xa2   : > { %426 = vst [vmem:[%s738_s20 + $0xa8] sm:$0xff] %v321_v32 }
  0xa3   : > { %410 = vst [vmem:[%s738_s20 + $0x28] sm:$0xff] %v385_v33  ;;  %v305_v34 = vpop.f32.mrf.mxu0 }
  0xa4   : > { %v306_v35 = vadd.f32 %v305_v34, %v731_v15  ;;  %v346_v36 = vpop.f32.mrf.mxu1 }
  0xa5   : > { %v347_v37 = vadd.f32 %v346_v36, %v733_v16 }
  0xa6   : > { %411 = vst [vmem:[%s738_s20 + $0x30] sm:$0xff] %v306_v35 }
  0xa7   : > { %412 = vst [vmem:[%s738_s20 + $0x38] sm:$0xff] %v347_v37  ;;  %v358_v38 = vpop.f32.mrf.mxu3  ;;  %v387_v39 = vpop.f32.mrf.mxu2 }
  0xa8   : > { %v359_v40 = vadd.f32 %v358_v38, %v733_v16  ;;  %v388_v41 = vadd.f32 %v387_v39, %v740_v18 }
  0xaa   : > { %424 = vst [vmem:[%s738_s20 + $0x98] sm:$0xff] %v359_v40 }
  0xab   : > { %413 = vst [vmem:[%s738_s20 + $0x40] sm:$0xff] %v388_v41  ;;  %v308_v42 = vpop.f32.mrf.mxu0 }
  0xac   : > { %v309_v43 = vadd.f32 %v308_v42, %v731_v15  ;;  %v349_v44 = vpop.f32.mrf.mxu1 }
  0xad   : > { %v350_v45 = vadd.f32 %v349_v44, %v733_v16 }
  0xae   : > { %414 = vst [vmem:[%s738_s20 + $0x48] sm:$0xff] %v309_v43 }
  0xaf   : > { %415 = vst [vmem:[%s738_s20 + $0x50] sm:$0xff] %v350_v45  ;;  %v361_v46 = vpop.f32.mrf.mxu3  ;;  %v390_v47 = vpop.f32.mrf.mxu2 }
  0xb0   : > { %v362_v48 = vadd.f32 %v361_v46, %v733_v16  ;;  %v391_v49 = vadd.f32 %v390_v47, %v740_v18 }
  0xb2   : > { %427 = vst [vmem:[%s738_s20 + $0xb0] sm:$0xff] %v362_v48 }
  0xb3   : > { %416 = vst [vmem:[%s738_s20 + $0x58] sm:$0xff] %v391_v49  ;;  %v311_v50 = vpop.f32.mrf.mxu0 }
  0xb4   : > { %v312_v51 = vadd.f32 %v311_v50, %v731_v15  ;;  %v352_v52 = vpop.f32.mrf.mxu1 }
  0xb5   : > { %v353_v53 = vadd.f32 %v352_v52, %v733_v16 }
  0xb6   : > { %417 = vst [vmem:[%s738_s20 + $0x60] sm:$0xff] %v312_v51 }
  0xb7   : > { %418 = vst [vmem:[%s738_s20 + $0x68] sm:$0xff] %v353_v53  ;;  %v393_v54 = vpop.f32.mrf.mxu2  ;;  %v399_v55 = vpop.f32.mrf.mxu3 }
  0xb8   : > { %v394_v56 = vadd.f32 %v393_v54, %v740_v18  ;;  %v400_v57 = vadd.f32 %v399_v55, %v740_v18 }
  0xba   : > { %419 = vst [vmem:[%s738_s20 + $0x70] sm:$0xff] %v394_v56 }
  0xbb   : > { %425 = vst [vmem:[%s738_s20 + $0xa0] sm:$0xff] %v400_v57  ;;  %v314_v58 = vpop.f32.mrf.mxu0 }
  0xbc   : > { %v315_v59 = vadd.f32 %v314_v58, %v731_v15  ;;  %v355_v60 = vpop.f32.mrf.mxu1 }
  0xbd   : > { %v356_v61 = vadd.f32 %v355_v60, %v733_v16 }
  0xbe   : > { %420 = vst [vmem:[%s738_s20 + $0x78] sm:$0xff] %v315_v59 }
  0xbf   : > { %421 = vst [vmem:[%s738_s20 + $0x80] sm:$0xff] %v356_v61  ;;  %v396_v62 = vpop.f32.mrf.mxu2  ;;  %v402_v63 = vpop.f32.mrf.mxu3 }
  0xc0   : > { %v397_v0 = vadd.f32 %v396_v62, %v740_v18  ;;  %v403_v1 = vadd.f32 %v402_v63, %v740_v18 }
  0xc2   : > { %422 = vst [vmem:[%s738_s20 + $0x88] sm:$0xff] %v397_v0 }
  0xc3   : > { %428 = vst [vmem:[%s738_s20 + $0xb8] sm:$0xff] %v403_v1 }
  0xc4 PF: > { %s13_s14 = sadd.s32 1, %s632_s14   ;;  %s803_s12 = smov %s628_s13 }
  0xc5   : > { %p10_p5 = scmp.ge.s32.totalorder %s13_s14, 4   ;;  %s804_s13 = smov %s806_s15 }
  0xc7   :  { %12 = sbr.rel (!%p10_p5) target bundleno = 2 (0x2), region = 68 }

// kernel: _encoder_impl.7
= control target key start
LH: loop header
LB: loop body
LE: loop exit
PB: predicated region body
PF: predicated region fallthrough
CT: control target
= control target key end

     0   :  { %s934_s12 = smov 0   ;;  %s936_s13 = smov 0   ;;  %s1236_s0 = inlined_call_operand.vmem [shape: f32[2,8,8,128], index: 0, kind: input, shape index: {}]   ;;  %s1237_s1 = inlined_call_operand.vmem [shape: f32[2,2,128,384], index: 1, kind: input, shape index: {}]   ;;  %s1238_s2 = inlined_call_operand.vmem [shape: f32[2,1,384], index: 2, kind: input, shape index: {}]   ;;  %s1239_s3 = inlined_call_operand.vmem [shape: f32[2,8,8,384], index: 3, kind: output, shape index: {}]  }
   0x1   :  { %s938_s14 = smov 0  }
   0x2 LB: > { %s25_s15 = sadd.s32 1, %s908_s13  ;;  %p770_p0 = scmp.ge.s32.totalorder %s912_s14, 1  ;;  %s912_s14 = sphi %s938_s14, %s13_s14   ;;  %s908_s13 = sphi %s936_s13, %s1241_s13   ;;  %s904_s12 = sphi %s934_s12, %s1240_s12  }
   0x3   : > { %p27_p1 = scmp.ge.s32.totalorder %s25_s15, 2  ;;  %p171_p2 = scmp.lt.s32.totalorder %s912_s14, 3 }
   0x5   : > { %s1243_s15 = smov (%p27_p1, %s25_s15), 0  ;;  %p172_p3 = pnand %p770_p0, %p171_p2 }
   0x6   : > { %p215_p4 = scmp.lt.s32.totalorder (!%p172_p3), %s904_s12, 1 }
   0x7   : > { %175 = sbr.rel (%p172_p3) target bundleno = 282 (0x11a), region = 32 }
   0xc   : > { %s1245_s12 = smov (!%p215_p4, %s904_s12), 1  ;;  %v995_v32 = vld [vmem:[%s1236_s0 + $0x40] sm:$0xff]  ;;  %v1022_v47 = vld [vmem:[%s1236_s0 + $0x68] sm:$0xff] }
   0xd   : > { %s863_s16 = smul.u32 768, %s1245_s12  ;;  %v1000_v33 = vld [vmem:[%s1236_s0 + $0x60] sm:$0xff]  ;;  %v1027_v48 = vld [vmem:[%s1236_s0 + $0x48] sm:$0xff] }
   0xe   : > { %s864_s29 = smul.u32 3, %s1245_s12 }
   0xf   : > { %s958_s19 = scalar_lea.vmem %s1237_s1, %s863_s16  ;;  %s865_s6 = smul.u32 192, %s1245_s12 }
  0x10   : > { %v826_v0 = vld [vmem:[%s958_s19 + $0x2e8] sm:$0xff]  ;;  %v827_v1 = vld [vmem:[%s958_s19 + $0x2f0] sm:$0xff]  ;;  %v824_v3 = vld [vmem:[%s958_s19 + $0x2d8] sm:$0xff]  ;;  %s223_s5 = scalar_lea.vmem %s1238_s2, %s864_s29 }
  0x11   : > { %v823_v2 = vld [vmem:[%s958_s19 + $0x2d0] sm:$0xff]  ;;  %349 = vmatpush.msra.mxu0 %v826_v0  ;;  %831 = vmatpush.msra.mxu2 %v826_v0  ;;  %v820_v4 = vld [vmem:[%s958_s19 + $0x2b8] sm:$0xff]  ;;  %v821_v5 = vld [vmem:[%s958_s19 + $0x2c0] sm:$0xff]  ;;  %s1165_s9 = scalar_lea.vmem %s1239_s3, %s865_s6 }
  0x12   : > { %847 = vmatpush.msra.mxu3 %v827_v1  ;;  %390 = vmatpush.msra.mxu1 %v827_v1  ;;  %v817_v6 = vld [vmem:[%s958_s19 + $0x2a0] sm:$0xff]  ;;  %v818_v7 = vld [vmem:[%s958_s19 + $0x2a8] sm:$0xff]  ;;  %v815_v9 = vld [vmem:[%s958_s19 + $0x290] sm:$0xff] }
  0x13   : > { %350 = vmatpush.msra.mxu0 %v823_v2  ;;  %832 = vmatpush.msra.mxu2 %v823_v2  ;;  %v814_v8 = vld [vmem:[%s958_s19 + $0x288] sm:$0xff]  ;;  %v811_v10 = vld [vmem:[%s958_s19 + $0x270] sm:$0xff]  ;;  %v812_v11 = vld [vmem:[%s958_s19 + $0x278] sm:$0xff] }
  0x14   : > { %848 = vmatpush.msra.mxu3 %v824_v3  ;;  %391 = vmatpush.msra.mxu1 %v824_v3  ;;  %v808_v12 = vld [vmem:[%s958_s19 + $0x258] sm:$0xff]  ;;  %v809_v13 = vld [vmem:[%s958_s19 + $0x260] sm:$0xff]  ;;  %v806_v15 = vld [vmem:[%s958_s19 + $0x248] sm:$0xff] }
  0x15   : > { %351 = vmatpush.msra.mxu0 %v820_v4  ;;  %833 = vmatpush.msra.mxu2 %v820_v4  ;;  %v805_v14 = vld [vmem:[%s958_s19 + $0x240] sm:$0xff]  ;;  %v802_v16 = vld [vmem:[%s958_s19 + $0x228] sm:$0xff]  ;;  %v803_v17 = vld [vmem:[%s958_s19 + $0x230] sm:$0xff] }
  0x16   : > { %849 = vmatpush.msra.mxu3 %v821_v5  ;;  %392 = vmatpush.msra.mxu1 %v821_v5  ;;  %v799_v18 = vld [vmem:[%s958_s19 + $0x210] sm:$0xff]  ;;  %v800_v19 = vld [vmem:[%s958_s19 + $0x218] sm:$0xff]  ;;  %v797_v21 = vld [vmem:[%s958_s19 + $0x200] sm:$0xff] }
  0x17   : > { %352 = vmatpush.msra.mxu0 %v817_v6  ;;  %834 = vmatpush.msra.mxu2 %v817_v6  ;;  %v796_v20 = vld [vmem:[%s958_s19 + $0x1f8] sm:$0xff]  ;;  %v793_v22 = vld [vmem:[%s958_s19 + $0x1e0] sm:$0xff]  ;;  %v794_v23 = vld [vmem:[%s958_s19 + $0x1e8] sm:$0xff] }
  0x18   : > { %850 = vmatpush.msra.mxu3 %v818_v7  ;;  %393 = vmatpush.msra.mxu1 %v818_v7  ;;  %v790_v24 = vld [vmem:[%s958_s19 + $0x1c8] sm:$0xff]  ;;  %v791_v25 = vld [vmem:[%s958_s19 + $0x1d0] sm:$0xff]  ;;  %v788_v27 = vld [vmem:[%s958_s19 + $0x1b8] sm:$0xff] }
  0x19   : > { %353 = vmatpush.msra.mxu0 %v814_v8  ;;  %835 = vmatpush.msra.mxu2 %v814_v8  ;;  %v787_v26 = vld [vmem:[%s958_s19 + $0x1b0] sm:$0xff]  ;;  %v784_v28 = vld [vmem:[%s958_s19 + $0x198] sm:$0xff]  ;;  %v785_v29 = vld [vmem:[%s958_s19 + $0x1a0] sm:$0xff] }
  0x1a   : > { %851 = vmatpush.msra.mxu3 %v815_v9  ;;  %394 = vmatpush.msra.mxu1 %v815_v9  ;;  %v781_v30 = vld [vmem:[%s958_s19 + $0x180] sm:$0xff]  ;;  %v782_v31 = vld [vmem:[%s958_s19 + $0x188] sm:$0xff]  ;;  %v828_v34 = vld [vmem:[%s958_s19 + $0x2f8] sm:$0xff] }
  0x1b   : > { %354 = vmatpush.msra.mxu0 %v811_v10  ;;  %836 = vmatpush.msra.mxu2 %v811_v10  ;;  %v297_v35 = vld [vmem:[%s958_s19 + $0x168] sm:$0xff]  ;;  %v298_v36 = vld [vmem:[%s958_s19 + $0x170] sm:$0xff]  ;;  %v825_v37 = vld [vmem:[%s958_s19 + $0x2e0] sm:$0xff] }
  0x1c   : > { %852 = vmatpush.msra.mxu3 %v812_v11  ;;  %395 = vmatpush.msra.mxu1 %v812_v11  ;;  %v294_v38 = vld [vmem:[%s958_s19 + $0x150] sm:$0xff]  ;;  %v295_v39 = vld [vmem:[%s958_s19 + $0x158] sm:$0xff]  ;;  %v822_v40 = vld [vmem:[%s958_s19 + $0x2c8] sm:$0xff] }
  0x1d   : > { %355 = vmatpush.msra.mxu0 %v808_v12  ;;  %837 = vmatpush.msra.mxu2 %v808_v12  ;;  %v291_v41 = vld [vmem:[%s958_s19 + $0x138] sm:$0xff]  ;;  %v292_v42 = vld [vmem:[%s958_s19 + $0x140] sm:$0xff]  ;;  %v819_v44 = vld [vmem:[%s958_s19 + $0x2b0] sm:$0xff] }
  0x1e   : > { %853 = vmatpush.msra.mxu3 %v809_v13  ;;  %396 = vmatpush.msra.mxu1 %v809_v13  ;;  %v299_v43 = vld [vmem:[%s958_s19 + $0x178] sm:$0xff]  ;;  %v288_v45 = vld [vmem:[%s958_s19 + $0x120] sm:$0xff]  ;;  %v289_v46 = vld [vmem:[%s958_s19 + $0x128] sm:$0xff] }
  0x1f   : > { %356 = vmatpush.msra.mxu0 %v805_v14  ;;  %838 = vmatpush.msra.mxu2 %v805_v14  ;;  %v816_v49 = vld [vmem:[%s958_s19 + $0x298] sm:$0xff]  ;;  %v285_v50 = vld [vmem:[%s958_s19 + $0x108] sm:$0xff]  ;;  %v296_v51 = vld [vmem:[%s958_s19 + $0x160] sm:$0xff] }
  0x20   : > { %854 = vmatpush.msra.mxu3 %v806_v15  ;;  %397 = vmatpush.msra.mxu1 %v806_v15  ;;  %v286_v52 = vld [vmem:[%s958_s19 + $0x110] sm:$0xff]  ;;  %v813_v53 = vld [vmem:[%s958_s19 + $0x280] sm:$0xff]  ;;  %v293_v55 = vld [vmem:[%s958_s19 + $0x148] sm:$0xff] }
  0x21   : > { %357 = vmatpush.msra.mxu0 %v802_v16  ;;  %839 = vmatpush.msra.mxu2 %v802_v16  ;;  %v282_v54 = vld [vmem:[%s958_s19 + $0xf0] sm:$0xff]  ;;  %v283_v56 = vld [vmem:[%s958_s19 + $0xf8] sm:$0xff]  ;;  %v810_v57 = vld [vmem:[%s958_s19 + $0x268] sm:$0xff] }
  0x22   : > { %855 = vmatpush.msra.mxu3 %v803_v17  ;;  %398 = vmatpush.msra.mxu1 %v803_v17  ;;  %v279_v58 = vld [vmem:[%s958_s19 + $0xd8] sm:$0xff]  ;;  %v290_v59 = vld [vmem:[%s958_s19 + $0x130] sm:$0xff]  ;;  %v280_v60 = vld [vmem:[%s958_s19 + $0xe0] sm:$0xff] }
  0x23   : > { %358 = vmatpush.msra.mxu0 %v799_v18  ;;  %840 = vmatpush.msra.mxu2 %v799_v18  ;;  %v807_v61 = vld [vmem:[%s958_s19 + $0x250] sm:$0xff]  ;;  %v276_v62 = vld [vmem:[%s958_s19 + $0xc0] sm:$0xff]  ;;  %v287_v63 = vld [vmem:[%s958_s19 + $0x118] sm:$0xff] }
  0x24   : > { %856 = vmatpush.msra.mxu3 %v800_v19  ;;  %399 = vmatpush.msra.mxu1 %v800_v19  ;;  %v277_v0 = vld [vmem:[%s958_s19 + $0xc8] sm:$0xff]  ;;  %v1051_v1 = vld [vmem:[%s1236_s0 + $0x70] sm:$0xff]  ;;  %v804_v3 = vld [vmem:[%s958_s19 + $0x238] sm:$0xff] }
  0x25   : > { %359 = vmatpush.msra.mxu0 %v796_v20  ;;  %841 = vmatpush.msra.mxu2 %v796_v20  ;;  %v1057_v2 = vld [vmem:[%s1236_s0 + $0x50] sm:$0xff]  ;;  %v273_v4 = vld [vmem:[%s958_s19 + $0xa8] sm:$0xff]  ;;  %v284_v5 = vld [vmem:[%s958_s19 + $0x100] sm:$0xff] }
  0x26   : > { %857 = vmatpush.msra.mxu3 %v797_v21  ;;  %400 = vmatpush.msra.mxu1 %v797_v21  ;;  %v274_v6 = vld [vmem:[%s958_s19 + $0xb0] sm:$0xff]  ;;  %v801_v7 = vld [vmem:[%s958_s19 + $0x220] sm:$0xff]  ;;  %v281_v9 = vld [vmem:[%s958_s19 + $0xe8] sm:$0xff] }
  0x27   : > { %360 = vmatpush.msra.mxu0 %v793_v22  ;;  %842 = vmatpush.msra.mxu2 %v793_v22  ;;  %v270_v8 = vld [vmem:[%s958_s19 + $0x90] sm:$0xff]  ;;  %v271_v10 = vld [vmem:[%s958_s19 + $0x98] sm:$0xff]  ;;  %v798_v11 = vld [vmem:[%s958_s19 + $0x208] sm:$0xff] }
  0x28   : > { %858 = vmatpush.msra.mxu3 %v794_v23  ;;  %401 = vmatpush.msra.mxu1 %v794_v23  ;;  %v267_v12 = vld [vmem:[%s958_s19 + $0x78] sm:$0xff]  ;;  %v278_v13 = vld [vmem:[%s958_s19 + $0xd0] sm:$0xff]  ;;  %v268_v14 = vld [vmem:[%s958_s19 + $0x80] sm:$0xff] }
  0x29   : > { %361 = vmatpush.msra.mxu0 %v790_v24  ;;  %843 = vmatpush.msra.mxu2 %v790_v24  ;;  %v795_v15 = vld [vmem:[%s958_s19 + $0x1f0] sm:$0xff]  ;;  %v264_v16 = vld [vmem:[%s958_s19 + $0x60] sm:$0xff]  ;;  %v275_v17 = vld [vmem:[%s958_s19 + $0xb8] sm:$0xff] }
  0x2a   : > { %859 = vmatpush.msra.mxu3 %v791_v25  ;;  %402 = vmatpush.msra.mxu1 %v791_v25  ;;  %v265_v18 = vld [vmem:[%s958_s19 + $0x68] sm:$0xff]  ;;  %v1081_v19 = vld [vmem:[%s1236_s0 + $0x78] sm:$0xff]  ;;  %v272_v23 = vld [vmem:[%s958_s19 + $0xa0] sm:$0xff] }
  0x2b   : > { %362 = vmatpush.msra.mxu0 %v787_v26  ;;  %844 = vmatpush.msra.mxu2 %v787_v26  ;;  %v776_v20 = vld [vmem:[%s1236_s0 + $0x58] sm:$0xff]  ;;  %v261_v22 = vld [vmem:[%s958_s19 + $0x48] sm:$0xff]  ;;  %v262_v24 = vld [vmem:[%s958_s19 + $0x50] sm:$0xff] }
  0x2c   : > { %860 = vmatpush.msra.mxu3 %v788_v27  ;;  %403 = vmatpush.msra.mxu1 %v788_v27  ;;  %v792_v21 = vld [vmem:[%s958_s19 + $0x1d8] sm:$0xff]  ;;  %v789_v25 = vld [vmem:[%s958_s19 + $0x1c0] sm:$0xff]  ;;  %v258_v26 = vld [vmem:[%s958_s19 + $0x30] sm:$0xff] }
  0x2d   : > { %363 = vmatpush.msra.mxu0 %v784_v28  ;;  %845 = vmatpush.msra.mxu2 %v784_v28  ;;  %v269_v27 = vld [vmem:[%s958_s19 + $0x88] sm:$0xff]  ;;  %v259_v28 = vld [vmem:[%s958_s19 + $0x38] sm:$0xff] }
  0x2e   : > { %861 = vmatpush.msra.mxu3 %v785_v29  ;;  %404 = vmatpush.msra.mxu1 %v785_v29  ;;  %v786_v29 = vld [vmem:[%s958_s19 + $0x1a8] sm:$0xff] }
  0x2f   : > { %364 = vmatpush.msra.mxu0 %v781_v30  ;;  %846 = vmatpush.msra.mxu2 %v781_v30  ;;  %v255_v30 = vld [vmem:[%s958_s19 + $0x18] sm:$0xff] }
  0x30   : > { %862 = vmatpush.msra.mxu3 %v782_v31  ;;  %365 = vmatmul.f32.vlgmr.msra.gmra.mxu0 %v995_v32 }
  0x31   : > { %377 = vmatmul.f32.vlgmr.msra.gmra.mxu2 %v1000_v33  ;;  %418 = vmatmul.f32.vlgmr.msra.gmra.mxu3 %v1000_v33 }
  0x32   : > { %431 = vmatpush.msrb.mxu2 %v828_v34  ;;  %472 = vmatpush.msrb.mxu3 %v297_v35  ;;  %v256_v34 = vld [vmem:[%s958_s19 + $0x20] sm:$0xff]  ;;  %v783_v35 = vld [vmem:[%s958_s19 + $0x190] sm:$0xff] }
  0x33   : > { %513 = vmatpush.msrb.mxu0 %v298_v36  ;;  %405 = vmatpush.msra.mxu1 %v782_v31  ;;  %v266_v31 = vld [vmem:[%s958_s19 + $0x70] sm:$0xff]  ;;  %v252_v36 = vld [vmem:[%s958_s19] sm:$0xff] }
  0x34   : > { %432 = vmatpush.msrb.mxu2 %v825_v37  ;;  %473 = vmatpush.msrb.mxu3 %v294_v38  ;;  %v263_v37 = vld [vmem:[%s958_s19 + $0x58] sm:$0xff]  ;;  %v253_v38 = vld [vmem:[%s958_s19 + $0x8] sm:$0xff] }
  0x35   : > { %514 = vmatpush.msrb.mxu0 %v295_v39  ;;  %406 = vmatmul.f32.vlgmr.msra.gmra.mxu1 %v995_v32  ;;  %v235_v39 = vld [vmem:[%s1236_s0] sm:$0xff] }
  0x36   : > { %433 = vmatpush.msrb.mxu2 %v822_v40  ;;  %474 = vmatpush.msrb.mxu3 %v291_v41  ;;  %v260_v40 = vld [vmem:[%s958_s19 + $0x40] sm:$0xff]  ;;  %v257_v41 = vld [vmem:[%s958_s19 + $0x28] sm:$0xff] }
  0x37   : > { %515 = vmatpush.msrb.mxu0 %v292_v42  ;;  %554 = vmatpush.msrb.mxu1 %v299_v43  ;;  %v254_v42 = vld [vmem:[%s958_s19 + $0x10] sm:$0xff]  ;;  %v236_v43 = vld [vmem:[%s1236_s0 + $0x8] sm:$0xff] }
  0x38   : > { %434 = vmatpush.msrb.mxu2 %v819_v44  ;;  %475 = vmatpush.msrb.mxu3 %v288_v45  ;;  %v238_v44 = vld [vmem:[%s1236_s0 + $0x18] sm:$0xff]  ;;  %v239_v45 = vld [vmem:[%s1236_s0 + $0x20] sm:$0xff] }
  0x39   : > { %516 = vmatpush.msrb.mxu0 %v289_v46  ;;  %380 = vmatmul.f32.gmra.mxu2 %v1022_v47  ;;  %v240_v46 = vld [vmem:[%s1236_s0 + $0x28] sm:$0xff] }
  0x3a   : > { %368 = vmatmul.f32.gmra.mxu0 %v1027_v48  ;;  %421 = vmatmul.f32.gmra.mxu3 %v1022_v47 }
  0x3b   : > { %435 = vmatpush.msrb.mxu2 %v816_v49  ;;  %476 = vmatpush.msrb.mxu3 %v285_v50 }
  0x3c   : > { %555 = vmatpush.msrb.mxu1 %v296_v51  ;;  %517 = vmatpush.msrb.mxu0 %v286_v52 }
  0x3d   : > { %436 = vmatpush.msrb.mxu2 %v813_v53  ;;  %477 = vmatpush.msrb.mxu3 %v282_v54 }
  0x3e   : > { %556 = vmatpush.msrb.mxu1 %v293_v55  ;;  %518 = vmatpush.msrb.mxu0 %v283_v56 }
  0x3f   : > { %437 = vmatpush.msrb.mxu2 %v810_v57  ;;  %478 = vmatpush.msrb.mxu3 %v279_v58 }
  0x40   : > { %557 = vmatpush.msrb.mxu1 %v290_v59  ;;  %519 = vmatpush.msrb.mxu0 %v280_v60 }
  0x41   : > { %409 = vmatmul.f32.gmra.mxu1 %v1027_v48  ;;  %438 = vmatpush.msrb.mxu2 %v807_v61 }
  0x42   : > { %479 = vmatpush.msrb.mxu3 %v276_v62  ;;  %558 = vmatpush.msrb.mxu1 %v287_v63  ;;  %v595_v63 = vld [vmem:[%s223_s5] sm:$0x7] }
  0x43   : > { %520 = vmatpush.msrb.mxu0 %v277_v0  ;;  %383 = vmatmul.f32.gmra.mxu2 %v1051_v1 }
  0x44   : > { %371 = vmatmul.f32.gmra.mxu0 %v1057_v2  ;;  %424 = vmatmul.f32.gmra.mxu3 %v1051_v1 }
  0x45   : > { %439 = vmatpush.msrb.mxu2 %v804_v3  ;;  %480 = vmatpush.msrb.mxu3 %v273_v4 }
  0x46   : > { %559 = vmatpush.msrb.mxu1 %v284_v5  ;;  %521 = vmatpush.msrb.mxu0 %v274_v6  ;;  %v1169_v6 = vperm.slane %v595_v63, 0 }
  0x47   : > { %440 = vmatpush.msrb.mxu2 %v801_v7  ;;  %481 = vmatpush.msrb.mxu3 %v270_v8  ;;  %v1171_v7 = vperm.slane %v595_v63, 2 }
  0x48   : > { %560 = vmatpush.msrb.mxu1 %v281_v9  ;;  %522 = vmatpush.msrb.mxu0 %v271_v10 }
  0x49   : > { %441 = vmatpush.msrb.mxu2 %v798_v11  ;;  %482 = vmatpush.msrb.mxu3 %v267_v12 }
  0x4a   : > { %561 = vmatpush.msrb.mxu1 %v278_v13  ;;  %523 = vmatpush.msrb.mxu0 %v268_v14 }
  0x4b   : > { %412 = vmatmul.f32.gmra.mxu1 %v1057_v2  ;;  %442 = vmatpush.msrb.mxu2 %v795_v15 }
  0x4c   : > { %483 = vmatpush.msrb.mxu3 %v264_v16  ;;  %562 = vmatpush.msrb.mxu1 %v275_v17 }
  0x4d   : > { %524 = vmatpush.msrb.mxu0 %v265_v18  ;;  %386 = vmatmul.f32.gmra.mxu2 %v1081_v19 }
  0x4e   : > { %374 = vmatmul.f32.gmra.mxu0 %v776_v20  ;;  %427 = vmatmul.f32.gmra.mxu3 %v1081_v19 }
  0x4f   : > { %443 = vmatpush.msrb.mxu2 %v792_v21  ;;  %484 = vmatpush.msrb.mxu3 %v261_v22 }
  0x50   : > { %563 = vmatpush.msrb.mxu1 %v272_v23  ;;  %525 = vmatpush.msrb.mxu0 %v262_v24 }
  0x51   : > { %444 = vmatpush.msrb.mxu2 %v789_v25  ;;  %485 = vmatpush.msrb.mxu3 %v258_v26 }
  0x52   : > { %564 = vmatpush.msrb.mxu1 %v269_v27  ;;  %526 = vmatpush.msrb.mxu0 %v259_v28 }
  0x53   : > { %445 = vmatpush.msrb.mxu2 %v786_v29  ;;  %486 = vmatpush.msrb.mxu3 %v255_v30 }
  0x54   : > { %565 = vmatpush.msrb.mxu1 %v266_v31  ;;  %527 = vmatpush.msrb.mxu0 %v256_v34 }
  0x55   : > { %415 = vmatmul.f32.gmra.mxu1 %v776_v20  ;;  %446 = vmatpush.msrb.mxu2 %v783_v35 }
  0x56   : > { %487 = vmatpush.msrb.mxu3 %v252_v36  ;;  %566 = vmatpush.msrb.mxu1 %v263_v37 }
  0x57   : > { %528 = vmatpush.msrb.mxu0 %v253_v38  ;;  %447 = vmatmul.f32.vlgmr.msrb.gmra.mxu2 %v995_v32  ;;  %v237_v32 = vld [vmem:[%s1236_s0 + $0x10] sm:$0xff] }
  0x58   : > { %488 = vmatmul.f32.vlgmr.msrb.gmra.mxu3 %v235_v39  ;;  %529 = vmatmul.f32.vlgmr.msrb.gmra.mxu0 %v235_v39 }
  0x59   : > { %567 = vmatpush.msrb.mxu1 %v260_v40 }
  0x5b   : > { %568 = vmatpush.msrb.mxu1 %v257_v41 }
  0x5d   : > { %569 = vmatpush.msrb.mxu1 %v254_v42 }
  0x5e   : > { %570 = vmatmul.f32.vlgmr.msrb.gmra.mxu1 %v235_v39 }
  0x5f   : > { %450 = vmatmul.f32.gmra.mxu2 %v1027_v48  ;;  %v241_v48 = vld [vmem:[%s1236_s0 + $0x30] sm:$0xff] }
  0x60   : > { %491 = vmatmul.f32.gmra.mxu3 %v236_v43  ;;  %532 = vmatmul.f32.gmra.mxu0 %v236_v43 }
  0x66   : > { %573 = vmatmul.f32.gmra.mxu1 %v236_v43 }
  0x67   : > { %453 = vmatmul.f32.gmra.mxu2 %v1057_v2 }
  0x68   : > { %494 = vmatmul.f32.gmra.mxu3 %v237_v32  ;;  %535 = vmatmul.f32.gmra.mxu0 %v237_v32 }
  0x6e   : > { %576 = vmatmul.f32.gmra.mxu1 %v237_v32 }
  0x6f   : > { %456 = vmatmul.f32.gmra.mxu2 %v776_v20 }
  0x70   : > { %497 = vmatmul.f32.gmra.mxu3 %v238_v44  ;;  %538 = vmatmul.f32.gmra.mxu0 %v238_v44 }
  0x76   : > { %579 = vmatmul.f32.gmra.mxu1 %v238_v44 }
  0x77   : > { %459 = vmatmul.f32.gmra.mxu2 %v1000_v33  ;;  %v242_v33 = vld [vmem:[%s1236_s0 + $0x38] sm:$0xff] }
  0x78   : > { %500 = vmatmul.f32.gmra.mxu3 %v239_v45  ;;  %541 = vmatmul.f32.gmra.mxu0 %v239_v45 }
  0x7e   : > { %582 = vmatmul.f32.gmra.mxu1 %v239_v45 }
  0x7f   : > { %462 = vmatmul.f32.gmra.mxu2 %v1022_v47 }
  0x80   : > { %503 = vmatmul.f32.gmra.mxu3 %v240_v46  ;;  %544 = vmatmul.f32.gmra.mxu0 %v240_v46 }
  0x86   : > { %585 = vmatmul.f32.gmra.mxu1 %v240_v46 }
  0x87   : > { %465 = vmatmul.f32.gmra.mxu2 %v1051_v1  ;;  %v1160_v1 = vperm.slane %v595_v63, 1 }
  0x88   : > { %506 = vmatmul.f32.gmra.mxu3 %v241_v48  ;;  %547 = vmatmul.f32.gmra.mxu0 %v241_v48 }
  0x8e   : > { %588 = vmatmul.f32.gmra.mxu1 %v241_v48 }
  0x8f   : > { %468 = vmatmul.f32.gmra.mxu2 %v1081_v19 }
  0x90   : > { %509 = vmatmul.f32.gmra.mxu3 %v242_v33  ;;  %550 = vmatmul.f32.gmra.mxu0 %v242_v33 }
  0x96   : > { %591 = vmatmul.f32.gmra.mxu1 %v242_v33 }
  0xad   : > { %v366_v47 = vpop.f32.mrf.mxu0 }
  0xb2   : > { %v407_v49 = vpop.f32.mrf.mxu1 }
  0xb4   : > { %v1139_v50 = vpop.f32.mrf.mxu2  ;;  %v1141_v51 = vpop.f32.mrf.mxu3 }
  0xb7   : > { %v369_v52 = vpop.f32.mrf.mxu0 }
  0xbc   : > { %v1143_v53 = vpop.f32.mrf.mxu2 }
  0xbd   : > { %v1145_v54 = vpop.f32.mrf.mxu3 }
  0xbe   : > { %v410_v55 = vpop.f32.mrf.mxu1 }
  0xc1   : > { %v372_v56 = vpop.f32.mrf.mxu0 }
  0xc6   : > { %v1147_v57 = vpop.f32.mrf.mxu2 }
  0xc7   : > { %v1149_v58 = vpop.f32.mrf.mxu3 }
  0xc8   : > { %v413_v59 = vpop.f32.mrf.mxu1 }
  0xcb   : > { %v375_v60 = vpop.f32.mrf.mxu0 }
  0xd0   : > { %v1155_v61 = vpop.f32.mrf.mxu2 }
  0xd1   : > { %v1157_v62 = vpop.f32.mrf.mxu3 }
  0xd2   : > { %v416_v0 = vpop.f32.mrf.mxu1 }
  0xd5   : > { %v530_v2 = vpop.f32.mrf.mxu0 }
  0xd6   : > { %v531_v3 = vadd.f32 %v530_v2, %v407_v49 }
  0xd8   : > { %v604_v4 = vadd.f32 %v1160_v1, %v531_v3 }
  0xda   : > { %628 = vst [vmem:[%s1165_s9 + $0x8] sm:$0xff] %v604_v4  ;;  %v448_v5 = vpop.f32.mrf.mxu2 }
  0xdb   : > { %v489_v8 = vpop.f32.mrf.mxu3  ;;  %v571_v9 = vpop.f32.mrf.mxu1 }
  0xdc   : > { %v490_v10 = vadd.f32 %v489_v8, %v366_v47  ;;  %v572_v11 = vadd.f32 %v571_v9, %v448_v5 }
  0xdd   : > { %v533_v12 = vpop.f32.mrf.mxu0 }
  0xde   : > { %v603_v13 = vadd.f32 %v1169_v6, %v490_v10  ;;  %v605_v14 = vadd.f32 %v1171_v7, %v572_v11  ;;  %v534_v15 = vadd.f32 %v533_v12, %v410_v55 }
  0xe0   : > { %627 = vst [vmem:[%s1165_s9] sm:$0xff] %v603_v13  ;;  %v607_v16 = vadd.f32 %v1160_v1, %v534_v15 }
  0xe1   : > { %629 = vst [vmem:[%s1165_s9 + $0x10] sm:$0xff] %v605_v14 }
  0xe2   : > { %631 = vst [vmem:[%s1165_s9 + $0x20] sm:$0xff] %v607_v16  ;;  %v451_v17 = vpop.f32.mrf.mxu2 }
  0xe3   : > { %v492_v18 = vpop.f32.mrf.mxu3  ;;  %v574_v19 = vpop.f32.mrf.mxu1 }
  0xe4   : > { %v493_v20 = vadd.f32 %v492_v18, %v369_v52  ;;  %v575_v21 = vadd.f32 %v574_v19, %v451_v17 }
  0xe5   : > { %v536_v22 = vpop.f32.mrf.mxu0 }
  0xe6   : > { %v606_v23 = vadd.f32 %v1169_v6, %v493_v20  ;;  %v608_v24 = vadd.f32 %v1171_v7, %v575_v21  ;;  %v537_v25 = vadd.f32 %v536_v22, %v413_v59 }
  0xe8   : > { %630 = vst [vmem:[%s1165_s9 + $0x18] sm:$0xff] %v606_v23  ;;  %v610_v26 = vadd.f32 %v1160_v1, %v537_v25 }
  0xe9   : > { %632 = vst [vmem:[%s1165_s9 + $0x28] sm:$0xff] %v608_v24 }
  0xea   : > { %634 = vst [vmem:[%s1165_s9 + $0x38] sm:$0xff] %v610_v26  ;;  %v454_v27 = vpop.f32.mrf.mxu2 }
  0xeb   : > { %v495_v28 = vpop.f32.mrf.mxu3  ;;  %v577_v29 = vpop.f32.mrf.mxu1 }
  0xec   : > { %v496_v30 = vadd.f32 %v495_v28, %v372_v56  ;;  %v578_v31 = vadd.f32 %v577_v29, %v454_v27 }
  0xed   : > { %v539_v34 = vpop.f32.mrf.mxu0 }
  0xee   : > { %v609_v35 = vadd.f32 %v1169_v6, %v496_v30  ;;  %v611_v36 = vadd.f32 %v1171_v7, %v578_v31  ;;  %v540_v37 = vadd.f32 %v539_v34, %v416_v0 }
  0xf0   : > { %633 = vst [vmem:[%s1165_s9 + $0x30] sm:$0xff] %v609_v35  ;;  %v613_v38 = vadd.f32 %v1160_v1, %v540_v37 }
  0xf1   : > { %635 = vst [vmem:[%s1165_s9 + $0x40] sm:$0xff] %v611_v36 }
  0xf2   : > { %637 = vst [vmem:[%s1165_s9 + $0x50] sm:$0xff] %v613_v38  ;;  %v457_v39 = vpop.f32.mrf.mxu2 }
  0xf3   : > { %v498_v40 = vpop.f32.mrf.mxu3  ;;  %v580_v41 = vpop.f32.mrf.mxu1 }
  0xf4   : > { %v499_v42 = vadd.f32 %v498_v40, %v375_v60  ;;  %v581_v43 = vadd.f32 %v580_v41, %v457_v39 }
  0xf5   : > { %v542_v32 = vpop.f32.mrf.mxu0 }
  0xf6   : > { %v612_v44 = vadd.f32 %v1169_v6, %v499_v42  ;;  %v614_v45 = vadd.f32 %v1171_v7, %v581_v43  ;;  %v543_v46 = vadd.f32 %v542_v32, %v1141_v51 }
  0xf8   : > { %636 = vst [vmem:[%s1165_s9 + $0x48] sm:$0xff] %v612_v44  ;;  %v616_v48 = vadd.f32 %v1160_v1, %v543_v46 }
  0xf9   : > { %638 = vst [vmem:[%s1165_s9 + $0x58] sm:$0xff] %v614_v45 }
  0xfa   : > { %640 = vst [vmem:[%s1165_s9 + $0x68] sm:$0xff] %v616_v48  ;;  %v460_v33 = vpop.f32.mrf.mxu2 }
  0xfb   : > { %v501_v47 = vpop.f32.mrf.mxu3  ;;  %v583_v49 = vpop.f32.mrf.mxu1 }
  0xfc   : > { %v502_v52 = vadd.f32 %v501_v47, %v1139_v50  ;;  %v584_v55 = vadd.f32 %v583_v49, %v460_v33 }
  0xfd   : > { %v545_v56 = vpop.f32.mrf.mxu0 }
  0xfe   : > { %v615_v59 = vadd.f32 %v1169_v6, %v502_v52  ;;  %v617_v60 = vadd.f32 %v1171_v7, %v584_v55  ;;  %v546_v51 = vadd.f32 %v545_v56, %v1145_v54 }
 0x100   : > { %639 = vst [vmem:[%s1165_s9 + $0x60] sm:$0xff] %v615_v59  ;;  %v619_v63 = vadd.f32 %v1160_v1, %v546_v51 }
 0x101   : > { %641 = vst [vmem:[%s1165_s9 + $0x70] sm:$0xff] %v617_v60 }
 0x102   : > { %643 = vst [vmem:[%s1165_s9 + $0x80] sm:$0xff] %v619_v63  ;;  %v463_v0 = vpop.f32.mrf.mxu2 }
 0x103   : > { %v504_v2 = vpop.f32.mrf.mxu3  ;;  %v586_v3 = vpop.f32.mrf.mxu1 }
 0x104   : > { %v505_v50 = vadd.f32 %v504_v2, %v1143_v53  ;;  %v587_v4 = vadd.f32 %v586_v3, %v463_v0 }
 0x105   : > { %v548_v5 = vpop.f32.mrf.mxu0 }
 0x106   : > { %v618_v8 = vadd.f32 %v1169_v6, %v505_v50  ;;  %v620_v9 = vadd.f32 %v1171_v7, %v587_v4  ;;  %v549_v54 = vadd.f32 %v548_v5, %v1149_v58 }
 0x108   : > { %642 = vst [vmem:[%s1165_s9 + $0x78] sm:$0xff] %v618_v8  ;;  %v622_v10 = vadd.f32 %v1160_v1, %v549_v54 }
 0x109   : > { %644 = vst [vmem:[%s1165_s9 + $0x88] sm:$0xff] %v620_v9 }
 0x10a   : > { %646 = vst [vmem:[%s1165_s9 + $0x98] sm:$0xff] %v622_v10  ;;  %v466_v11 = vpop.f32.mrf.mxu2 }
 0x10b   : > { %v507_v12 = vpop.f32.mrf.mxu3  ;;  %v589_v13 = vpop.f32.mrf.mxu1 }
 0x10c   : > { %v508_v53 = vadd.f32 %v507_v12, %v1147_v57  ;;  %v590_v14 = vadd.f32 %v589_v13, %v466_v11 }
 0x10d   : > { %v551_v15 = vpop.f32.mrf.mxu0 }
 0x10e   : > { %v621_v16 = vadd.f32 %v1169_v6, %v508_v53  ;;  %v623_v58 = vadd.f32 %v1171_v7, %v590_v14  ;;  %v552_v17 = vadd.f32 %v551_v15, %v1157_v62 }
 0x110   : > { %645 = vst [vmem:[%s1165_s9 + $0x90] sm:$0xff] %v621_v16  ;;  %v625_v18 = vadd.f32 %v1160_v1, %v552_v17 }
 0x111   : > { %647 = vst [vmem:[%s1165_s9 + $0xa0] sm:$0xff] %v623_v58 }
 0x112   : > { %649 = vst [vmem:[%s1165_s9 + $0xb0] sm:$0xff] %v625_v18  ;;  %v469_v19 = vpop.f32.mrf.mxu2 }
 0x113   : > { %v510_v20 = vpop.f32.mrf.mxu3  ;;  %v592_v21 = vpop.f32.mrf.mxu1 }
 0x114   : > { %v511_v57 = vadd.f32 %v510_v20, %v1155_v61  ;;  %v593_v22 = vadd.f32 %v592_v21, %v469_v19 }
 0x116   : > { %v624_v23 = vadd.f32 %v1169_v6, %v511_v57  ;;  %v626_v24 = vadd.f32 %v1171_v7, %v593_v22 }
 0x118   : > { %648 = vst [vmem:[%s1165_s9 + $0xa8] sm:$0xff] %v624_v23 }
 0x119   : > { %650 = vst [vmem:[%s1165_s9 + $0xb8] sm:$0xff] %v626_v24 }
 0x11a PF: > { %s13_s14 = sadd.s32 1, %s912_s14   ;;  %s1240_s12 = smov %s908_s13 }
 0x11b   : > { %p10_p5 = scmp.ge.s32.totalorder %s13_s14, 4   ;;  %s1241_s13 = smov %s1243_s15 }
 0x11d   :  { %12 = sbr.rel (!%p10_p5) target bundleno = 2 (0x2), region = 70 }

// kernel: _encoder_impl.9
= control target key start
LH: loop header
LB: loop body
LE: loop exit
PB: predicated region body
PF: predicated region fallthrough
CT: control target
= control target key end

     0   :  { %s418_s1 = inlined_call_operand.vmem [shape: f32[2,128,128], index: 1, kind: input, shape index: {}]   ;;  %s419_s0 = inlined_call_operand.vmem [shape: f32[2,8,8,128], index: 0, kind: input, shape index: {}]   ;;  %s420_s2 = inlined_call_operand.vmem [shape: f32[1,128], index: 2, kind: input, shape index: {}]   ;;  %s421_s3 = inlined_call_operand.vmem [shape: f32[8,8,128], index: 3, kind: output, shape index: {}]  }
   0x1   :  { %v193_v0 = vld [vmem:[%s418_s1 + $0xf8] sm:$0xff]  ;;  %v192_v2 = vld [vmem:[%s418_s1 + $0xf0] sm:$0xff]  ;;  %v191_v4 = vld [vmem:[%s418_s1 + $0xe8] sm:$0xff] }
   0x2   :  { %v46_v1 = vld [vmem:[%s418_s1 + $0x78] sm:$0xff]  ;;  %194 = vmatpush.msra.mxu2 %v193_v0  ;;  %v45_v3 = vld [vmem:[%s418_s1 + $0x70] sm:$0xff]  ;;  %v44_v5 = vld [vmem:[%s418_s1 + $0x68] sm:$0xff]  ;;  %64 = vmatpush.msra.mxu0 %v193_v0 }
   0x3   :  { %210 = vmatpush.msra.mxu3 %v46_v1  ;;  %105 = vmatpush.msra.mxu1 %v46_v1  ;;  %v190_v6 = vld [vmem:[%s418_s1 + $0xe0] sm:$0xff]  ;;  %v189_v8 = vld [vmem:[%s418_s1 + $0xd8] sm:$0xff]  ;;  %v188_v10 = vld [vmem:[%s418_s1 + $0xd0] sm:$0xff] }
   0x4   :  { %195 = vmatpush.msra.mxu2 %v192_v2  ;;  %v43_v7 = vld [vmem:[%s418_s1 + $0x60] sm:$0xff]  ;;  %65 = vmatpush.msra.mxu0 %v192_v2  ;;  %v42_v9 = vld [vmem:[%s418_s1 + $0x58] sm:$0xff]  ;;  %v41_v11 = vld [vmem:[%s418_s1 + $0x50] sm:$0xff] }
   0x5   :  { %211 = vmatpush.msra.mxu3 %v45_v3  ;;  %106 = vmatpush.msra.mxu1 %v45_v3  ;;  %v187_v12 = vld [vmem:[%s418_s1 + $0xc8] sm:$0xff]  ;;  %v186_v14 = vld [vmem:[%s418_s1 + $0xc0] sm:$0xff]  ;;  %v185_v16 = vld [vmem:[%s418_s1 + $0xb8] sm:$0xff] }
   0x6   :  { %196 = vmatpush.msra.mxu2 %v191_v4  ;;  %66 = vmatpush.msra.mxu0 %v191_v4  ;;  %v40_v13 = vld [vmem:[%s418_s1 + $0x48] sm:$0xff]  ;;  %v39_v15 = vld [vmem:[%s418_s1 + $0x40] sm:$0xff]  ;;  %v38_v17 = vld [vmem:[%s418_s1 + $0x38] sm:$0xff] }
   0x7   :  { %212 = vmatpush.msra.mxu3 %v44_v5  ;;  %107 = vmatpush.msra.mxu1 %v44_v5  ;;  %v184_v18 = vld [vmem:[%s418_s1 + $0xb0] sm:$0xff]  ;;  %v183_v20 = vld [vmem:[%s418_s1 + $0xa8] sm:$0xff]  ;;  %v182_v22 = vld [vmem:[%s418_s1 + $0xa0] sm:$0xff] }
   0x8   :  { %197 = vmatpush.msra.mxu2 %v190_v6  ;;  %67 = vmatpush.msra.mxu0 %v190_v6  ;;  %v37_v19 = vld [vmem:[%s418_s1 + $0x30] sm:$0xff]  ;;  %v36_v21 = vld [vmem:[%s418_s1 + $0x28] sm:$0xff]  ;;  %v35_v23 = vld [vmem:[%s418_s1 + $0x20] sm:$0xff] }
   0x9   :  { %213 = vmatpush.msra.mxu3 %v43_v7  ;;  %108 = vmatpush.msra.mxu1 %v43_v7  ;;  %v181_v24 = vld [vmem:[%s418_s1 + $0x98] sm:$0xff]  ;;  %v180_v26 = vld [vmem:[%s418_s1 + $0x90] sm:$0xff]  ;;  %v179_v28 = vld [vmem:[%s418_s1 + $0x88] sm:$0xff] }
   0xa   :  { %198 = vmatpush.msra.mxu2 %v189_v8  ;;  %68 = vmatpush.msra.mxu0 %v189_v8  ;;  %v34_v25 = vld [vmem:[%s418_s1 + $0x18] sm:$0xff]  ;;  %v33_v27 = vld [vmem:[%s418_s1 + $0x10] sm:$0xff]  ;;  %v32_v29 = vld [vmem:[%s418_s1 + $0x8] sm:$0xff] }
   0xb   :  { %214 = vmatpush.msra.mxu3 %v42_v9  ;;  %109 = vmatpush.msra.mxu1 %v42_v9  ;;  %v178_v30 = vld [vmem:[%s418_s1 + $0x80] sm:$0xff]  ;;  %v175_v36 = vld [vmem:[%s419_s0 + $0x68] sm:$0xff]  ;;  %v176_v40 = vld [vmem:[%s419_s0 + $0x70] sm:$0xff] }
   0xc   :  { %199 = vmatpush.msra.mxu2 %v188_v10  ;;  %69 = vmatpush.msra.mxu0 %v188_v10  ;;  %v31_v31 = vld [vmem:[%s418_s1] sm:$0xff]  ;;  %v19_v37 = vld [vmem:[%s419_s0 + $0x28] sm:$0xff]  ;;  %v20_v41 = vld [vmem:[%s419_s0 + $0x30] sm:$0xff] }
   0xd   :  { %215 = vmatpush.msra.mxu3 %v41_v11  ;;  %110 = vmatpush.msra.mxu1 %v41_v11  ;;  %v174_v32 = vld [vmem:[%s419_s0 + $0x60] sm:$0xff]  ;;  %v171_v38 = vld [vmem:[%s419_s0 + $0x48] sm:$0xff]  ;;  %v172_v42 = vld [vmem:[%s419_s0 + $0x50] sm:$0xff] }
   0xe   :  { %200 = vmatpush.msra.mxu2 %v187_v12  ;;  %70 = vmatpush.msra.mxu0 %v187_v12  ;;  %v18_v33 = vld [vmem:[%s419_s0 + $0x20] sm:$0xff]  ;;  %v15_v39 = vld [vmem:[%s419_s0 + $0x8] sm:$0xff]  ;;  %v16_v43 = vld [vmem:[%s419_s0 + $0x10] sm:$0xff] }
   0xf   :  { %216 = vmatpush.msra.mxu3 %v40_v13  ;;  %111 = vmatpush.msra.mxu1 %v40_v13  ;;  %v170_v34 = vld [vmem:[%s419_s0 + $0x40] sm:$0xff]  ;;  %v177_v44 = vld [vmem:[%s419_s0 + $0x78] sm:$0xff] }
  0x10   :  { %201 = vmatpush.msra.mxu2 %v186_v14  ;;  %71 = vmatpush.msra.mxu0 %v186_v14  ;;  %v14_v35 = vld [vmem:[%s419_s0] sm:$0xff]  ;;  %v21_v45 = vld [vmem:[%s419_s0 + $0x38] sm:$0xff] }
  0x11   :  { %217 = vmatpush.msra.mxu3 %v39_v15  ;;  %112 = vmatpush.msra.mxu1 %v39_v15  ;;  %v173_v46 = vld [vmem:[%s419_s0 + $0x58] sm:$0xff]  ;;  %v226_v48 = vld [vmem:[%s420_s2] ss:$0 sm:$0xff] }
  0x12   :  { %202 = vmatpush.msra.mxu2 %v185_v16  ;;  %72 = vmatpush.msra.mxu0 %v185_v16  ;;  %v17_v47 = vld [vmem:[%s419_s0 + $0x18] sm:$0xff] }
  0x13   :  { %218 = vmatpush.msra.mxu3 %v38_v17  ;;  %113 = vmatpush.msra.mxu1 %v38_v17 }
  0x14   :  { %203 = vmatpush.msra.mxu2 %v184_v18  ;;  %73 = vmatpush.msra.mxu0 %v184_v18 }
  0x15   :  { %219 = vmatpush.msra.mxu3 %v37_v19  ;;  %114 = vmatpush.msra.mxu1 %v37_v19 }
  0x16   :  { %204 = vmatpush.msra.mxu2 %v183_v20  ;;  %74 = vmatpush.msra.mxu0 %v183_v20 }
  0x17   :  { %220 = vmatpush.msra.mxu3 %v36_v21  ;;  %115 = vmatpush.msra.mxu1 %v36_v21 }
  0x18   :  { %205 = vmatpush.msra.mxu2 %v182_v22  ;;  %75 = vmatpush.msra.mxu0 %v182_v22 }
  0x19   :  { %221 = vmatpush.msra.mxu3 %v35_v23  ;;  %116 = vmatpush.msra.mxu1 %v35_v23 }
  0x1a   :  { %206 = vmatpush.msra.mxu2 %v181_v24  ;;  %76 = vmatpush.msra.mxu0 %v181_v24 }
  0x1b   :  { %222 = vmatpush.msra.mxu3 %v34_v25  ;;  %117 = vmatpush.msra.mxu1 %v34_v25 }
  0x1c   :  { %207 = vmatpush.msra.mxu2 %v180_v26  ;;  %77 = vmatpush.msra.mxu0 %v180_v26 }
  0x1d   :  { %223 = vmatpush.msra.mxu3 %v33_v27  ;;  %118 = vmatpush.msra.mxu1 %v33_v27 }
  0x1e   :  { %208 = vmatpush.msra.mxu2 %v179_v28  ;;  %78 = vmatpush.msra.mxu0 %v179_v28 }
  0x1f   :  { %224 = vmatpush.msra.mxu3 %v32_v29  ;;  %119 = vmatpush.msra.mxu1 %v32_v29 }
  0x20   :  { %209 = vmatpush.msra.mxu2 %v178_v30  ;;  %79 = vmatpush.msra.mxu0 %v178_v30 }
  0x21   :  { %225 = vmatpush.msra.mxu3 %v31_v31  ;;  %92 = vmatmul.f32.vlgmr.msra.gmra.mxu2 %v174_v32 }
  0x22   :  { %133 = vmatmul.f32.vlgmr.msra.gmra.mxu3 %v18_v33  ;;  %120 = vmatpush.msra.mxu1 %v31_v31 }
  0x23   :  { %80 = vmatmul.f32.vlgmr.msra.gmra.mxu0 %v170_v34  ;;  %121 = vmatmul.f32.vlgmr.msra.gmra.mxu1 %v14_v35 }
  0x29   :  { %95 = vmatmul.f32.gmra.mxu2 %v175_v36 }
  0x2a   :  { %136 = vmatmul.f32.gmra.mxu3 %v19_v37 }
  0x2b   :  { %83 = vmatmul.f32.gmra.mxu0 %v171_v38  ;;  %124 = vmatmul.f32.gmra.mxu1 %v15_v39 }
  0x31   :  { %98 = vmatmul.f32.gmra.mxu2 %v176_v40 }
  0x32   :  { %139 = vmatmul.f32.gmra.mxu3 %v20_v41 }
  0x33   :  { %86 = vmatmul.f32.gmra.mxu0 %v172_v42  ;;  %127 = vmatmul.f32.gmra.mxu1 %v16_v43 }
  0x39   :  { %101 = vmatmul.f32.gmra.mxu2 %v177_v44 }
  0x3a   :  { %142 = vmatmul.f32.gmra.mxu3 %v21_v45 }
  0x3b   :  { %89 = vmatmul.f32.gmra.mxu0 %v173_v46  ;;  %130 = vmatmul.f32.gmra.mxu1 %v17_v47 }
  0xa0   :  { %v81_v49 = vpop.f32.mrf.mxu0  ;;  %v122_v50 = vpop.f32.mrf.mxu1 }
  0xa1   :  { %v123_v51 = vadd.f32 %v122_v50, %v81_v49 }
  0xa3   :  { %v150_v52 = vadd.f32 %v226_v48, %v123_v51 }
  0xa4   :  { %v93_v53 = vpop.f32.mrf.mxu2 }
  0xa5   :  { %v134_v54 = vpop.f32.mrf.mxu3  ;;  %158 = vst [vmem:[%s421_s3] sm:$0xff] %v150_v52 }
  0xa6   :  { %v135_v55 = vadd.f32 %v134_v54, %v93_v53 }
  0xa8   :  { %v154_v56 = vadd.f32 %v226_v48, %v135_v55  ;;  %v84_v57 = vpop.f32.mrf.mxu0  ;;  %v125_v58 = vpop.f32.mrf.mxu1 }
  0xa9   :  { %v126_v59 = vadd.f32 %v125_v58, %v84_v57 }
  0xaa   :  { %162 = vst [vmem:[%s421_s3 + $0x20] sm:$0xff] %v154_v56 }
  0xab   :  { %v151_v60 = vadd.f32 %v226_v48, %v126_v59 }
  0xac   :  { %v96_v61 = vpop.f32.mrf.mxu2 }
  0xad   :  { %v137_v62 = vpop.f32.mrf.mxu3  ;;  %159 = vst [vmem:[%s421_s3 + $0x8] sm:$0xff] %v151_v60 }
  0xae   :  { %v138_v63 = vadd.f32 %v137_v62, %v96_v61 }
  0xb0   :  { %v155_v0 = vadd.f32 %v226_v48, %v138_v63  ;;  %v87_v1 = vpop.f32.mrf.mxu0  ;;  %v128_v2 = vpop.f32.mrf.mxu1 }
  0xb1   :  { %v129_v3 = vadd.f32 %v128_v2, %v87_v1 }
  0xb2   :  { %163 = vst [vmem:[%s421_s3 + $0x28] sm:$0xff] %v155_v0 }
  0xb3   :  { %v152_v4 = vadd.f32 %v226_v48, %v129_v3 }
  0xb4   :  { %v99_v5 = vpop.f32.mrf.mxu2 }
  0xb5   :  { %v140_v6 = vpop.f32.mrf.mxu3  ;;  %160 = vst [vmem:[%s421_s3 + $0x10] sm:$0xff] %v152_v4 }
  0xb6   :  { %v141_v7 = vadd.f32 %v140_v6, %v99_v5 }
  0xb8   :  { %v156_v8 = vadd.f32 %v226_v48, %v141_v7  ;;  %v90_v9 = vpop.f32.mrf.mxu0  ;;  %v131_v10 = vpop.f32.mrf.mxu1 }
  0xb9   :  { %v132_v11 = vadd.f32 %v131_v10, %v90_v9 }
  0xba   :  { %164 = vst [vmem:[%s421_s3 + $0x30] sm:$0xff] %v156_v8 }
  0xbb   :  { %v153_v12 = vadd.f32 %v226_v48, %v132_v11 }
  0xbc   :  { %v102_v13 = vpop.f32.mrf.mxu2 }
  0xbd   :  { %v143_v14 = vpop.f32.mrf.mxu3  ;;  %161 = vst [vmem:[%s421_s3 + $0x18] sm:$0xff] %v153_v12 }
  0xbe   :  { %v144_v15 = vadd.f32 %v143_v14, %v102_v13 }
  0xc0   :  { %v157_v16 = vadd.f32 %v226_v48, %v144_v15 }
  0xc2   :  { %165 = vst [vmem:[%s421_s3 + $0x38] sm:$0xff] %v157_v16 }

// kernel: _encoder_impl.6
= control target key start
LH: loop header
LB: loop body
LE: loop exit
PB: predicated region body
PF: predicated region fallthrough
CT: control target
= control target key end

     0   :  { %s2318_s18 = smov 0   ;;  %s2320_s19 = smov 0   ;;  %s3259_s0 = inlined_call_operand.vmem [shape: s32[8,1], index: 0, kind: input, shape index: {}]   ;;  %s3260_s1 = inlined_call_operand.vmem [shape: f32[2,8,8,384], index: 1, kind: input, shape index: {}]   ;;  %s3261_s2 = inlined_call_operand.vmem [shape: f32[2,128,384], index: 2, kind: input, shape index: {}]   ;;  %s3262_s3 = inlined_call_operand.vmem [shape: f32[2,1,384], index: 3, kind: input, shape index: {}]   ;;  %s3263_s4 = inlined_call_operand.vmem [shape: f32[2,8,8,128], index: 4, kind: output, shape index: {0}]   ;;  %s3264_s5 = inlined_call_operand.vmem [shape: f32[2,8,128], index: 5, kind: output, shape index: {1}]  }
   0x1   :  { %s2322_s20 = smov 0  }
   0x2 LB: > { %s28_s21 = sadd.s32 1, %s2280_s19  ;;  %p2079_p0 = scmp.ge.s32.totalorder %s2284_s20, 1  ;;  %s2284_s20 = sphi %s2322_s20, %s16_s20   ;;  %s2280_s19 = sphi %s2320_s19, %s3266_s19   ;;  %s2276_s18 = sphi %s2318_s18, %s3265_s18  }
   0x3   : > { %p30_p1 = scmp.ge.s32.totalorder %s28_s21, 2  ;;  %p255_p2 = scmp.lt.s32.totalorder %s2284_s20, 3 }
   0x5   : > { %s3268_s21 = smov (%p30_p1, %s28_s21), 0  ;;  %p256_p3 = pnand %p2079_p0, %p255_p2 }
   0x6   : > { %p318_p4 = scmp.lt.s32.totalorder (!%p256_p3), %s2276_s18, 1  ;;  %s374_s27 = smul.u32 (!%p256_p3), 7, %s2276_s18 }
   0x7   : > { %259 = sbr.rel (%p256_p3) target bundleno = 1466 (0x5ba), region = 36 }
   0x8   : > { %s559_s28 = smul.u32 (!%p256_p3), 5, %s2276_s18 }
   0x9   : > { %s1487_s7 = smul.u32 (!%p256_p3), 4294967291, %s2276_s18 }
   0xa   : > { %s560_s6 = sadd.s32 (!%p256_p3), 1, %s559_s28  ;;  %s2144_s14 = smul.u32 (!%p256_p3), 168, %s2276_s18 }
   0xb   : > { %s1488_s8 = sadd.s32 (!%p256_p3), 6, %s1487_s7  ;;  %s2089_s25 = smul.u32 (!%p256_p3), 56, %s2276_s18 }
   0xc   : > { %s2340_s22 = scalar_select %p318_p4, %s2276_s18, 1  ;;  %v2286_v19 = vmov 0   ;;  %v546_v23 = vstv %s374_s27  ;;  %v2455_v27 = vld [vmem:[%s3259_s0] sm:$0xff]  ;;  %v732_v33 = vstv %s560_s6  ;;  %v1660_v47 = vstv %s1488_s8 }
   0xd   : > { %2178 = vset.pattern.permute.xlu0 %v2286_v19  ;;  %vm547_vm0 = vcmp.lt.s32.totalorder %v546_v23, %v2455_v27  ;;  %vm733_vm1 = vcmp.lt.s32.totalorder %v732_v33, %v2455_v27  ;;  %vm1661_vm2 = vcmp.lt.s32.totalorder %v1660_v47, %v2455_v27  ;;  %v2287_v51 = vmov 0.0   ;;  %2179 = vset.pattern.permute.xlu1 %v2286_v19  ;;  %s2090_s6 = smul.u32 120, %s2276_s18 }
   0xe   : > { %s2150_s23 = smul.u32 384, %s2340_s22  ;;  %v548_v31 = vsel %vm547_vm0, 1, %v2286_v19  ;;  %v734_v43 = vsel %vm733_vm1, 1, %v2286_v19  ;;  %v1662_v53 = vsel %vm1661_vm2, 1, %v2286_v19  ;;  %2180 = vset.pattern.permute.xlu2 %v2286_v19  ;;  %s2143_s24 = sshll.u32 %s2340_s22, 6 }
   0xf   : > { %550 = vperm.xlu0 %2178, %v548_v31   ;;  %s2151_s9 = smul.u32 3, %s2340_s22  ;;  %s2678_s29 = scalar_lea.vmem %s3263_s4, %s2143_s24 }
  0x10   : > { %s2346_s26 = scalar_lea.vmem %s3261_s2, %s2150_s23  ;;  %s2149_s10 = smul.u32 192, %s2340_s22 }
  0x11   : > { %v2349_v0 = vld [vmem:[%s2346_s26 + $0x168] sm:$0xff]  ;;  %v2352_v1 = vld [vmem:[%s2346_s26 + $0x170] sm:$0xff]  ;;  %v2360_v3 = vld [vmem:[%s2346_s26 + $0x158] sm:$0xff]  ;;  %s2658_s13 = scalar_lea.vmem %s3262_s3, %s2151_s9  ;;  %s557_s30 = scalar_lea.vmem %s2678_s29, %s2089_s25 }
  0x12   : > { %v2355_v2 = vld [vmem:[%s2346_s26 + $0x150] sm:$0xff]  ;;  %439 = vmatpush.msra.mxu0 %v2349_v0  ;;  %459 = vmatpush.msra.mxu1 %v2352_v1  ;;  %v2363_v4 = vld [vmem:[%s2346_s26 + $0x138] sm:$0xff]  ;;  %v2366_v5 = vld [vmem:[%s2346_s26 + $0x140] sm:$0xff]  ;;  %s2664_s17 = scalar_lea.vmem %s3260_s1, %s2149_s10  ;;  %s745_s8 = smul.u32 3, %s2276_s18 }
  0x13   : > { %625 = vmatpush.msra.mxu3 %v2349_v0  ;;  %v2372_v6 = vld [vmem:[%s2346_s26 + $0x120] sm:$0xff]  ;;  %v2375_v7 = vld [vmem:[%s2346_s26 + $0x128] sm:$0xff]  ;;  %v2384_v9 = vld [vmem:[%s2346_s26 + $0x110] sm:$0xff]  ;;  %s2668_s23 = scalar_lea.vmem %s2664_s17, %s2144_s14  ;;  %s2696_s7 = scalar_lea.vmem %s2664_s17, %s2090_s6 }
  0x14   : > { %440 = vmatpush.msra.mxu0 %v2355_v2  ;;  %460 = vmatpush.msra.mxu1 %v2360_v3  ;;  %v2381_v8 = vld [vmem:[%s2346_s26 + $0x108] sm:$0xff]  ;;  %v2390_v10 = vld [vmem:[%s2346_s26 + $0xf0] sm:$0xff]  ;;  %v2393_v11 = vld [vmem:[%s2346_s26 + $0xf8] sm:$0xff]  ;;  %s746_s9 = sadd.s32 2, %s745_s8  ;;  %s931_s10 = sadd.s32 3, %s2276_s18 }
  0x15   : > { %626 = vmatpush.msra.mxu3 %v2355_v2  ;;  %v2396_v12 = vld [vmem:[%s2346_s26 + $0x178] sm:$0xff]  ;;  %v2402_v13 = vld [vmem:[%s2346_s26 + $0x160] sm:$0xff]  ;;  %v2416_v16 = vld [vmem:[%s2346_s26 + $0x148] sm:$0xff]  ;;  %s1673_s11 = smul.u32 4294967289, %s2276_s18 }
  0x16   : > { %441 = vmatpush.msra.mxu0 %v2363_v4  ;;  %461 = vmatpush.msra.mxu1 %v2366_v5  ;;  %v2405_v14 = vld [vmem:[%s2346_s26 + $0xd8] sm:$0xff]  ;;  %v2408_v15 = vld [vmem:[%s2346_s26 + $0xe0] sm:$0xff]  ;;  %v2422_v18 = vld [vmem:[%s2346_s26 + $0xc8] sm:$0xff]  ;;  %s2096_s14 = smul.u32 40, %s2276_s18 }
  0x17   : > { %627 = vmatpush.msra.mxu3 %v2363_v4  ;;  %479 = vmatpush.msra.mxu2 %v2396_v12  ;;  %v2419_v17 = vld [vmem:[%s2346_s26 + $0xc0] sm:$0xff]  ;;  %v2430_v20 = vld [vmem:[%s2346_s26 + $0x130] sm:$0xff]  ;;  %v2433_v21 = vld [vmem:[%s2346_s26 + $0xa8] sm:$0xff]  ;;  %s1674_s12 = sadd.s32 7, %s1673_s11  ;;  %s2098_s16 = smul.u32 72, %s2276_s18 }
  0x18   : > { %442 = vmatpush.msra.mxu0 %v2372_v6  ;;  %462 = vmatpush.msra.mxu1 %v2375_v7  ;;  %v2436_v22 = vld [vmem:[%s2346_s26 + $0xb0] sm:$0xff]  ;;  %v2443_v24 = vld [vmem:[%s2346_s26 + $0x118] sm:$0xff]  ;;  %v2461_v28 = vld [vmem:[%s2346_s26 + $0x100] sm:$0xff]  ;;  %s1969_s15 = scalar_lea.vmem %s2678_s29, %s2096_s14  ;;  %s2104_s24 = smul.u32 24, %s2276_s18 }
  0x19   : > { %628 = vmatpush.msra.mxu3 %v2372_v6  ;;  %480 = vmatpush.msra.mxu2 %v2402_v13  ;;  %v2446_v25 = vld [vmem:[%s2346_s26 + $0x90] sm:$0xff]  ;;  %v2449_v26 = vld [vmem:[%s2346_s26 + $0x98] sm:$0xff]  ;;  %v2468_v30 = vld [vmem:[%s2346_s26 + $0x80] sm:$0xff]  ;;  %s1301_s28 = smul.u32 4294967293, %s2276_s18 }
  0x1a   : > { %443 = vmatpush.msra.mxu0 %v2381_v8  ;;  %463 = vmatpush.msra.mxu1 %v2384_v9  ;;  %v2465_v29 = vld [vmem:[%s2346_s26 + $0x78] sm:$0xff]  ;;  %v2476_v32 = vld [vmem:[%s2346_s26 + $0xe8] sm:$0xff]  ;;  %v2479_v34 = vld [vmem:[%s2346_s26 + $0x60] sm:$0xff]  ;;  %s1977_s25 = scalar_lea.vmem %s2678_s29, %s2104_s24  ;;  %s3004_s27 = scalar_lea.vmem %s2664_s17, %s2104_s24 }
  0x1b   : > { %629 = vmatpush.msra.mxu3 %v2381_v8  ;;  %481 = vmatpush.msra.mxu2 %v2416_v16  ;;  %v2482_v35 = vld [vmem:[%s2346_s26 + $0x68] sm:$0xff]  ;;  %v2489_v36 = vld [vmem:[%s2346_s26 + $0xd0] sm:$0xff]  ;;  %v2503_v39 = vld [vmem:[%s2346_s26 + $0xb8] sm:$0xff]  ;;  %s1302_s6 = sadd.s32 5, %s1301_s28  ;;  %s2123_s24 = smul.u32 4294967272, %s2276_s18 }
  0x1c   : > { %444 = vmatpush.msra.mxu0 %v2390_v10  ;;  %464 = vmatpush.msra.mxu1 %v2393_v11  ;;  %v2492_v37 = vld [vmem:[%s2346_s26 + $0x48] sm:$0xff]  ;;  %v2495_v38 = vld [vmem:[%s2346_s26 + $0x50] sm:$0xff]  ;;  %v2509_v41 = vld [vmem:[%s2346_s26 + $0x38] sm:$0xff] }
  0x1d   : > { %630 = vmatpush.msra.mxu3 %v2390_v10  ;;  %482 = vmatpush.msra.mxu2 %v2430_v20  ;;  %v2506_v40 = vld [vmem:[%s2346_s26 + $0x30] sm:$0xff]  ;;  %v2516_v42 = vld [vmem:[%s2346_s26 + $0xa0] sm:$0xff]  ;;  %v2520_v44 = vld [vmem:[%s2346_s26 + $0x18] sm:$0xff] }
  0x1e   : > { %445 = vmatpush.msra.mxu0 %v2405_v14  ;;  %465 = vmatpush.msra.mxu1 %v2408_v15  ;;  %v2523_v45 = vld [vmem:[%s2346_s26 + $0x20] sm:$0xff]  ;;  %v2530_v46 = vld [vmem:[%s2346_s26 + $0x88] sm:$0xff]  ;;  %v2543_v50 = vld [vmem:[%s2346_s26 + $0x70] sm:$0xff] }
  0x1f   : > { %631 = vmatpush.msra.mxu3 %v2405_v14  ;;  %483 = vmatpush.msra.mxu2 %v2443_v24  ;;  %v2533_v48 = vld [vmem:[%s2346_s26] sm:$0xff]  ;;  %v2536_v49 = vld [vmem:[%s2346_s26 + $0x8] sm:$0xff]  ;;  %v2550_v52 = vld [vmem:[%s2346_s26 + $0x58] sm:$0xff] }
  0x20   : > { %446 = vmatpush.msra.mxu0 %v2419_v17  ;;  %466 = vmatpush.msra.mxu1 %v2422_v18  ;;  %v2556_v54 = vld [vmem:[%s2346_s26 + $0x40] sm:$0xff]  ;;  %v2563_v55 = vld [vmem:[%s2346_s26 + $0x28] sm:$0xff]  ;;  %v2569_v56 = vld [vmem:[%s2346_s26 + $0x10] sm:$0xff] }
  0x21   : > { %632 = vmatpush.msra.mxu3 %v2419_v17  ;;  %484 = vmatpush.msra.mxu2 %v2461_v28  ;;  %v431_v57 = vld [vmem:[%s2658_s13] sm:$0x7]  ;;  %v380_v62 = vld [vmem:[%s2668_s23 + $0x8] sm:$0xff] }
  0x22   : > { %447 = vmatpush.msra.mxu0 %v2433_v21  ;;  %467 = vmatpush.msra.mxu1 %v2436_v22  ;;  %v433_v58 = vperm.slane %v431_v57, 0  ;;  %v434_v59 = vperm.slane %v431_v57, 1  ;;  %v379_v60 = vld [vmem:[%s2668_s23] sm:$0xff] }
  0x23   : > { %485 = vmatpush.msra.mxu2 %v2476_v32  ;;  %633 = vmatpush.msra.mxu3 %v2433_v21 }
  0x24   : > { %448 = vmatpush.msra.mxu0 %v2446_v25  ;;  %468 = vmatpush.msra.mxu1 %v2449_v26 }
  0x25   : > { %486 = vmatpush.msra.mxu2 %v2489_v36  ;;  %634 = vmatpush.msra.mxu3 %v2446_v25 }
  0x26   : > { %449 = vmatpush.msra.mxu0 %v2465_v29  ;;  %469 = vmatpush.msra.mxu1 %v2468_v30 }
  0x27   : > { %487 = vmatpush.msra.mxu2 %v2503_v39  ;;  %635 = vmatpush.msra.mxu3 %v2465_v29 }
  0x28   : > { %450 = vmatpush.msra.mxu0 %v2479_v34  ;;  %470 = vmatpush.msra.mxu1 %v2482_v35 }
  0x29   : > { %488 = vmatpush.msra.mxu2 %v2516_v42  ;;  %736 = vperm.xlu0 %2178, %v734_v43  }
  0x2a   : > { %451 = vmatpush.msra.mxu0 %v2492_v37  ;;  %471 = vmatpush.msra.mxu1 %v2495_v38 }
  0x2b   : > { %489 = vmatpush.msra.mxu2 %v2530_v46  ;;  %636 = vmatpush.msra.mxu3 %v2479_v34 }
  0x2c   : > { %452 = vmatpush.msra.mxu0 %v2506_v40  ;;  %472 = vmatpush.msra.mxu1 %v2509_v41 }
  0x2d   : > { %490 = vmatpush.msra.mxu2 %v2543_v50  ;;  %637 = vmatpush.msra.mxu3 %v2492_v37 }
  0x2e   : > { %453 = vmatpush.msra.mxu0 %v2520_v44  ;;  %473 = vmatpush.msra.mxu1 %v2523_v45 }
  0x2f   : > { %491 = vmatpush.msra.mxu2 %v2550_v52  ;;  %638 = vmatpush.msra.mxu3 %v2506_v40 }
  0x30   : > { %454 = vmatpush.msra.mxu0 %v2533_v48  ;;  %474 = vmatpush.msra.mxu1 %v2536_v49 }
  0x31   : > { %455 = vmatmul.f32.vlgmr.msra.gmra.mxu0 %v2287_v51  ;;  %475 = vmatmul.f32.vlgmr.msra.gmra.mxu1 %v2287_v51 }
  0x32   : > { %645 = vmatpush.msrb.mxu0 %v2352_v1  ;;  %665 = vmatpush.msrb.mxu1 %v2396_v12 }
  0x33   : > { %1664 = vperm.xlu0 %2178, %v1662_v53   ;;  %492 = vmatpush.msra.mxu2 %v2556_v54 }
  0x34   : > { %646 = vmatpush.msrb.mxu0 %v2360_v3  ;;  %666 = vmatpush.msrb.mxu1 %v2402_v13 }
  0x35   : > { %493 = vmatpush.msra.mxu2 %v2563_v55  ;;  %639 = vmatpush.msra.mxu3 %v2520_v44 }
  0x36   : > { %647 = vmatpush.msrb.mxu0 %v2366_v5  ;;  %667 = vmatpush.msrb.mxu1 %v2416_v16 }
  0x37   : > { %494 = vmatpush.msra.mxu2 %v2569_v56  ;;  %640 = vmatpush.msra.mxu3 %v2533_v48 }
  0x38   : > { %648 = vmatpush.msrb.mxu0 %v2375_v7  ;;  %668 = vmatpush.msrb.mxu1 %v2430_v20 }
  0x39   : > { %495 = vmatmul.f32.vlgmr.msra.gmra.mxu2 %v2287_v51  ;;  %831 = vmatpush.msrb.mxu3 %v2352_v1 }
  0x3a   : > { %649 = vmatpush.msrb.mxu0 %v2384_v9  ;;  %669 = vmatpush.msrb.mxu1 %v2443_v24 }
  0x3b   : > { %811 = vmatpush.msrb.mxu2 %v2349_v0  ;;  %832 = vmatpush.msrb.mxu3 %v2360_v3 }
  0x3c   : > { %650 = vmatpush.msrb.mxu0 %v2393_v11  ;;  %670 = vmatpush.msrb.mxu1 %v2461_v28 }
  0x3d   : > { %812 = vmatpush.msrb.mxu2 %v2355_v2  ;;  %833 = vmatpush.msrb.mxu3 %v2366_v5 }
  0x3e   : > { %651 = vmatpush.msrb.mxu0 %v2408_v15  ;;  %671 = vmatpush.msrb.mxu1 %v2476_v32 }
  0x3f   : > { %813 = vmatpush.msrb.mxu2 %v2363_v4  ;;  %834 = vmatpush.msrb.mxu3 %v2375_v7 }
  0x40   : > { %652 = vmatpush.msrb.mxu0 %v2422_v18  ;;  %672 = vmatpush.msrb.mxu1 %v2489_v36 }
  0x41   : > { %814 = vmatpush.msrb.mxu2 %v2372_v6  ;;  %835 = vmatpush.msrb.mxu3 %v2384_v9 }
  0x42   : > { %653 = vmatpush.msrb.mxu0 %v2436_v22  ;;  %673 = vmatpush.msrb.mxu1 %v2503_v39 }
  0x43   : > { %815 = vmatpush.msrb.mxu2 %v2381_v8  ;;  %836 = vmatpush.msrb.mxu3 %v2393_v11 }
  0x44   : > { %654 = vmatpush.msrb.mxu0 %v2449_v26  ;;  %674 = vmatpush.msrb.mxu1 %v2516_v42 }
  0x45   : > { %816 = vmatpush.msrb.mxu2 %v2390_v10  ;;  %837 = vmatpush.msrb.mxu3 %v2408_v15 }
  0x46   : > { %655 = vmatpush.msrb.mxu0 %v2468_v30  ;;  %675 = vmatpush.msrb.mxu1 %v2530_v46 }
  0x47   : > { %817 = vmatpush.msrb.mxu2 %v2405_v14  ;;  %838 = vmatpush.msrb.mxu3 %v2422_v18 }
  0x48   : > { %656 = vmatpush.msrb.mxu0 %v2482_v35  ;;  %676 = vmatpush.msrb.mxu1 %v2543_v50 }
  0x49   : > { %818 = vmatpush.msrb.mxu2 %v2419_v17  ;;  %839 = vmatpush.msrb.mxu3 %v2436_v22  ;;  %v435_v17 = vperm.slane %v431_v57, 2 }
  0x4a   : > { %657 = vmatpush.msrb.mxu0 %v2495_v38  ;;  %677 = vmatpush.msrb.mxu1 %v2550_v52 }
  0x4b   : > { %819 = vmatpush.msrb.mxu2 %v2433_v21  ;;  %840 = vmatpush.msrb.mxu3 %v2449_v26 }
  0x4c   : > { %658 = vmatpush.msrb.mxu0 %v2509_v41  ;;  %678 = vmatpush.msrb.mxu1 %v2556_v54 }
  0x4d   : > { %820 = vmatpush.msrb.mxu2 %v2446_v25  ;;  %841 = vmatpush.msrb.mxu3 %v2468_v30 }
  0x4e   : > { %659 = vmatpush.msrb.mxu0 %v2523_v45  ;;  %679 = vmatpush.msrb.mxu1 %v2563_v55 }
  0x4f   : > { %821 = vmatpush.msrb.mxu2 %v2465_v29  ;;  %842 = vmatpush.msrb.mxu3 %v2482_v35  ;;  %v381_v35 = vld [vmem:[%s2668_s23 + $0x10] sm:$0xff]  ;;  %s2768_s23 = scalar_lea.vmem %s2664_s17, %s2098_s16  ;;  %s2117_s16 = smul.u32 4294967224, %s2276_s18 }
  0x50   : > { %660 = vmatpush.msrb.mxu0 %v2536_v49  ;;  %680 = vmatpush.msrb.mxu1 %v2569_v56 }
  0x51   : > { %822 = vmatpush.msrb.mxu2 %v2479_v34  ;;  %843 = vmatpush.msrb.mxu3 %v2495_v38 }
  0x52   : > { %851 = vmatpush.msra.mxu0 %v2396_v12 }
  0x53   : > { %823 = vmatpush.msrb.mxu2 %v2492_v37  ;;  %844 = vmatpush.msrb.mxu3 %v2509_v41 }
  0x54   : > { %852 = vmatpush.msra.mxu0 %v2402_v13 }
  0x55   : > { %824 = vmatpush.msrb.mxu2 %v2506_v40  ;;  %845 = vmatpush.msrb.mxu3 %v2523_v45 }
  0x56   : > { %853 = vmatpush.msra.mxu0 %v2416_v16 }
  0x57   : > { %825 = vmatpush.msrb.mxu2 %v2520_v44  ;;  %846 = vmatpush.msrb.mxu3 %v2536_v49 }
  0x58   : > { %854 = vmatpush.msra.mxu0 %v2430_v20 }
  0x59   : > { %826 = vmatpush.msrb.mxu2 %v2533_v48 }
  0x5a   : > { %855 = vmatpush.msra.mxu0 %v2443_v24 }
  0x5c   : > { %856 = vmatpush.msra.mxu0 %v2461_v28 }
  0x5e   : > { %857 = vmatpush.msra.mxu0 %v2476_v32 }
  0x60   : > { %858 = vmatpush.msra.mxu0 %v2489_v36 }
  0x62   : > { %859 = vmatpush.msra.mxu0 %v2503_v39 }
  0x64   : > { %860 = vmatpush.msra.mxu0 %v2516_v42 }
  0x66   : > { %861 = vmatpush.msra.mxu0 %v2530_v46 }
  0x68   : > { %862 = vmatpush.msra.mxu0 %v2543_v50 }
  0x6a   : > { %863 = vmatpush.msra.mxu0 %v2550_v52 }
  0x6c   : > { %864 = vmatpush.msra.mxu0 %v2556_v54  ;;  %v617_v54 = vld [vmem:[%s2658_s13] sm:$0x7] }
  0x6e   : > { %865 = vmatpush.msra.mxu0 %v2563_v55  ;;  %v619_v55 = vperm.slane %v617_v54, 0 }
  0x70   : > { %866 = vmatpush.msra.mxu0 %v2569_v56  ;;  %v2091_v56 = vld [vmem:[%s2696_s7 + $0x18] sm:$0xff] }
  0x81   : > { %v551_v49 = vpop.permute.xlu0 %550 }
  0x82   : > { %vm552_vm11 = vcmp.eq.s32.totalorder %v551_v49, 1  ;;  %v2723_v49 = vld [vmem:[%s2346_s26 + $0x170] sm:$0xff] }
  0x83   : > { %1016 = vmatpush.msra.mxu2 %v2723_v49 }
  0xae   : > { %v456_v61 = vpop.f32.mrf.mxu0  ;;  %v476_v63 = vpop.f32.mrf.mxu1 }
  0xaf   : > { %v457_v0 = vadd.f32 %v456_v61, %v433_v58  ;;  %v477_v1 = vadd.f32 %v476_v63, %v434_v59  ;;  %v918_v63 = vstv %s746_s9  ;;  %s2111_s9 = sshll.u32 %s2276_s18, 3 }
  0xb0   : > { %vm919_vm12 = vcmp.lt.s32.totalorder %v918_v63, %v2455_v27 }
  0xb1   : > { %v499_v2 = vadd.f32 %v457_v0, %v379_v60  ;;  %v519_v3 = vadd.f32 %v477_v1, %v380_v62  ;;  %v920_v1 = vsel %vm919_vm12, 1, %v2286_v19 }
  0xb2   : > { %922 = vperm.xlu1 %2179, %v920_v1   ;;  %v2805_v1 = vld [vmem:[%s2346_s26 + $0xb0] sm:$0xff] }
  0xb3   : > { %v2087_v4 = vmul.f32 -1.442695, %v499_v2  ;;  %v2088_v5 = vmul.f32 -1.442695, %v519_v3  ;;  %v1103_v2 = vstv %s931_s10  ;;  %s1983_s10 = scalar_lea.vmem %s2678_s29, %s2111_s9 }
  0xb4   : > { %vm1104_vm13 = vcmp.lt.s32.totalorder %v1103_v2, %v2455_v27 }
  0xb5   : > { %2181 = vpow2.f32 %v2087_v4 }
  0xb6   : > { %2183 = vpow2.f32 %v2088_v5 }
  0xbb   : > { %v2182_v6 = vpop.eup %2181 }
  0xbc   : > { %v2184_v7 = vpop.eup %2183  ;;  %v503_v8 = vadd.f32 1.0, %v2182_v6  ;;  %v496_v22 = vpop.f32.mrf.mxu2 }
  0xbd   : > { %v523_v9 = vadd.f32 1.0, %v2184_v7  ;;  %v497_v30 = vadd.f32 %v496_v22, %v435_v17  ;;  %v1846_v17 = vstv %s1674_s12 }
  0xbe   : > { %2185 = vrcp.f32 %v503_v8  ;;  %v515_v23 = vand.u32 2147483648, %v503_v8  ;;  %v513_v26 = vand.u32 2147483647, %v503_v8  ;;  %vm509_vm4 = vweird.f32 %v503_v8 }
  0xbf   : > { %2187 = vrcp.f32 %v523_v9  ;;  %vm529_vm7 = vweird.f32 %v523_v9  ;;  %v535_v41 = vand.u32 2147483648, %v523_v9  ;;  %v533_v42 = vand.u32 2147483647, %v523_v9 }
  0xc0   : > { %v516_v33 = vor.u32 1.1754944e-38, %v515_v23  ;;  %vm514_vm6 = vcmp.eq.f32.partialorder %v513_v26, 8.507059e+37  ;;  %vm1847_vm2 = vcmp.lt.s32.totalorder %v1846_v17, %v2455_v27  ;;  %v2843_v17 = vld [vmem:[%s2346_s26 + $0x70] sm:$0xff] }
  0xc1   : > { %v536_v45 = vor.u32 1.1754944e-38, %v535_v41  ;;  %vm534_vm10 = vcmp.eq.f32.partialorder %v533_v42, 8.507059e+37 }
  0xc4   : > { %v2186_v10 = vpop.eup %2185 }
  0xc5   : > { %v2188_v11 = vpop.eup %2187  ;;  %v505_v14 = vmul.f32 %v2186_v10, %v503_v8  ;;  %vm510_vm3 = vweird.f32 %v2186_v10  ;;  %v1105_v8 = vsel %vm1104_vm13, 1, %v2286_v19 }
  0xc6   : > { %v525_v15 = vmul.f32 %v2188_v11, %v523_v9  ;;  %vm511_vm5 = vmor %vm509_vm4, %vm510_vm3  ;;  %vm530_vm8 = vweird.f32 %v2188_v11  ;;  %v621_v9 = vperm.slane %v617_v54, 2  ;;  %1107 = vperm.xlu1 %2179, %v1105_v8  }
  0xc7   : > { %v506_v18 = vsub.f32 1.0, %v505_v14  ;;  %vm531_vm9 = vmor %vm529_vm7, %vm530_vm8 }
  0xc8   : > { %v526_v21 = vsub.f32 1.0, %v525_v15 }
  0xc9   : > { %v507_v25 = vmul.f32 %v2186_v10, %v506_v18 }
  0xca   : > { %v527_v29 = vmul.f32 %v2188_v11, %v526_v21 }
  0xcb   : > { %v508_v31 = vadd.f32 %v2186_v10, %v507_v25  ;;  %v2093_v25 = vld [vmem:[%s2696_s7 + $0x28] sm:$0xff] }
  0xcc   : > { %v528_v38 = vadd.f32 %v2188_v11, %v527_v29 }
  0xcd   : > { %v512_v34 = vsel %vm511_vm5, %v2186_v10, %v508_v31 }
  0xce   : > { %v517_v37 = vsel %vm514_vm6, %v516_v33, %v512_v34  ;;  %v532_v44 = vsel %vm531_vm9, %v2188_v11, %v528_v38  ;;  %v1848_v34 = vsel %vm1847_vm2, 1, %v2286_v19 }
  0xcf   : > { %v539_v40 = vmul.f32 %v517_v37, %v497_v30  ;;  %v537_v46 = vsel %vm534_vm10, %v536_v45, %v532_v44  ;;  %1850 = vperm.xlu1 %2179, %v1848_v34   ;;  %v737_v44 = vpop.permute.xlu0 %736  ;;  %v2879_v34 = vld [vmem:[%s2346_s26 + $0x20] sm:$0xff] }
  0xd0   : > { %v542_v47 = vsub.f32 1.0, %v537_v46  ;;  %v544_v51 = vmul.f32 0.0, %v537_v46  ;;  %vm738_vm7 = vcmp.eq.s32.totalorder %v737_v44, 1 }
  0xd1   : > { %v540_v43 = vadd.f32 %v539_v40, %v381_v35 }
  0xd3   : > { %2189 = vtanh.f32 %v540_v43 }
  0xd9   : > { %v2190_v48 = vpop.eup %2189 }
  0xda   : > { %v543_v50 = vmul.f32 %v2190_v48, %v542_v47  ;;  %v2720_v48 = vld [vmem:[%s2346_s26 + $0x168] sm:$0xff] }
  0xdb   : > { %996 = vmatpush.msra.mxu1 %v2720_v48 }
  0xdc   : > { %v545_v52 = vadd.f32 %v544_v51, %v543_v50  ;;  %v2728_v50 = vld [vmem:[%s2346_s26 + $0x150] sm:$0xff]  ;;  %v2731_v51 = vld [vmem:[%s2346_s26 + $0x158] sm:$0xff] }
  0xdd   : > { %997 = vmatpush.msra.mxu1 %v2728_v50  ;;  %1017 = vmatpush.msra.mxu2 %v2731_v51 }
  0xde   : > { %2146 = vmatmul.msk.f32.vlgmr.msra.gmra.mxu3 %vm552_vm11, %v545_v52  ;;  %2147 = vmatmul.msk.f32.vlgmr.msrb.gmra.mxu0 %vm552_vm11, %v545_v52  ;;  %v2681_v53 = vsel %vm552_vm11, %v545_v52, 0.0 }
  0xdf   : > { %2148 = vmatmul.msk.f32.vlgmr.msrb.gmra.mxu1 %vm552_vm11, %v545_v52  ;;  %558 = vst [vmem:[%s557_s30] sm:$0xff] %v2681_v53  ;;  %1036 = vmatpush.msra.mxu3 %v2396_v12  ;;  %v620_v12 = vperm.slane %v617_v54, 1  ;;  %v2737_v52 = vld [vmem:[%s2346_s26 + $0x138] sm:$0xff]  ;;  %v2747_v54 = vld [vmem:[%s2346_s26 + $0x120] sm:$0xff]  ;;  %s3040_s30 = ssub.s32 4, %s2276_s18 }
  0xe0   : > { %1181 = vmatpush.msrb.mxu0 %v2720_v48  ;;  %998 = vmatpush.msra.mxu1 %v2737_v52  ;;  %s2145_s11 = smul.u32 24, %s3040_s30  ;;  %s2116_s14 = sshll.u32 %s3040_s30, 3 }
  0xe1   : > { %1037 = vmatpush.msra.mxu3 %v2402_v13  ;;  %v2092_v13 = vld [vmem:[%s2696_s7 + $0x20] sm:$0xff] }
  0xe2   : > { %1182 = vmatpush.msrb.mxu0 %v2728_v50  ;;  %999 = vmatpush.msra.mxu1 %v2747_v54  ;;  %s3081_s12 = scalar_lea.vmem %s2664_s17, %s2145_s11 }
  0xe3   : > { %1038 = vmatpush.msra.mxu3 %v2416_v16 }
  0xe4   : > { %1183 = vmatpush.msrb.mxu0 %v2737_v52 }
  0xe5   : > { %1039 = vmatpush.msra.mxu3 %v2430_v20 }
  0xe6   : > { %1184 = vmatpush.msrb.mxu0 %v2747_v54 }
  0xe7   : > { %1040 = vmatpush.msra.mxu3 %v2443_v24 }
  0xe9   : > { %1041 = vmatpush.msra.mxu3 %v2461_v28 }
  0xeb   : > { %1042 = vmatpush.msra.mxu3 %v2476_v32 }
  0xed   : > { %1043 = vmatpush.msra.mxu3 %v2489_v36 }
  0xef   : > { %1044 = vmatpush.msra.mxu3 %v2503_v39 }
 0x15b   : > { %v662_v16 = vpop.f32.mrf.mxu0 }
 0x15c   : > { %v663_v20 = vadd.f32 %v662_v16, %v620_v12  ;;  %v682_v14 = vpop.f32.mrf.mxu1  ;;  %v2750_v12 = vld [vmem:[%s2346_s26 + $0x128] sm:$0xff]  ;;  %v2759_v16 = vld [vmem:[%s2346_s26 + $0x110] sm:$0xff] }
 0x15d   : > { %v683_v22 = vadd.f32 %v682_v14, %v621_v9  ;;  %v2824_v9 = vld [vmem:[%s2346_s26 + $0x78] sm:$0xff]  ;;  %v2837_v14 = vld [vmem:[%s2346_s26 + $0x60] sm:$0xff] }
 0x15e   : > { %v705_v24 = vadd.f32 %v2092_v13, %v663_v20  ;;  %v2756_v13 = vld [vmem:[%s2346_s26 + $0x108] sm:$0xff]  ;;  %v2765_v20 = vld [vmem:[%s2658_s13] sm:$0x7] }
 0x15f   : > { %1000 = vmatpush.msra.mxu1 %v2756_v13  ;;  %1185 = vmatpush.msrb.mxu0 %v2756_v13 }
 0x160   : > { %v2095_v28 = vmul.f32 -1.442695, %v705_v24  ;;  %v2771_v24 = vld [vmem:[%s2346_s26 + $0xf0] sm:$0xff] }
 0x161   : > { %v642_v32 = vpop.f32.mrf.mxu3  ;;  %1001 = vmatpush.msra.mxu1 %v2771_v24  ;;  %1186 = vmatpush.msrb.mxu0 %v2771_v24 }
 0x162   : > { %2191 = vpow2.f32 %v2095_v28  ;;  %v643_v36 = vadd.f32 %v642_v32, %v619_v55  ;;  %v2774_v55 = vld [vmem:[%s2346_s26 + $0xf8] sm:$0xff]  ;;  %v805_v28 = vperm.slane %v2765_v20, 0 }
 0x163   : > { %v2782_v32 = vld [vmem:[%s2346_s26 + $0xd8] sm:$0xff] }
 0x164   : > { %v685_v39 = vadd.f32 %v2091_v56, %v643_v36  ;;  %v806_v56 = vperm.slane %v2765_v20, 1  ;;  %v2785_v36 = vld [vmem:[%s2346_s26 + $0xe0] sm:$0xff]  ;;  %1002 = vmatpush.msra.mxu1 %v2782_v32  ;;  %1187 = vmatpush.msrb.mxu0 %v2782_v32 }
 0x166   : > { %v2094_v57 = vmul.f32 -1.442695, %v685_v39  ;;  %v2099_v39 = vld [vmem:[%s2768_s23 + $0x30] sm:$0xff] }
 0x168   : > { %v2192_v58 = vpop.eup %2191  ;;  %2193 = vpow2.f32 %v2094_v57 }
 0x169   : > { %v709_v59 = vadd.f32 1.0, %v2192_v58  ;;  %v2100_v58 = vld [vmem:[%s2768_s23 + $0x38] sm:$0xff] }
 0x16b   : > { %2195 = vrcp.f32 %v709_v59  ;;  %v721_v31 = vand.u32 2147483648, %v709_v59  ;;  %vm715_vm4 = vweird.f32 %v709_v59  ;;  %v719_v33 = vand.u32 2147483647, %v709_v59 }
 0x16d   : > { %v722_v38 = vor.u32 1.1754944e-38, %v721_v31  ;;  %vm720_vm6 = vcmp.eq.f32.partialorder %v719_v33, 8.507059e+37  ;;  %v2876_v33 = vld [vmem:[%s2346_s26 + $0x18] sm:$0xff] }
 0x16e   : > { %v2194_v60 = vpop.eup %2193 }
 0x16f   : > { %v689_v61 = vadd.f32 1.0, %v2194_v60  ;;  %v2793_v60 = vld [vmem:[%s2346_s26 + $0xc0] sm:$0xff] }
 0x170   : > { %1003 = vmatpush.msra.mxu1 %v2793_v60  ;;  %1188 = vmatpush.msrb.mxu0 %v2793_v60 }
 0x171   : > { %2197 = vrcp.f32 %v689_v61  ;;  %v2196_v62 = vpop.eup %2195  ;;  %v701_v7 = vand.u32 2147483648, %v689_v61  ;;  %v699_v11 = vand.u32 2147483647, %v689_v61  ;;  %vm695_vm15 = vweird.f32 %v689_v61 }
 0x172   : > { %v711_v0 = vmul.f32 %v2196_v62, %v709_v59  ;;  %vm716_vm3 = vweird.f32 %v2196_v62 }
 0x173   : > { %v702_v21 = vor.u32 1.1754944e-38, %v701_v7  ;;  %vm700_vm1 = vcmp.eq.f32.partialorder %v699_v11, 8.507059e+37  ;;  %vm717_vm5 = vmor %vm715_vm4, %vm716_vm3  ;;  %v2830_v11 = vld [vmem:[%s2346_s26 + $0x88] sm:$0xff] }
 0x174   : > { %v712_v5 = vsub.f32 1.0, %v711_v0  ;;  %v2802_v0 = vld [vmem:[%s2346_s26 + $0xa8] sm:$0xff] }
 0x175   : > { %1004 = vmatpush.msra.mxu1 %v2802_v0  ;;  %1189 = vmatpush.msrb.mxu0 %v2802_v0 }
 0x176   : > { %v713_v15 = vmul.f32 %v2196_v62, %v712_v5  ;;  %v2814_v5 = vld [vmem:[%s2346_s26 + $0x98] sm:$0xff] }
 0x177   : > { %v2198_v3 = vpop.eup %2197 }
 0x178   : > { %v691_v4 = vmul.f32 %v2198_v3, %v689_v61  ;;  %vm696_vm14 = vweird.f32 %v2198_v3  ;;  %v714_v29 = vadd.f32 %v2196_v62, %v713_v15  ;;  %v2796_v61 = vld [vmem:[%s2346_s26 + $0xc8] sm:$0xff] }
 0x179   : > { %vm697_vm0 = vmor %vm695_vm15, %vm696_vm14  ;;  %v2840_v15 = vld [vmem:[%s2346_s26 + $0x68] sm:$0xff] }
 0x17a   : > { %v692_v6 = vsub.f32 1.0, %v691_v4  ;;  %v718_v37 = vsel %vm717_vm5, %v2196_v62, %v714_v29  ;;  %v2811_v4 = vld [vmem:[%s2346_s26 + $0x90] sm:$0xff] }
 0x17b   : > { %v723_v27 = vsel %vm720_vm6, %v722_v38, %v718_v37  ;;  %1005 = vmatpush.msra.mxu1 %v2811_v4  ;;  %1190 = vmatpush.msrb.mxu0 %v2811_v4  ;;  %v2891_v38 = vld [vmem:[%s2346_s26] sm:$0xff] }
 0x17c   : > { %v693_v10 = vmul.f32 %v2198_v3, %v692_v6  ;;  %v728_v40 = vsub.f32 1.0, %v723_v27  ;;  %v730_v43 = vmul.f32 %v723_v27, %v2681_v53  ;;  %v2817_v6 = vld [vmem:[%s2346_s26 + $0xa0] sm:$0xff]  ;;  %v2894_v27 = vld [vmem:[%s2346_s26 + $0x8] sm:$0xff] }
 0x17d   : > { %1045 = vmatpush.msra.mxu3 %v2817_v6  ;;  %1006 = vmatpush.msra.mxu1 %v2824_v9 }
 0x17e   : > { %v694_v18 = vadd.f32 %v2198_v3, %v693_v10  ;;  %v2827_v10 = vld [vmem:[%s2346_s26 + $0x80] sm:$0xff]  ;;  %1191 = vmatpush.msrb.mxu0 %v2824_v9 }
 0x17f   : > { %1046 = vmatpush.msra.mxu3 %v2830_v11  ;;  %1007 = vmatpush.msra.mxu1 %v2837_v14 }
 0x180   : > { %v698_v23 = vsel %vm697_vm0, %v2198_v3, %v694_v18  ;;  %v2850_v18 = vld [vmem:[%s2346_s26 + $0x48] sm:$0xff]  ;;  %1192 = vmatpush.msrb.mxu0 %v2837_v14 }
 0x181   : > { %v703_v26 = vsel %vm700_vm1, %v702_v21, %v698_v23  ;;  %1047 = vmatpush.msra.mxu3 %v2843_v17  ;;  %v2853_v21 = vld [vmem:[%s2346_s26 + $0x50] sm:$0xff]  ;;  %1008 = vmatpush.msra.mxu1 %v2850_v18 }
 0x182   : > { %v725_v30 = vmul.f32 %v703_v26, %v683_v22  ;;  %v2856_v22 = vld [vmem:[%s2346_s26 + $0x58] sm:$0xff]  ;;  %v2863_v23 = vld [vmem:[%s2346_s26 + $0x30] sm:$0xff]  ;;  %v2869_v26 = vld [vmem:[%s2346_s26 + $0x40] sm:$0xff]  ;;  %1193 = vmatpush.msrb.mxu0 %v2850_v18 }
 0x183   : > { %1048 = vmatpush.msra.mxu3 %v2856_v22  ;;  %1009 = vmatpush.msra.mxu1 %v2863_v23 }
 0x184   : > { %v726_v35 = vadd.f32 %v2093_v25, %v725_v30  ;;  %v2866_v25 = vld [vmem:[%s2346_s26 + $0x38] sm:$0xff]  ;;  %1194 = vmatpush.msrb.mxu0 %v2863_v23 }
 0x185   : > { %1049 = vmatpush.msra.mxu3 %v2869_v26  ;;  %1010 = vmatpush.msra.mxu1 %v2876_v33 }
 0x186   : > { %2199 = vtanh.f32 %v726_v35  ;;  %v2882_v35 = vld [vmem:[%s2346_s26 + $0x28] sm:$0xff]  ;;  %1195 = vmatpush.msrb.mxu0 %v2876_v33 }
 0x187   : > { %1050 = vmatpush.msra.mxu3 %v2882_v35  ;;  %1011 = vmatpush.msra.mxu1 %v2891_v38 }
 0x188   : > { %1196 = vmatpush.msrb.mxu0 %v2891_v38 }
 0x189   : > { %1201 = vmatpush.msrb.mxu1 %v2723_v49 }
 0x18b   : > { %1202 = vmatpush.msrb.mxu1 %v2731_v51 }
 0x18c   : > { %v2200_v41 = vpop.eup %2199 }
 0x18d   : > { %v729_v42 = vmul.f32 %v2200_v41, %v728_v40  ;;  %v2897_v40 = vld [vmem:[%s2346_s26 + $0x10] sm:$0xff] }
 0x18e   : > { %1051 = vmatpush.msra.mxu3 %v2897_v40 }
 0x18f   : > { %v731_v45 = vadd.f32 %v730_v43, %v729_v42 }
 0x191   : > { %v2714_v46 = vsel %vm738_vm7, %v731_v45, %v2681_v53  ;;  %v741_v47 = vsel %vm738_vm7, %v731_v45, 0.0  ;;  %v2740_v53 = vld [vmem:[%s2346_s26 + $0x140] sm:$0xff] }
 0x192   : > { %827 = vmatmul.f32.vlgmr.msrb.gmra.mxu2 %v2714_v46  ;;  %847 = vmatmul.f32.vlgmr.msrb.gmra.mxu3 %v2714_v46  ;;  %2097 = vst [vmem:[%s1969_s15 + $0x8] sm:$0xff] %v741_v47  ;;  %s1299_s15 = scalar_lea.vmem %s2678_s29, %s2116_s14 }
 0x193   : > { %867 = vmatmul.f32.vlgmr.msra.gmra.mxu0 %v2714_v46  ;;  %1018 = vmatpush.msra.mxu2 %v2740_v53 }
 0x194   : > { %1367 = vmatpush.msrb.mxu3 %v2720_v48  ;;  %1387 = vmatpush.msra.mxu0 %v2723_v49  ;;  %v807_v49 = vperm.slane %v2765_v20, 2 }
 0x195   : > { %1019 = vmatpush.msra.mxu2 %v2750_v12  ;;  %1203 = vmatpush.msrb.mxu1 %v2740_v53 }
 0x196   : > { %1368 = vmatpush.msrb.mxu3 %v2728_v50  ;;  %1388 = vmatpush.msra.mxu0 %v2731_v51 }
 0x197   : > { %1020 = vmatpush.msra.mxu2 %v2759_v16  ;;  %1204 = vmatpush.msrb.mxu1 %v2750_v12 }
 0x198   : > { %1369 = vmatpush.msrb.mxu3 %v2737_v52  ;;  %1389 = vmatpush.msra.mxu0 %v2740_v53 }
 0x199   : > { %1021 = vmatpush.msra.mxu2 %v2774_v55  ;;  %1205 = vmatpush.msrb.mxu1 %v2759_v16 }
 0x19a   : > { %1370 = vmatpush.msrb.mxu3 %v2747_v54  ;;  %1390 = vmatpush.msra.mxu0 %v2750_v12 }
 0x19b   : > { %1022 = vmatpush.msra.mxu2 %v2785_v36  ;;  %1206 = vmatpush.msrb.mxu1 %v2774_v55 }
 0x19c   : > { %1371 = vmatpush.msrb.mxu3 %v2756_v13  ;;  %1391 = vmatpush.msra.mxu0 %v2759_v16  ;;  %v2101_v13 = vld [vmem:[%s2768_s23 + $0x40] sm:$0xff]  ;;  %s3114_s23 = scalar_lea.vmem %s2664_s17, %s2117_s16 }
 0x19d   : > { %1023 = vmatpush.msra.mxu2 %v2796_v61  ;;  %1207 = vmatpush.msrb.mxu1 %v2785_v36 }
 0x19e   : > { %1372 = vmatpush.msrb.mxu3 %v2771_v24  ;;  %1392 = vmatpush.msra.mxu0 %v2774_v55 }
 0x19f   : > { %1024 = vmatpush.msra.mxu2 %v2805_v1  ;;  %1208 = vmatpush.msrb.mxu1 %v2796_v61 }
 0x1a0   : > { %1373 = vmatpush.msrb.mxu3 %v2782_v32  ;;  %1393 = vmatpush.msra.mxu0 %v2785_v36 }
 0x1a1   : > { %1025 = vmatpush.msra.mxu2 %v2814_v5  ;;  %1209 = vmatpush.msrb.mxu1 %v2805_v1 }
 0x1a2   : > { %1374 = vmatpush.msrb.mxu3 %v2793_v60  ;;  %1394 = vmatpush.msra.mxu0 %v2796_v61 }
 0x1a3   : > { %1026 = vmatpush.msra.mxu2 %v2827_v10  ;;  %1210 = vmatpush.msrb.mxu1 %v2814_v5 }
 0x1a4   : > { %1375 = vmatpush.msrb.mxu3 %v2802_v0  ;;  %1395 = vmatpush.msra.mxu0 %v2805_v1 }
 0x1a5   : > { %1027 = vmatpush.msra.mxu2 %v2840_v15  ;;  %1211 = vmatpush.msrb.mxu1 %v2827_v10 }
 0x1a6   : > { %1376 = vmatpush.msrb.mxu3 %v2811_v4  ;;  %1396 = vmatpush.msra.mxu0 %v2814_v5 }
 0x1a7   : > { %1028 = vmatpush.msra.mxu2 %v2853_v21  ;;  %1212 = vmatpush.msrb.mxu1 %v2840_v15 }
 0x1a8   : > { %1377 = vmatpush.msrb.mxu3 %v2824_v9  ;;  %1397 = vmatpush.msra.mxu0 %v2827_v10 }
 0x1a9   : > { %1029 = vmatpush.msra.mxu2 %v2866_v25  ;;  %1213 = vmatpush.msrb.mxu1 %v2853_v21 }
 0x1aa   : > { %1378 = vmatpush.msrb.mxu3 %v2837_v14  ;;  %1398 = vmatpush.msra.mxu0 %v2840_v15 }
 0x1ab   : > { %1030 = vmatpush.msra.mxu2 %v2879_v34  ;;  %1214 = vmatpush.msrb.mxu1 %v2866_v25 }
 0x1ac   : > { %1379 = vmatpush.msrb.mxu3 %v2850_v18  ;;  %1399 = vmatpush.msra.mxu0 %v2853_v21 }
 0x1ad   : > { %1031 = vmatpush.msra.mxu2 %v2894_v27  ;;  %1215 = vmatpush.msrb.mxu1 %v2879_v34 }
 0x1ae   : > { %1380 = vmatpush.msrb.mxu3 %v2863_v23  ;;  %1400 = vmatpush.msra.mxu0 %v2866_v25 }
 0x1af   : > { %1216 = vmatpush.msrb.mxu1 %v2894_v27 }
 0x1b0   : > { %1381 = vmatpush.msrb.mxu3 %v2876_v33  ;;  %1401 = vmatpush.msra.mxu0 %v2879_v34 }
 0x1b2   : > { %1402 = vmatpush.msra.mxu0 %v2894_v27  ;;  %1382 = vmatpush.msrb.mxu3 %v2891_v38 }
 0x210   : > { %v868_v52 = vpop.f32.mrf.mxu0 }
 0x211   : > { %v869_v12 = vadd.f32 %v868_v52, %v807_v49  ;;  %v2106_v49 = vld [vmem:[%s3004_s27 + $0x48] sm:$0xff] }
 0x215   : > { %v828_v57 = vpop.f32.mrf.mxu2  ;;  %v848_v59 = vpop.f32.mrf.mxu3 }
 0x216   : > { %v829_v62 = vadd.f32 %v828_v57, %v805_v28  ;;  %v849_v63 = vadd.f32 %v848_v59, %v806_v56 }
 0x218   : > { %v871_v2 = vadd.f32 %v2099_v39, %v829_v62  ;;  %v891_v3 = vadd.f32 %v2100_v58, %v849_v63 }
 0x21a   : > { %v2102_v7 = vmul.f32 -1.442695, %v871_v2  ;;  %v2103_v8 = vmul.f32 -1.442695, %v891_v3  ;;  %v923_v3 = vpop.permute.xlu1 %922 }
 0x21b   : > { %vm924_vm0 = vcmp.eq.s32.totalorder %v923_v3, 1 }
 0x21c   : > { %2201 = vpow2.f32 %v2102_v7 }
 0x21d   : > { %2203 = vpow2.f32 %v2103_v8 }
 0x222   : > { %v2202_v29 = vpop.eup %2201 }
 0x223   : > { %v2204_v30 = vpop.eup %2203  ;;  %v875_v31 = vadd.f32 1.0, %v2202_v29 }
 0x224   : > { %v2885_v37 = vadd.f32 1.0, %v2204_v30 }
 0x225   : > { %2205 = vrcp.f32 %v875_v31  ;;  %v887_v47 = vand.u32 2147483648, %v875_v31  ;;  %v885_v51 = vand.u32 2147483647, %v875_v31  ;;  %vm881_vm9 = vweird.f32 %v875_v31 }
 0x226   : > { %2207 = vrcp.f32 %v2885_v37  ;;  %v907_v24 = vand.u32 2147483648, %v2885_v37  ;;  %vm901_vm13 = vweird.f32 %v2885_v37  ;;  %v905_v55 = vand.u32 2147483647, %v2885_v37 }
 0x227   : > { %v888_v54 = vor.u32 1.1754944e-38, %v887_v47  ;;  %vm886_vm11 = vcmp.eq.f32.partialorder %v885_v51, 8.507059e+37  ;;  %v3016_v51 = vld [vmem:[%s2346_s26 + $0xd0] sm:$0xff] }
 0x228   : > { %v908_v59 = vor.u32 1.1754944e-38, %v907_v24  ;;  %vm906_vm15 = vcmp.eq.f32.partialorder %v905_v55, 8.507059e+37 }
 0x22b   : > { %v2206_v41 = vpop.eup %2205 }
 0x22c   : > { %v2208_v42 = vpop.eup %2207  ;;  %v877_v43 = vmul.f32 %v2206_v41, %v875_v31  ;;  %vm882_vm8 = vweird.f32 %v2206_v41 }
 0x22d   : > { %v897_v44 = vmul.f32 %v2208_v42, %v2885_v37  ;;  %vm883_vm10 = vmor %vm881_vm9, %vm882_vm8  ;;  %vm902_vm12 = vweird.f32 %v2208_v42  ;;  %v2976_v37 = vld [vmem:[%s2346_s26 + $0x160] sm:$0xff] }
 0x22e   : > { %v878_v45 = vsub.f32 1.0, %v877_v43  ;;  %vm903_vm14 = vmor %vm901_vm13, %vm902_vm12  ;;  %v2991_v43 = vld [vmem:[%s2658_s13] sm:$0x7] }
 0x22f   : > { %v898_v48 = vsub.f32 1.0, %v897_v44  ;;  %v2994_v44 = vld [vmem:[%s2346_s26 + $0x118] sm:$0xff]  ;;  %v990_v47 = vperm.slane %v2991_v43, 0 }
 0x230   : > { %v879_v50 = vmul.f32 %v2206_v41, %v878_v45  ;;  %v2999_v45 = vld [vmem:[%s2346_s26 + $0x100] sm:$0xff] }
 0x231   : > { %v899_v28 = vmul.f32 %v2208_v42, %v898_v48  ;;  %v3010_v48 = vld [vmem:[%s2346_s26 + $0xe8] sm:$0xff] }
 0x232   : > { %v880_v53 = vadd.f32 %v2206_v41, %v879_v50 }
 0x233   : > { %v900_v39 = vadd.f32 %v2208_v42, %v899_v28  ;;  %v3021_v28 = vld [vmem:[%s2346_s26 + $0xb8] sm:$0xff] }
 0x234   : > { %v884_v20 = vsel %vm883_vm10, %v2206_v41, %v880_v53  ;;  %v2981_v41 = vld [vmem:[%s2346_s26 + $0x148] sm:$0xff] }
 0x235   : > { %v889_v56 = vsel %vm886_vm11, %v888_v54, %v884_v20  ;;  %v904_v58 = vsel %vm903_vm14, %v2208_v42, %v900_v39  ;;  %v2986_v42 = vld [vmem:[%s2346_s26 + $0x130] sm:$0xff]  ;;  %v991_v54 = vperm.slane %v2991_v43, 1 }
 0x236   : > { %v911_v16 = vmul.f32 %v889_v56, %v869_v12  ;;  %v909_v62 = vsel %vm906_vm15, %v908_v59, %v904_v58  ;;  %v2107_v20 = vld [vmem:[%s3004_s27 + $0x50] sm:$0xff]  ;;  %v2261_v59 = vld [vmem:[%s3259_s0] sm:$0xff] }
 0x237   : > { %v914_v63 = vsub.f32 1.0, %v909_v62  ;;  %v916_v8 = vmul.f32 %v909_v62, %v2714_v46 }
 0x238   : > { %v912_v57 = vadd.f32 %v2101_v13, %v911_v16 }
 0x23a   : > { %2209 = vtanh.f32 %v912_v57  ;;  %v1288_v57 = vstv %s3040_s30 }
 0x23b   : > { %vm1289_vm1 = vcmp.lt.s32.totalorder %v1288_v57, %v2261_v59 }
 0x240   : > { %v2210_v2 = vpop.eup %2209 }
 0x241   : > { %v915_v7 = vmul.f32 %v2210_v2, %v914_v63  ;;  %v1290_v63 = vsel %vm1289_vm1, 1, %v2286_v19  ;;  %v1474_v2 = vstv %s1302_s6  ;;  %s2133_s6 = smul.u32 4294967128, %s2276_s18 }
 0x242   : > { %1292 = vperm.xlu2 %2180, %v1290_v63   ;;  %vm1475_vm2 = vcmp.lt.s32.totalorder %v1474_v2, %v2261_v59 }
 0x243   : > { %v917_v29 = vadd.f32 %v916_v8, %v915_v7  ;;  %s3237_s7 = scalar_lea.vmem %s2664_s17, %s2133_s6 }
 0x245   : > { %v2961_v30 = vsel %vm924_vm0, %v917_v29, %v2714_v46  ;;  %v927_v31 = vsel %vm924_vm0, %v917_v29, 0.0  ;;  %v2971_v46 = vld [vmem:[%s2346_s26 + $0x178] sm:$0xff] }
 0x246   : > { %2105 = vst [vmem:[%s1977_s25 + $0x10] sm:$0xff] %v927_v31  ;;  %1012 = vmatmul.f32.vlgmr.msra.gmra.mxu1 %v2961_v30  ;;  %1032 = vmatmul.f32.vlgmr.msra.gmra.mxu2 %v2961_v30  ;;  %v1476_v31 = vsel %vm1475_vm2, 1, %v2286_v19  ;;  %s1995_s25 = scalar_lea.vmem %s2678_s29, %s2123_s24 }
 0x247   : > { %1052 = vmatmul.f32.vlgmr.msra.gmra.mxu3 %v2961_v30  ;;  %1221 = vmatpush.msrb.mxu2 %v2971_v46 }
 0x248   : > { %1407 = vmatpush.msra.mxu1 %v2971_v46 }
 0x249   : > { %1222 = vmatpush.msrb.mxu2 %v2976_v37 }
 0x24a   : > { %1408 = vmatpush.msra.mxu1 %v2976_v37  ;;  %1478 = vperm.xlu2 %2180, %v1476_v31  }
 0x24b   : > { %1223 = vmatpush.msrb.mxu2 %v2981_v41 }
 0x24c   : > { %1409 = vmatpush.msra.mxu1 %v2981_v41 }
 0x24d   : > { %1224 = vmatpush.msrb.mxu2 %v2986_v42 }
 0x24e   : > { %1410 = vmatpush.msra.mxu1 %v2986_v42 }
 0x24f   : > { %1225 = vmatpush.msrb.mxu2 %v2994_v44 }
 0x250   : > { %1411 = vmatpush.msra.mxu1 %v2994_v44 }
 0x251   : > { %1226 = vmatpush.msrb.mxu2 %v2999_v45 }
 0x252   : > { %1412 = vmatpush.msra.mxu1 %v2999_v45 }
 0x253   : > { %1227 = vmatpush.msrb.mxu2 %v3010_v48 }
 0x254   : > { %1413 = vmatpush.msra.mxu1 %v3010_v48 }
 0x255   : > { %1228 = vmatpush.msrb.mxu2 %v3016_v51 }
 0x256   : > { %1414 = vmatpush.msra.mxu1 %v3016_v51 }
 0x257   : > { %1229 = vmatpush.msrb.mxu2 %v3021_v28 }
 0x258   : > { %1415 = vmatpush.msra.mxu1 %v3021_v28 }
 0x259   : > { %1230 = vmatpush.msrb.mxu2 %v2817_v6 }
 0x25a   : > { %1416 = vmatpush.msra.mxu1 %v2817_v6 }
 0x25b   : > { %1231 = vmatpush.msrb.mxu2 %v2830_v11 }
 0x25c   : > { %1417 = vmatpush.msra.mxu1 %v2830_v11 }
 0x25d   : > { %1232 = vmatpush.msrb.mxu2 %v2843_v17 }
 0x25e   : > { %1418 = vmatpush.msra.mxu1 %v2843_v17 }
 0x25f   : > { %1233 = vmatpush.msrb.mxu2 %v2856_v22 }
 0x260   : > { %1419 = vmatpush.msra.mxu1 %v2856_v22 }
 0x261   : > { %1234 = vmatpush.msrb.mxu2 %v2869_v26 }
 0x262   : > { %1420 = vmatpush.msra.mxu1 %v2869_v26 }
 0x263   : > { %1235 = vmatpush.msrb.mxu2 %v2882_v35 }
 0x264   : > { %1421 = vmatpush.msra.mxu1 %v2882_v35 }
 0x265   : > { %1236 = vmatpush.msrb.mxu2 %v2897_v40 }
 0x266   : > { %1422 = vmatpush.msra.mxu1 %v2897_v40 }
 0x2c3   : > { %v1013_v50 = vpop.f32.mrf.mxu1 }
 0x2c4   : > { %v1014_v52 = vadd.f32 %v1013_v50, %v990_v47  ;;  %v992_v47 = vperm.slane %v2991_v43, 2 }
 0x2c6   : > { %v1056_v53 = vadd.f32 %v2106_v49, %v1014_v52 }
 0x2c8   : > { %v2109_v12 = vmul.f32 -1.442695, %v1056_v53 }
 0x2c9   : > { %v1033_v13 = vpop.f32.mrf.mxu2 }
 0x2ca   : > { %2211 = vpow2.f32 %v2109_v12  ;;  %v1034_v56 = vadd.f32 %v1033_v13, %v991_v54  ;;  %v1053_v53 = vpop.f32.mrf.mxu3 }
 0x2cc   : > { %v1076_v39 = vadd.f32 %v2107_v20, %v1034_v56  ;;  %v1054_v56 = vadd.f32 %v1053_v53, %v992_v47  ;;  %v1108_v47 = vpop.permute.xlu1 %1107  ;;  %v1121_v53 = vld [vmem:[%s3081_s12] sm:$0xff] }
 0x2cd   : > { %vm1109_vm11 = vcmp.eq.s32.totalorder %v1108_v47, 1 }
 0x2ce   : > { %v2110_v16 = vmul.f32 -1.442695, %v1076_v39 }
 0x2d0   : > { %v2212_v24 = vpop.eup %2211  ;;  %2213 = vpow2.f32 %v2110_v16  ;;  %v2108_v16 = vld [vmem:[%s3004_s27 + $0x58] sm:$0xff]  ;;  %s2125_s27 = smul.u32 4294967176, %s2276_s18 }
 0x2d1   : > { %v1060_v55 = vadd.f32 1.0, %v2212_v24 }
 0x2d2   : > { %s3190_s28 = scalar_lea.vmem %s2664_s17, %s2125_s27  ;;  %s2084_s17 = sshll.u32 %s2340_s22, 3 }
 0x2d3   : > { %2215 = vrcp.f32 %v1060_v55  ;;  %v1072_v29 = vand.u32 2147483648, %v1060_v55  ;;  %v1070_v50 = vand.u32 2147483647, %v1060_v55  ;;  %vm1066_vm4 = vweird.f32 %v1060_v55  ;;  %s362_s11 = scalar_lea.vmem %s3264_s5, %s2084_s17 }
 0x2d5   : > { %v1073_v20 = vor.u32 1.1754944e-38, %v1072_v29  ;;  %vm1071_vm6 = vcmp.eq.f32.partialorder %v1070_v50, 8.507059e+37 }
 0x2d6   : > { %v2214_v58 = vpop.eup %2213 }
 0x2d7   : > { %v1080_v62 = vadd.f32 1.0, %v2214_v58 }
 0x2d9   : > { %v2216_v3 = vpop.eup %2215  ;;  %2217 = vrcp.f32 %v1080_v62  ;;  %v1092_v43 = vand.u32 2147483648, %v1080_v62  ;;  %v1090_v58 = vand.u32 2147483647, %v1080_v62  ;;  %vm1086_vm8 = vweird.f32 %v1080_v62 }
 0x2da   : > { %v1062_v7 = vmul.f32 %v2216_v3, %v1060_v55  ;;  %vm1067_vm3 = vweird.f32 %v2216_v3 }
 0x2db   : > { %vm1068_vm5 = vmor %vm1066_vm4, %vm1067_vm3  ;;  %v1093_v55 = vor.u32 1.1754944e-38, %v1092_v43  ;;  %vm1091_vm10 = vcmp.eq.f32.partialorder %v1090_v58, 8.507059e+37 }
 0x2dc   : > { %v1063_v8 = vsub.f32 1.0, %v1062_v7 }
 0x2de   : > { %v1064_v49 = vmul.f32 %v2216_v3, %v1063_v8 }
 0x2df   : > { %v2218_v52 = vpop.eup %2217 }
 0x2e0   : > { %v1082_v54 = vmul.f32 %v2218_v52, %v1080_v62  ;;  %v1065_v12 = vadd.f32 %v2216_v3, %v1064_v49  ;;  %vm1087_vm7 = vweird.f32 %v2218_v52 }
 0x2e1   : > { %vm1088_vm9 = vmor %vm1086_vm8, %vm1087_vm7 }
 0x2e2   : > { %v1083_v13 = vsub.f32 1.0, %v1082_v54  ;;  %v1069_v39 = vsel %vm1068_vm5, %v2216_v3, %v1065_v12  ;;  %v1122_v54 = vld [vmem:[%s3081_s12 + $0x8] sm:$0xff] }
 0x2e3   : > { %v1074_v19 = vsel %vm1071_vm6, %v1073_v20, %v1069_v39 }
 0x2e4   : > { %v1084_v24 = vmul.f32 %v2218_v52, %v1083_v13  ;;  %v1096_v57 = vmul.f32 %v1074_v19, %v1054_v56 }
 0x2e6   : > { %v1085_v59 = vadd.f32 %v2218_v52, %v1084_v24  ;;  %v1097_v63 = vadd.f32 %v2108_v16, %v1096_v57 }
 0x2e8   : > { %v1089_v2 = vsel %vm1088_vm9, %v2218_v52, %v1085_v59  ;;  %2219 = vtanh.f32 %v1097_v63 }
 0x2e9   : > { %v1094_v7 = vsel %vm1091_vm10, %v1093_v55, %v1089_v2 }
 0x2ea   : > { %v1099_v3 = vsub.f32 1.0, %v1094_v7  ;;  %v1101_v31 = vmul.f32 %v1094_v7, %v2961_v30 }
 0x2ee   : > { %v2220_v8 = vpop.eup %2219 }
 0x2ef   : > { %v1100_v29 = vmul.f32 %v2220_v8, %v1099_v3 }
 0x2f1   : > { %v1102_v49 = vadd.f32 %v1101_v31, %v1100_v29 }
 0x2f3   : > { %v3057_v62 = vsel %vm1109_vm11, %v1102_v49, %v2961_v30  ;;  %v1112_v50 = vsel %vm1109_vm11, %v1102_v49, 0.0  ;;  %v1173_v30 = vld [vmem:[%s2658_s13] sm:$0x7] }
 0x2f4   : > { %2112 = vst [vmem:[%s1983_s10 + $0x18] sm:$0xff] %v1112_v50  ;;  %1197 = vmatmul.f32.vlgmr.msrb.gmra.mxu0 %v3057_v62  ;;  %1217 = vmatmul.f32.vlgmr.msrb.gmra.mxu1 %v3057_v62  ;;  %v1175_v52 = vperm.slane %v1173_v30, 0  ;;  %v1177_v55 = vperm.slane %v1173_v30, 2  ;;  %v1123_v50 = vld [vmem:[%s3081_s12 + $0x10] sm:$0xff] }
 0x2f5   : > { %1237 = vmatmul.f32.vlgmr.msrb.gmra.mxu2 %v3057_v62  ;;  %1593 = vmatpush.msrb.mxu0 %v2971_v46 }
 0x2f7   : > { %1594 = vmatpush.msrb.mxu0 %v2976_v37 }
 0x2f9   : > { %1595 = vmatpush.msrb.mxu0 %v2981_v41 }
 0x2fb   : > { %1596 = vmatpush.msrb.mxu0 %v2986_v42 }
 0x2fd   : > { %1597 = vmatpush.msrb.mxu0 %v2994_v44 }
 0x2ff   : > { %1598 = vmatpush.msrb.mxu0 %v2999_v45 }
 0x301   : > { %1599 = vmatpush.msrb.mxu0 %v3010_v48 }
 0x303   : > { %1600 = vmatpush.msrb.mxu0 %v3016_v51 }
 0x305   : > { %1601 = vmatpush.msrb.mxu0 %v3021_v28 }
 0x307   : > { %1602 = vmatpush.msrb.mxu0 %v2817_v6  ;;  %v1176_v6 = vperm.slane %v1173_v30, 1 }
 0x309   : > { %1603 = vmatpush.msrb.mxu0 %v2830_v11 }
 0x30b   : > { %1604 = vmatpush.msrb.mxu0 %v2843_v17 }
 0x30d   : > { %1605 = vmatpush.msrb.mxu0 %v2856_v22 }
 0x30f   : > { %1606 = vmatpush.msrb.mxu0 %v2869_v26 }
 0x311   : > { %1607 = vmatpush.msrb.mxu0 %v2882_v35 }
 0x313   : > { %1608 = vmatpush.msrb.mxu0 %v2897_v40 }
 0x371   : > { %v1198_v11 = vpop.f32.mrf.mxu0  ;;  %v1218_v17 = vpop.f32.mrf.mxu1 }
 0x372   : > { %v1199_v12 = vadd.f32 %v1198_v11, %v1175_v52  ;;  %v1219_v22 = vadd.f32 %v1218_v17, %v1176_v6 }
 0x374   : > { %v1241_v20 = vadd.f32 %v1199_v12, %v1121_v53  ;;  %v1261_v26 = vadd.f32 %v1219_v22, %v1122_v54 }
 0x376   : > { %v2114_v13 = vmul.f32 -1.442695, %v1241_v20  ;;  %v2115_v35 = vmul.f32 -1.442695, %v1261_v26 }
 0x378   : > { %2221 = vpow2.f32 %v2114_v13  ;;  %v1238_v3 = vpop.f32.mrf.mxu2  ;;  %v1293_v13 = vpop.permute.xlu2 %1292 }
 0x379   : > { %2223 = vpow2.f32 %v2115_v35  ;;  %v1239_v47 = vadd.f32 %v1238_v3, %v1177_v55  ;;  %vm1294_vm4 = vcmp.eq.s32.totalorder %v1293_v13, 1  ;;  %v1533_v55 = vld [vmem:[%s2346_s26 + $0x120] sm:$0xff] }
 0x37e   : > { %v2222_v40 = vpop.eup %2221 }
 0x37f   : > { %v2224_v56 = vpop.eup %2223  ;;  %v1245_v39 = vadd.f32 1.0, %v2222_v40 }
 0x380   : > { %v1265_v16 = vadd.f32 1.0, %v2224_v56  ;;  %v1479_v13 = vpop.permute.xlu2 %1478 }
 0x381   : > { %2225 = vrcp.f32 %v1245_v39  ;;  %v1257_v59 = vand.u32 2147483648, %v1245_v39  ;;  %v1255_v7 = vand.u32 2147483647, %v1245_v39  ;;  %vm1251_vm13 = vweird.f32 %v1245_v39 }
 0x382   : > { %2227 = vrcp.f32 %v1265_v16  ;;  %v1277_v11 = vand.u32 2147483648, %v1265_v16  ;;  %vm1271_vm1 = vweird.f32 %v1265_v16  ;;  %v1275_v30 = vand.u32 2147483647, %v1265_v16 }
 0x383   : > { %v1258_v31 = vor.u32 1.1754944e-38, %v1257_v59  ;;  %vm1256_vm15 = vcmp.eq.f32.partialorder %v1255_v7, 8.507059e+37  ;;  %v3111_v59 = vld [vmem:[%s2346_s26 + $0x140] sm:$0xff] }
 0x384   : > { %v1278_v12 = vor.u32 1.1754944e-38, %v1277_v11  ;;  %vm1276_vm3 = vcmp.eq.f32.partialorder %v1275_v30, 8.507059e+37  ;;  %v2119_v7 = vld [vmem:[%s3114_s23 + $0x80] sm:$0xff] }
 0x387   : > { %v2226_v19 = vpop.eup %2225 }
 0x388   : > { %v2228_v24 = vpop.eup %2227  ;;  %v1247_v43 = vmul.f32 %v2226_v19, %v1245_v39  ;;  %vm1252_vm12 = vweird.f32 %v2226_v19 }
 0x389   : > { %v1267_v57 = vmul.f32 %v2228_v24, %v1265_v16  ;;  %vm1253_vm14 = vmor %vm1251_vm13, %vm1252_vm12  ;;  %vm1272_vm0 = vweird.f32 %v2228_v24  ;;  %vm1480_vm13 = vcmp.eq.s32.totalorder %v1479_v13, 1 }
 0x38a   : > { %v1248_v58 = vsub.f32 1.0, %v1247_v43  ;;  %vm1273_vm2 = vmor %vm1271_vm1, %vm1272_vm0  ;;  %v1539_v43 = vld [vmem:[%s2346_s26 + $0x150] sm:$0xff] }
 0x38b   : > { %v1268_v63 = vsub.f32 1.0, %v1267_v57  ;;  %v3106_v57 = vld [vmem:[%s2346_s26 + $0x158] sm:$0xff] }
 0x38c   : > { %v1249_v2 = vmul.f32 %v2226_v19, %v1248_v58  ;;  %v1536_v58 = vld [vmem:[%s2346_s26 + $0x138] sm:$0xff] }
 0x38d   : > { %v1269_v8 = vmul.f32 %v2228_v24, %v1268_v63 }
 0x38e   : > { %v1250_v29 = vadd.f32 %v2226_v19, %v1249_v2  ;;  %v3120_v2 = vld [vmem:[%s2346_s26 + $0x128] sm:$0xff] }
 0x38f   : > { %v1270_v6 = vadd.f32 %v2228_v24, %v1269_v8  ;;  %v1530_v8 = vld [vmem:[%s2346_s26 + $0x108] sm:$0xff] }
 0x390   : > { %v1254_v49 = vsel %vm1253_vm14, %v2226_v19, %v1250_v29  ;;  %v1542_v19 = vld [vmem:[%s2346_s26 + $0x168] sm:$0xff]  ;;  %v1531_v29 = vld [vmem:[%s2346_s26 + $0x110] sm:$0xff] }
 0x391   : > { %v1259_v52 = vsel %vm1256_vm15, %v1258_v31, %v1254_v49  ;;  %v1274_v17 = vsel %vm1273_vm2, %v2228_v24, %v1270_v6  ;;  %v3097_v24 = vld [vmem:[%s2346_s26 + $0x170] sm:$0xff]  ;;  %1553 = vmatpush.msra.mxu2 %v1542_v19  ;;  %1739 = vmatpush.msrb.mxu1 %v1542_v19  ;;  %v3128_v49 = vld [vmem:[%s2346_s26 + $0xf8] sm:$0xff]  ;;  %v3187_v19 = vld [vmem:[%s2658_s13] sm:$0x7] }
 0x392   : > { %v1281_v53 = vmul.f32 %v1259_v52, %v1239_v47  ;;  %v1279_v22 = vsel %vm1276_vm3, %v1278_v12, %v1274_v17  ;;  %1573 = vmatpush.msra.mxu3 %v3097_v24  ;;  %v1527_v47 = vld [vmem:[%s2346_s26 + $0xf0] sm:$0xff] }
 0x393   : > { %v1284_v20 = vsub.f32 1.0, %v1279_v22  ;;  %v1286_v40 = vmul.f32 %v1279_v22, %v3057_v62  ;;  %1554 = vmatpush.msra.mxu2 %v1539_v43  ;;  %1740 = vmatpush.msrb.mxu1 %v1539_v43  ;;  %v1711_v43 = vld [vmem:[%s2346_s26 + $0xe0] sm:$0xff] }
 0x394   : > { %v1282_v54 = vadd.f32 %v1281_v53, %v1123_v50  ;;  %1574 = vmatpush.msra.mxu3 %v3106_v57  ;;  %v2118_v53 = vld [vmem:[%s3114_s23 + $0x78] sm:$0xff] }
 0x395   : > { %1555 = vmatpush.msra.mxu2 %v1536_v58  ;;  %1741 = vmatpush.msrb.mxu1 %v1536_v58 }
 0x396   : > { %2229 = vtanh.f32 %v1282_v54  ;;  %1575 = vmatpush.msra.mxu3 %v3111_v59 }
 0x397   : > { %1556 = vmatpush.msra.mxu2 %v1533_v55  ;;  %1742 = vmatpush.msrb.mxu1 %v1533_v55  ;;  %v1707_v55 = vld [vmem:[%s2346_s26 + $0xc0] sm:$0xff] }
 0x398   : > { %1576 = vmatpush.msra.mxu3 %v3120_v2 }
 0x399   : > { %1557 = vmatpush.msra.mxu2 %v1530_v8  ;;  %1743 = vmatpush.msrb.mxu1 %v1530_v8  ;;  %v1704_v8 = vld [vmem:[%s2346_s26 + $0xa8] sm:$0xff] }
 0x39a   : > { %1577 = vmatpush.msra.mxu3 %v1531_v29 }
 0x39b   : > { %1558 = vmatpush.msra.mxu2 %v1527_v47  ;;  %1744 = vmatpush.msrb.mxu1 %v1527_v47 }
 0x39c   : > { %v2230_v26 = vpop.eup %2229  ;;  %1578 = vmatpush.msra.mxu3 %v3128_v49 }
 0x39d   : > { %v1285_v35 = vmul.f32 %v2230_v26, %v1284_v20  ;;  %1559 = vmatpush.msra.mxu2 %v2782_v32 }
 0x39e   : > { %1579 = vmatpush.msra.mxu3 %v2785_v36 }
 0x39f   : > { %v1287_v56 = vadd.f32 %v1286_v40, %v1285_v35  ;;  %1560 = vmatpush.msra.mxu2 %v2793_v60 }
 0x3a0   : > { %1580 = vmatpush.msra.mxu3 %v2796_v61 }
 0x3a1   : > { %v3090_v39 = vsel %vm1294_vm4, %v1287_v56, %v3057_v62  ;;  %v1297_v16 = vsel %vm1294_vm4, %v1287_v56, 0.0  ;;  %v3102_v62 = vld [vmem:[%s2658_s13] sm:$0x7]  ;;  %1561 = vmatpush.msra.mxu2 %v2802_v0 }
 0x3a2   : > { %1300 = vst [vmem:[%s1299_s15] sm:$0xff] %v1297_v16  ;;  %1383 = vmatmul.f32.vlgmr.msrb.gmra.mxu3 %v3090_v39  ;;  %1403 = vmatmul.f32.vlgmr.msra.gmra.mxu0 %v3090_v39  ;;  %v1362_v63 = vperm.slane %v3102_v62, 1  ;;  %v1361_v52 = vperm.slane %v3102_v62, 0 }
 0x3a3   : > { %1423 = vmatmul.f32.vlgmr.msra.gmra.mxu1 %v3090_v39  ;;  %1581 = vmatpush.msra.mxu3 %v2805_v1 }
 0x3a4   : > { %1562 = vmatpush.msra.mxu2 %v2811_v4 }
 0x3a5   : > { %1582 = vmatpush.msra.mxu3 %v2814_v5 }
 0x3a6   : > { %1563 = vmatpush.msra.mxu2 %v2824_v9 }
 0x3a7   : > { %1583 = vmatpush.msra.mxu3 %v2827_v10 }
 0x3a8   : > { %1564 = vmatpush.msra.mxu2 %v2837_v14 }
 0x3a9   : > { %1584 = vmatpush.msra.mxu3 %v2840_v15  ;;  %v1363_v15 = vperm.slane %v3102_v62, 2  ;;  %v1710_v62 = vld [vmem:[%s2346_s26 + $0xd8] sm:$0xff] }
 0x3aa   : > { %1565 = vmatpush.msra.mxu2 %v2850_v18  ;;  %1745 = vmatpush.msrb.mxu1 %v1710_v62 }
 0x3ab   : > { %1585 = vmatpush.msra.mxu3 %v2853_v21 }
 0x3ac   : > { %1566 = vmatpush.msra.mxu2 %v2863_v23  ;;  %1746 = vmatpush.msrb.mxu1 %v1707_v55  ;;  %v1665_v55 = vpop.permute.xlu0 %1664 }
 0x3ad   : > { %1586 = vmatpush.msra.mxu3 %v2866_v25 }
 0x3ae   : > { %1567 = vmatpush.msra.mxu2 %v2876_v33  ;;  %1747 = vmatpush.msrb.mxu1 %v1704_v8 }
 0x3af   : > { %1587 = vmatpush.msra.mxu3 %v2879_v34 }
 0x3b0   : > { %1568 = vmatpush.msra.mxu2 %v2891_v38 }
 0x3b1   : > { %1588 = vmatpush.msra.mxu3 %v2894_v27 }
 0x3b2   : > { %1759 = vmatpush.msrb.mxu2 %v3097_v24  ;;  %v1548_v24 = vperm.slane %v3187_v19, 1 }
 0x3b3   : > { %1779 = vmatpush.msrb.mxu3 %v2971_v46  ;;  %v2120_v46 = vld [vmem:[%s3114_s23 + $0x88] sm:$0xff] }
 0x3b4   : > { %1760 = vmatpush.msrb.mxu2 %v3106_v57  ;;  %v2126_v57 = vld [vmem:[%s3190_s28 + $0x90] sm:$0xff] }
 0x3b5   : > { %1780 = vmatpush.msrb.mxu3 %v2976_v37 }
 0x3b6   : > { %1761 = vmatpush.msrb.mxu2 %v3111_v59  ;;  %v2127_v59 = vld [vmem:[%s3190_s28 + $0x98] sm:$0xff] }
 0x3b7   : > { %1781 = vmatpush.msrb.mxu3 %v2981_v41 }
 0x3b8   : > { %1762 = vmatpush.msrb.mxu2 %v3120_v2  ;;  %v1708_v2 = vld [vmem:[%s2346_s26 + $0xc8] sm:$0xff] }
 0x3b9   : > { %1782 = vmatpush.msrb.mxu3 %v2986_v42 }
 0x3ba   : > { %1763 = vmatpush.msrb.mxu2 %v1531_v29  ;;  %v1705_v29 = vld [vmem:[%s2346_s26 + $0xb0] sm:$0xff] }
 0x3bb   : > { %1783 = vmatpush.msrb.mxu3 %v2994_v44 }
 0x3bc   : > { %1764 = vmatpush.msrb.mxu2 %v3128_v49  ;;  %v1701_v49 = vld [vmem:[%s2346_s26 + $0x90] sm:$0xff] }
 0x3bd   : > { %1784 = vmatpush.msrb.mxu3 %v2999_v45  ;;  %1748 = vmatpush.msrb.mxu1 %v1701_v49  ;;  %v2134_v49 = vld [vmem:[%s3237_s7 + $0xa8] sm:$0xff] }
 0x3be   : > { %1765 = vmatpush.msrb.mxu2 %v1711_v43 }
 0x3bf   : > { %1785 = vmatpush.msrb.mxu3 %v3010_v48 }
 0x3c0   : > { %1766 = vmatpush.msrb.mxu2 %v1708_v2 }
 0x3c1   : > { %1786 = vmatpush.msrb.mxu3 %v3016_v51 }
 0x3c2   : > { %1767 = vmatpush.msrb.mxu2 %v1705_v29 }
 0x3c3   : > { %1787 = vmatpush.msrb.mxu3 %v3021_v28 }
 0x41f   : > { %v1404_v3 = vpop.f32.mrf.mxu0 }
 0x420   : > { %v1405_v31 = vadd.f32 %v1404_v3, %v1362_v63  ;;  %v1424_v25 = vpop.f32.mrf.mxu1 }
 0x421   : > { %v1425_v38 = vadd.f32 %v1424_v25, %v1363_v15  ;;  %v1688_v15 = vld [vmem:[%s2346_s26 + $0x28] sm:$0xff] }
 0x422   : > { %v1447_v50 = vadd.f32 %v2119_v7, %v1405_v31  ;;  %v1684_v25 = vld [vmem:[%s2346_s26 + $0x8] sm:$0xff] }
 0x424   : > { %v2122_v6 = vmul.f32 -1.442695, %v1447_v50  ;;  %v1702_v50 = vld [vmem:[%s2346_s26 + $0x98] sm:$0xff] }
 0x425   : > { %v1384_v11 = vpop.f32.mrf.mxu3  ;;  %1768 = vmatpush.msrb.mxu2 %v1702_v50 }
 0x426   : > { %2231 = vpow2.f32 %v2122_v6  ;;  %v1385_v30 = vadd.f32 %v1384_v11, %v1361_v52  ;;  %v1703_v52 = vld [vmem:[%s2346_s26 + $0xa0] sm:$0xff]  ;;  %v1698_v11 = vld [vmem:[%s2346_s26 + $0x78] sm:$0xff] }
 0x427   : > { %1788 = vmatpush.msrb.mxu3 %v1703_v52  ;;  %1749 = vmatpush.msrb.mxu1 %v1698_v11  ;;  %v2135_v11 = vld [vmem:[%s3237_s7 + $0xb0] sm:$0xff] }
 0x428   : > { %v1427_v54 = vadd.f32 %v2118_v53, %v1385_v30  ;;  %v1699_v30 = vld [vmem:[%s2346_s26 + $0x80] sm:$0xff] }
 0x429   : > { %1769 = vmatpush.msrb.mxu2 %v1699_v30 }
 0x42a   : > { %v2121_v17 = vmul.f32 -1.442695, %v1427_v54  ;;  %v1700_v54 = vld [vmem:[%s2346_s26 + $0x88] sm:$0xff] }
 0x42b   : > { %1789 = vmatpush.msrb.mxu3 %v1700_v54 }
 0x42c   : > { %v2232_v32 = vpop.eup %2231  ;;  %2233 = vpow2.f32 %v2121_v17  ;;  %v1695_v17 = vld [vmem:[%s2346_s26 + $0x60] sm:$0xff] }
 0x42d   : > { %v3143_v36 = vadd.f32 1.0, %v2232_v32  ;;  %v1696_v32 = vld [vmem:[%s2346_s26 + $0x68] sm:$0xff]  ;;  %1750 = vmatpush.msrb.mxu1 %v1695_v17 }
 0x42e   : > { %1770 = vmatpush.msrb.mxu2 %v1696_v32 }
 0x42f   : > { %2235 = vrcp.f32 %v3143_v36  ;;  %v1463_v42 = vand.u32 2147483648, %v3143_v36  ;;  %vm1457_vm10 = vweird.f32 %v3143_v36  ;;  %v1461_v45 = vand.u32 2147483647, %v3143_v36 }
 0x431   : > { %v1464_v22 = vor.u32 1.1754944e-38, %v1463_v42  ;;  %vm1462_vm12 = vcmp.eq.f32.partialorder %v1461_v45, 8.507059e+37  ;;  %v1549_v45 = vperm.slane %v3187_v19, 2 }
 0x432   : > { %v2234_v60 = vpop.eup %2233 }
 0x433   : > { %v1431_v61 = vadd.f32 1.0, %v2234_v60  ;;  %v1692_v60 = vld [vmem:[%s2346_s26 + $0x48] sm:$0xff] }
 0x434   : > { %1751 = vmatpush.msrb.mxu1 %v1692_v60 }
 0x435   : > { %2237 = vrcp.f32 %v1431_v61  ;;  %v2236_v0 = vpop.eup %2235  ;;  %v1443_v14 = vand.u32 2147483648, %v1431_v61  ;;  %v1441_v21 = vand.u32 2147483647, %v1431_v61  ;;  %vm1437_vm6 = vweird.f32 %v1431_v61 }
 0x436   : > { %v1453_v1 = vmul.f32 %v2236_v0, %v3143_v36  ;;  %vm1458_vm9 = vweird.f32 %v2236_v0  ;;  %v1697_v36 = vld [vmem:[%s2346_s26 + $0x70] sm:$0xff] }
 0x437   : > { %v1444_v34 = vor.u32 1.1754944e-38, %v1443_v14  ;;  %vm1442_vm8 = vcmp.eq.f32.partialorder %v1441_v21, 8.507059e+37  ;;  %vm1459_vm11 = vmor %vm1457_vm10, %vm1458_vm9  ;;  %1790 = vmatpush.msrb.mxu3 %v1697_v36 }
 0x438   : > { %v1454_v9 = vsub.f32 1.0, %v1453_v1  ;;  %v1689_v1 = vld [vmem:[%s2346_s26 + $0x30] sm:$0xff] }
 0x439   : > { %1752 = vmatpush.msrb.mxu1 %v1689_v1 }
 0x43a   : > { %v1455_v23 = vmul.f32 %v2236_v0, %v1454_v9  ;;  %v1686_v9 = vld [vmem:[%s2346_s26 + $0x18] sm:$0xff] }
 0x43b   : > { %v2238_v4 = vpop.eup %2237  ;;  %1753 = vmatpush.msrb.mxu1 %v1686_v9 }
 0x43c   : > { %v1433_v5 = vmul.f32 %v2238_v4, %v1431_v61  ;;  %vm1438_vm5 = vweird.f32 %v2238_v4  ;;  %v1456_v41 = vadd.f32 %v2236_v0, %v1455_v23  ;;  %v1693_v61 = vld [vmem:[%s2346_s26 + $0x50] sm:$0xff]  ;;  %v1683_v23 = vld [vmem:[%s2346_s26] sm:$0xff] }
 0x43d   : > { %vm1439_vm7 = vmor %vm1437_vm6, %vm1438_vm5  ;;  %1771 = vmatpush.msrb.mxu2 %v1693_v61  ;;  %1754 = vmatpush.msrb.mxu1 %v1683_v23  ;;  %vm1666_vm6 = vcmp.eq.s32.totalorder %v1665_v55, 1 }
 0x43e   : > { %v1434_v10 = vsub.f32 1.0, %v1433_v5  ;;  %v1460_v12 = vsel %vm1459_vm11, %v2236_v0, %v1456_v41  ;;  %v1694_v0 = vld [vmem:[%s2346_s26 + $0x58] sm:$0xff]  ;;  %v1691_v5 = vld [vmem:[%s2346_s26 + $0x40] sm:$0xff] }
 0x43f   : > { %v1465_v20 = vsel %vm1462_vm12, %v1464_v22, %v1460_v12  ;;  %1791 = vmatpush.msrb.mxu3 %v1694_v0 }
 0x440   : > { %v1435_v18 = vmul.f32 %v2238_v4, %v1434_v10  ;;  %v1470_v26 = vsub.f32 1.0, %v1465_v20  ;;  %v1472_v40 = vmul.f32 %v1465_v20, %v3090_v39  ;;  %v1687_v10 = vld [vmem:[%s2346_s26 + $0x20] sm:$0xff] }
 0x441   : > { %1792 = vmatpush.msrb.mxu3 %v1691_v5 }
 0x442   : > { %v1436_v33 = vadd.f32 %v2238_v4, %v1435_v18 }
 0x443   : > { %1793 = vmatpush.msrb.mxu3 %v1688_v15 }
 0x444   : > { %v1440_v27 = vsel %vm1439_vm7, %v2238_v4, %v1436_v33  ;;  %v1690_v4 = vld [vmem:[%s2346_s26 + $0x38] sm:$0xff] }
 0x445   : > { %v1445_v37 = vsel %vm1442_vm8, %v1444_v34, %v1440_v27  ;;  %1772 = vmatpush.msrb.mxu2 %v1690_v4  ;;  %v1685_v34 = vld [vmem:[%s2346_s26 + $0x10] sm:$0xff]  ;;  %s2131_s26 = smul.u32 4294967256, %s2276_s18 }
 0x446   : > { %v1467_v44 = vmul.f32 %v1445_v37, %v1425_v38  ;;  %1794 = vmatpush.msrb.mxu3 %v1685_v34 }
 0x447   : > { %1773 = vmatpush.msrb.mxu2 %v1687_v10  ;;  %s2003_s30 = scalar_lea.vmem %s2678_s29, %s2131_s26 }
 0x448   : > { %v1468_v48 = vadd.f32 %v2120_v46, %v1467_v44 }
 0x449   : > { %1774 = vmatpush.msrb.mxu2 %v1684_v25 }
 0x44a   : > { %2239 = vtanh.f32 %v1468_v48 }
 0x450   : > { %v2240_v51 = vpop.eup %2239 }
 0x451   : > { %v1471_v35 = vmul.f32 %v2240_v51, %v1470_v26 }
 0x453   : > { %v1473_v28 = vadd.f32 %v1472_v40, %v1471_v35  ;;  %v2128_v40 = vld [vmem:[%s3190_s28 + $0xa0] sm:$0xff] }
 0x455   : > { %v3180_v56 = vsel %vm1480_vm13, %v1473_v28, %v3090_v39  ;;  %v1483_v16 = vsel %vm1480_vm13, %v1473_v28, 0.0  ;;  %v1547_v39 = vperm.slane %v3187_v19, 0 }
 0x456   : > { %2124 = vst [vmem:[%s1995_s25 + $0x28] sm:$0xff] %v1483_v16  ;;  %1569 = vmatmul.f32.vlgmr.msra.gmra.mxu2 %v3180_v56  ;;  %1589 = vmatmul.f32.vlgmr.msra.gmra.mxu3 %v3180_v56 }
 0x457   : > { %1609 = vmatmul.f32.vlgmr.msrb.gmra.mxu0 %v3180_v56 }
 0x4d4   : > { %v1610_v22 = vpop.f32.mrf.mxu0 }
 0x4d5   : > { %v1611_v13 = vadd.f32 %v1610_v22, %v1549_v45 }
 0x4d9   : > { %v1570_v58 = vpop.f32.mrf.mxu2  ;;  %v1590_v63 = vpop.f32.mrf.mxu3 }
 0x4da   : > { %v1571_v7 = vadd.f32 %v1570_v58, %v1547_v39  ;;  %v1591_v3 = vadd.f32 %v1590_v63, %v1548_v24 }
 0x4dc   : > { %v1613_v31 = vadd.f32 %v2126_v57, %v1571_v7  ;;  %v1633_v47 = vadd.f32 %v2127_v59, %v1591_v3 }
 0x4de   : > { %v2129_v6 = vmul.f32 -1.442695, %v1613_v31  ;;  %v2130_v53 = vmul.f32 -1.442695, %v1633_v47  ;;  %v1731_v31 = vld [vmem:[%s2658_s13] sm:$0x7] }
 0x4df   : > { %v1733_v47 = vperm.slane %v1731_v31, 0  ;;  %v1735_v10 = vperm.slane %v1731_v31, 2  ;;  %s2139_s13 = smul.u32 4294967240, %s2276_s18 }
 0x4e0   : > { %2241 = vpow2.f32 %v2129_v6  ;;  %v1734_v6 = vperm.slane %v1731_v31, 1 }
 0x4e1   : > { %2243 = vpow2.f32 %v2130_v53  ;;  %s2011_s8 = scalar_lea.vmem %s2678_s29, %s2139_s13 }
 0x4e6   : > { %v2242_v14 = vpop.eup %2241 }
 0x4e7   : > { %v2244_v18 = vpop.eup %2243  ;;  %v1617_v21 = vadd.f32 1.0, %v2242_v14 }
 0x4e8   : > { %v1637_v33 = vadd.f32 1.0, %v2244_v18 }
 0x4e9   : > { %2245 = vrcp.f32 %v1617_v21  ;;  %v1629_v42 = vand.u32 2147483648, %v1617_v21  ;;  %v1627_v12 = vand.u32 2147483647, %v1617_v21  ;;  %vm1623_vm15 = vweird.f32 %v1617_v21 }
 0x4ea   : > { %2247 = vrcp.f32 %v1637_v33  ;;  %v1649_v24 = vand.u32 2147483648, %v1637_v33  ;;  %vm1643_vm3 = vweird.f32 %v1637_v33  ;;  %v1647_v19 = vand.u32 2147483647, %v1637_v33 }
 0x4eb   : > { %v1630_v51 = vor.u32 1.1754944e-38, %v1629_v42  ;;  %vm1628_vm1 = vcmp.eq.f32.partialorder %v1627_v12, 8.507059e+37 }
 0x4ec   : > { %v1650_v57 = vor.u32 1.1754944e-38, %v1649_v24  ;;  %vm1648_vm5 = vcmp.eq.f32.partialorder %v1647_v19, 8.507059e+37 }
 0x4ef   : > { %v2246_v38 = vpop.eup %2245 }
 0x4f0   : > { %v2248_v27 = vpop.eup %2247  ;;  %v1619_v46 = vmul.f32 %v2246_v38, %v1617_v21  ;;  %vm1624_vm14 = vweird.f32 %v2246_v38 }
 0x4f1   : > { %v1639_v37 = vmul.f32 %v2248_v27, %v1637_v33  ;;  %vm1625_vm0 = vmor %vm1623_vm15, %vm1624_vm14  ;;  %vm1644_vm2 = vweird.f32 %v2248_v27 }
 0x4f2   : > { %v1620_v41 = vsub.f32 1.0, %v1619_v46  ;;  %vm1645_vm4 = vmor %vm1643_vm3, %vm1644_vm2  ;;  %v2136_v46 = vld [vmem:[%s3237_s7 + $0xb8] sm:$0xff] }
 0x4f3   : > { %v1640_v44 = vsub.f32 1.0, %v1639_v37 }
 0x4f4   : > { %v1621_v48 = vmul.f32 %v2246_v38, %v1620_v41 }
 0x4f5   : > { %v1641_v20 = vmul.f32 %v2248_v27, %v1640_v44 }
 0x4f6   : > { %v1622_v26 = vadd.f32 %v2246_v38, %v1621_v48 }
 0x4f7   : > { %v1642_v16 = vadd.f32 %v2248_v27, %v1641_v20 }
 0x4f8   : > { %v1626_v35 = vsel %vm1625_vm0, %v2246_v38, %v1622_v26 }
 0x4f9   : > { %v1631_v28 = vsel %vm1628_vm1, %v1630_v51, %v1626_v35  ;;  %v1646_v43 = vsel %vm1645_vm4, %v2248_v27, %v1642_v16  ;;  %v1851_v35 = vpop.permute.xlu1 %1850 }
 0x4fa   : > { %v1653_v39 = vmul.f32 %v1631_v28, %v1611_v13  ;;  %v1651_v58 = vsel %vm1648_vm5, %v1650_v57, %v1646_v43  ;;  %vm1852_vm15 = vcmp.eq.s32.totalorder %v1851_v35, 1 }
 0x4fb   : > { %v1656_v59 = vsub.f32 1.0, %v1651_v58  ;;  %v1658_v7 = vmul.f32 %v1651_v58, %v3180_v56 }
 0x4fc   : > { %v1654_v62 = vadd.f32 %v2128_v40, %v1653_v39 }
 0x4fe   : > { %2249 = vtanh.f32 %v1654_v62 }
 0x504   : > { %v2250_v63 = vpop.eup %2249 }
 0x505   : > { %v1657_v2 = vmul.f32 %v2250_v63, %v1656_v59 }
 0x507   : > { %v1659_v3 = vadd.f32 %v1658_v7, %v1657_v2 }
 0x509   : > { %v3229_v8 = vsel %vm1666_vm6, %v1659_v3, %v3180_v56  ;;  %v1669_v29 = vsel %vm1666_vm6, %v1659_v3, 0.0 }
 0x50a   : > { %2132 = vst [vmem:[%s2003_s30 + $0x30] sm:$0xff] %v1669_v29  ;;  %1755 = vmatmul.f32.vlgmr.msrb.gmra.mxu1 %v3229_v8  ;;  %1775 = vmatmul.f32.vlgmr.msrb.gmra.mxu2 %v3229_v8 }
 0x50b   : > { %1795 = vmatmul.f32.vlgmr.msrb.gmra.mxu3 %v3229_v8 }
 0x587   : > { %v1756_v50 = vpop.f32.mrf.mxu1 }
 0x588   : > { %v1757_v52 = vadd.f32 %v1756_v50, %v1733_v47 }
 0x58a   : > { %v1799_v56 = vadd.f32 %v2134_v49, %v1757_v52 }
 0x58c   : > { %v2137_v53 = vmul.f32 -1.442695, %v1799_v56 }
 0x58d   : > { %v1776_v30 = vpop.f32.mrf.mxu2 }
 0x58e   : > { %2251 = vpow2.f32 %v2137_v53  ;;  %v1777_v54 = vadd.f32 %v1776_v30, %v1734_v6  ;;  %v1796_v21 = vpop.f32.mrf.mxu3 }
 0x58f   : > { %v1797_v38 = vadd.f32 %v1796_v21, %v1735_v10 }
 0x590   : > { %v1819_v17 = vadd.f32 %v2135_v11, %v1777_v54 }
 0x592   : > { %v2138_v32 = vmul.f32 -1.442695, %v1819_v17 }
 0x594   : > { %v2252_v36 = vpop.eup %2251  ;;  %2253 = vpow2.f32 %v2138_v32 }
 0x595   : > { %v1803_v60 = vadd.f32 1.0, %v2252_v36 }
 0x597   : > { %2255 = vrcp.f32 %v1803_v60  ;;  %v1815_v9 = vand.u32 2147483648, %v1803_v60  ;;  %v1813_v15 = vand.u32 2147483647, %v1803_v60  ;;  %vm1809_vm8 = vweird.f32 %v1803_v60 }
 0x599   : > { %v1816_v33 = vor.u32 1.1754944e-38, %v1815_v9  ;;  %vm1814_vm10 = vcmp.eq.f32.partialorder %v1813_v15, 8.507059e+37 }
 0x59a   : > { %v2254_v61 = vpop.eup %2253 }
 0x59b   : > { %v1823_v0 = vadd.f32 1.0, %v2254_v61 }
 0x59d   : > { %v2256_v1 = vpop.eup %2255  ;;  %2257 = vrcp.f32 %v1823_v0  ;;  %v1835_v42 = vand.u32 2147483648, %v1823_v0  ;;  %v1833_v45 = vand.u32 2147483647, %v1823_v0  ;;  %vm1829_vm12 = vweird.f32 %v1823_v0 }
 0x59e   : > { %v1805_v4 = vmul.f32 %v2256_v1, %v1803_v60  ;;  %vm1810_vm7 = vweird.f32 %v2256_v1 }
 0x59f   : > { %vm1811_vm9 = vmor %vm1809_vm8, %vm1810_vm7  ;;  %v1836_v22 = vor.u32 1.1754944e-38, %v1835_v42  ;;  %vm1834_vm14 = vcmp.eq.f32.partialorder %v1833_v45, 8.507059e+37 }
 0x5a0   : > { %v1806_v5 = vsub.f32 1.0, %v1805_v4 }
 0x5a2   : > { %v1807_v14 = vmul.f32 %v2256_v1, %v1806_v5 }
 0x5a3   : > { %v2258_v18 = vpop.eup %2257 }
 0x5a4   : > { %v1825_v23 = vmul.f32 %v2258_v18, %v1823_v0  ;;  %v1808_v25 = vadd.f32 %v2256_v1, %v1807_v14  ;;  %vm1830_vm11 = vweird.f32 %v2258_v18 }
 0x5a5   : > { %vm1831_vm13 = vmor %vm1829_vm12, %vm1830_vm11 }
 0x5a6   : > { %v1826_v34 = vsub.f32 1.0, %v1825_v23  ;;  %v1812_v27 = vsel %vm1811_vm9, %v2256_v1, %v1808_v25 }
 0x5a7   : > { %v1817_v37 = vsel %vm1814_vm10, %v1816_v33, %v1812_v27 }
 0x5a8   : > { %v1827_v41 = vmul.f32 %v2258_v18, %v1826_v34  ;;  %v1839_v44 = vmul.f32 %v1817_v37, %v1797_v38 }
 0x5aa   : > { %v1828_v48 = vadd.f32 %v2258_v18, %v1827_v41  ;;  %v1840_v12 = vadd.f32 %v2136_v46, %v1839_v44 }
 0x5ac   : > { %v1832_v20 = vsel %vm1831_vm13, %v2258_v18, %v1828_v48  ;;  %2259 = vtanh.f32 %v1840_v12 }
 0x5ad   : > { %v1837_v26 = vsel %vm1834_vm14, %v1836_v22, %v1832_v20 }
 0x5ae   : > { %v1842_v51 = vsub.f32 1.0, %v1837_v26  ;;  %v1844_v28 = vmul.f32 %v1837_v26, %v3229_v8 }
 0x5b2   : > { %v2260_v13 = vpop.eup %2259 }
 0x5b3   : > { %v1843_v40 = vmul.f32 %v2260_v13, %v1842_v51 }
 0x5b5   : > { %v1845_v16 = vadd.f32 %v1844_v28, %v1843_v40 }
 0x5b7   : > { %v1853_v39 = vsel %vm1852_vm15, %v1845_v16, %v3229_v8  ;;  %v1855_v24 = vsel %vm1852_vm15, %v1845_v16, 0.0 }
 0x5b8   : > { %2140 = vst [vmem:[%s2011_s8 + $0x38] sm:$0xff] %v1855_v24 }
 0x5b9   : > { %1863 = vst [vmem:[%s362_s11] sm:$0xff] %v1853_v39 }
 0x5ba PF: > { %s16_s20 = sadd.s32 1, %s2284_s20   ;;  %s3265_s18 = smov %s2280_s19 }
 0x5bb   : > { %p13_p5 = scmp.ge.s32.totalorder %s16_s20, 4   ;;  %s3266_s19 = smov %s3268_s21 }
 0x5bd   :  { %15 = sbr.rel (!%p13_p5) target bundleno = 2 (0x2), region = 108 }

</bundles_post_ra>
